<compile_context>
chip_gen: v6e
topology: v6e:2x2x1
jax: 0.10.0
libtpu: 0.0.40
codegen_flags: <defaults>
</compile_context>

<pallas_src>
import functools

import jax
import jax.numpy as jnp
from jax.experimental import pallas as pl
from jax.experimental.pallas import tpu as pltpu

EPS = 1e-5
EXPANSION = 4
MXU_DTYPE = jnp.bfloat16          # MXU operand dtype (accumulation is always f32)
ACT_DTYPE = jnp.bfloat16          # inter-stage activation storage dtype
TM = 512                          # row tile over the flattened N*H*W axis
LANES = 128
VMEM_LIMIT = 48 * 1024 * 1024     # v7x-safe scoped-VMEM budget (plenty on v5e/v6e)


# ----------------------------- Pallas kernels -----------------------------

def _stats_kernel(x_ref, sum_ref, sq_ref):
    # Per-tile partial sum / sumsq (bn1).  Zero pad-rows contribute nothing.
    x = x_ref[...].astype(jnp.float32)
    sum_ref[...] = jnp.sum(x, axis=0, keepdims=True)
    sq_ref[...] = jnp.sum(x * x, axis=0, keepdims=True)


def _affine_relu_mm_stats_kernel(m_valid, x_ref, s_ref, b_ref, w_ref,
                                 o_ref, sum_ref, sq_ref):
    # z = relu(x*scale + shift) @ w   plus fused per-tile bn stats of z (f32 accumulator).
    tm = x_ref.shape[0]
    a = jnp.maximum(x_ref[...].astype(jnp.float32) * s_ref[...] + b_ref[...], 0.0)
    rows = jax.lax.broadcasted_iota(jnp.int32, (tm, 1), 0) + pl.program_id(0) * tm
    a = jnp.where(rows < m_valid, a, 0.0)         # pad rows -> exact zero outputs
    acc = jnp.dot(a.astype(MXU_DTYPE), w_ref[...], preferred_element_type=jnp.float32)
    o_ref[...] = acc.astype(o_ref.dtype)
    sum_ref[...] = jnp.sum(acc, axis=0, keepdims=True)
    sq_ref[...] = jnp.sum(acc * acc, axis=0, keepdims=True)


def _affine_relu_mm2_stats_kernel(m_valid, x_ref, s_ref, b_ref, w1_ref, w2_ref,
                                  o1_ref, o2_ref, sum_ref, sq_ref):
    # conv1 + projection shortcut share one A-tile read (stride == 1); stats on conv1.
    tm = x_ref.shape[0]
    a = jnp.maximum(x_ref[...].astype(jnp.float32) * s_ref[...] + b_ref[...], 0.0)
    rows = jax.lax.broadcasted_iota(jnp.int32, (tm, 1), 0) + pl.program_id(0) * tm
    a = jnp.where(rows < m_valid, a, 0.0)
    ab = a.astype(MXU_DTYPE)
    acc1 = jnp.dot(ab, w1_ref[...], preferred_element_type=jnp.float32)
    o1_ref[...] = acc1.astype(o1_ref.dtype)
    o2_ref[...] = jnp.dot(ab, w2_ref[...],
                          preferred_element_type=jnp.float32).astype(o2_ref.dtype)
    sum_ref[...] = jnp.sum(acc1, axis=0, keepdims=True)
    sq_ref[...] = jnp.sum(acc1 * acc1, axis=0, keepdims=True)


def _affine_relu_mm_kernel(x_ref, s_ref, b_ref, w_ref, o_ref):
    # Plain fused affine+relu+matmul (strided projection shortcut; no stats consumer).
    a = jnp.maximum(x_ref[...].astype(jnp.float32) * s_ref[...] + b_ref[...], 0.0)
    o_ref[...] = jnp.dot(a.astype(MXU_DTYPE), w_ref[...],
                         preferred_element_type=jnp.float32).astype(o_ref.dtype)


def _mm_stats_kernel(p_ref, w_ref, o_ref, sum_ref, sq_ref):
    # conv2 fallback (stride != 1): single K = 9*Cin matmul on bf16 im2col patches
    # (bn2 affine + ReLU already applied before padding, so pad rows/pixels are zeros).
    acc = jnp.dot(p_ref[...], w_ref[...], preferred_element_type=jnp.float32)
    o_ref[...] = acc.astype(o_ref.dtype)
    sum_ref[...] = jnp.sum(acc, axis=0, keepdims=True)
    sq_ref[...] = jnp.sum(acc * acc, axis=0, keepdims=True)


def _affine_relu_mm_add_kernel(x_ref, r_ref, s_ref, b_ref, w_ref, o_ref):
    # conv3 with bn3+ReLU prologue and residual-add epilogue.
    a = jnp.maximum(x_ref[...].astype(jnp.float32) * s_ref[...] + b_ref[...], 0.0)
    acc = jnp.dot(a.astype(MXU_DTYPE), w_ref[...], preferred_element_type=jnp.float32)
    o_ref[...] = (acc + r_ref[...].astype(jnp.float32)).astype(o_ref.dtype)


def _conv3x3_halo_kernel(hh, ww, tr, x_ref, s_ref, b_ref, w_ref,
                         o_ref, sum_ref, sq_ref):
    # Halo-aware 3x3 conv, stride 1.  x_ref holds the full zero-padded (H+2, W+2, C)
    # image of batch element `n` (resident across the row-block axis).  bn2 affine +
    # ReLU run in the prologue; spatial-padding pixels are re-zeroed by masking so they
    # contribute nothing.  9 shifted matmuls accumulate in an f32 register accumulator.
    rb = pl.program_id(1)
    c = x_ref.shape[-1]
    row0 = rb * tr                                       # start row in padded coords
    a = x_ref[0, pl.ds(row0, tr + 2), :, :].astype(jnp.float32)
    a = jnp.maximum(a * s_ref[...].reshape(1, 1, c) + b_ref[...].reshape(1, 1, c), 0.0)
    r_idx = jax.lax.broadcasted_iota(jnp.int32, (tr + 2, ww + 2, 1), 0) + row0
    c_idx = jax.lax.broadcasted_iota(jnp.int32, (tr + 2, ww + 2, 1), 1)
    valid = (r_idx >= 1) & (r_idx <= hh) & (c_idx >= 1) & (c_idx <= ww)
    a = jnp.where(valid, a, 0.0)                         # zero padded border post-affine
    ab = a.astype(MXU_DTYPE)

    acc = jnp.zeros((tr * ww, c), jnp.float32)
    for kh in range(3):
        for kw in range(3):
            tap = ab[kh:kh + tr, kw:kw + ww, :].reshape(tr * ww, c)
            acc = acc + jnp.dot(tap, w_ref[kh * 3 + kw],
                                preferred_element_type=jnp.float32)

    o_ref[...] = acc.reshape(1, tr, ww, c).astype(o_ref.dtype)
    sum_ref[...] = jnp.sum(acc, axis=0, keepdims=True)   # fused bn3 partial stats (f32)
    sq_ref[...] = jnp.sum(acc * acc, axis=0, keepdims=True)


# ----------------------------- pallas_call glue -----------------------------

def _round_up(x, m):
    return (x + m - 1) // m * m


def _cparams(semantics):
    return pltpu.CompilerParams(dimension_semantics=semantics,
                                vmem_limit_bytes=VMEM_LIMIT)


def _tiled_call(kernel, row_ins, const_ins, row_outs, tile_outs):
    """Run `kernel` over row tiles of the (M, K) arrays in `row_ins`.

    const_ins get a constant index_map (resident in VMEM across the grid); the M axis is
    double-buffered by the BlockSpec pipeliner and marked "parallel" (megacore on v7x).
    row_outs: [(cols, dtype)]  -> (M, cols) outputs (row-padded internally, sliced back).
    tile_outs: [(cols, dtype)] -> (num_tiles, cols) per-tile partial outputs (no resident
    accumulators, so the parallel axis stays race-free).
    """
    m = row_ins[0].shape[0]
    tm = min(TM, _round_up(m, 8))
    m_pad = _round_up(m, tm)
    n_tiles = m_pad // tm
    row_ins = [a if a.shape[0] == m_pad else jnp.pad(a, ((0, m_pad - m), (0, 0)))
               for a in row_ins]

    in_specs = ([pl.BlockSpec((tm, a.shape[1]), lambda i: (i, 0)) for a in row_ins] +
                [pl.BlockSpec(a.shape, lambda i, nd=a.ndim: (0,) * nd)
                 for a in const_ins])
    out_shape = ([jax.ShapeDtypeStruct((m_pad, c), dt) for c, dt in row_outs] +
                 [jax.ShapeDtypeStruct((n_tiles, c), dt) for c, dt in tile_outs])
    out_specs = ([pl.BlockSpec((tm, c), lambda i: (i, 0)) for c, _ in row_outs] +
                 [pl.BlockSpec((1, c), lambda i: (i, 0)) for c, _ in tile_outs])

    outs = pl.pallas_call(
        kernel,
        grid=(n_tiles,),
        in_specs=in_specs,
        out_specs=tuple(out_specs),
        out_shape=tuple(out_shape),
        compiler_params=_cparams(("parallel",)),
    )(*row_ins, *const_ins)

    outs = list(outs)
    res = [outs[i][:m] for i in range(len(row_outs))]
    res += outs[len(row_outs):]
    return tuple(res)


def _fold_bn(psum, psq, count, gamma, beta, c_pad):
    """Reduce per-tile partial (sum, sumsq) and fold BN into per-channel scale/shift."""
    c = gamma.shape[0]
    s = jnp.sum(psum.astype(jnp.float32), axis=0, keepdims=True)
    q = jnp.sum(psq.astype(jnp.float32), axis=0, keepdims=True)
    mean = s / count
    var = q / count - mean * mean                 # biased variance (training-mode BN)
    g = jnp.pad(gamma.astype(jnp.float32), (0, c_pad - c)).reshape(1, c_pad)
    b = jnp.pad(beta.astype(jnp.float32), (0, c_pad - c)).reshape(1, c_pad)
    scale = g * jax.lax.rsqrt(var + EPS)
    shift = b - mean * scale
    return scale, shift                           # padded channels: scale = shift = 0


def _conv1x1_w(w_oihw, cin_p, cout_p):
    co, ci = w_oihw.shape[0], w_oihw.shape[1]
    w = jnp.transpose(w_oihw[:, :, 0, 0], (1, 0))              # (Cin, Cout)
    w = jnp.pad(w, ((0, cin_p - ci), (0, cout_p - co)))
    return w.astype(MXU_DTYPE)


def _conv3x3_w(w_oihw, cin_p, cout_p):
    co, ci = w_oihw.shape[0], w_oihw.shape[1]
    w = jnp.transpose(w_oihw, (2, 3, 1, 0))                    # (3, 3, Cin, Cout)
    w = jnp.pad(w, ((0, 0), (0, 0), (0, cin_p - ci), (0, cout_p - co)))
    return w.astype(MXU_DTYPE)


def _pick_tr(h, w):
    # Largest divisor of H giving roughly <=1024 output rows (TR*W) per conv2 tile.
    target = max(1, 1024 // max(w, 1))
    best = 1
    for d in range(1, h + 1):
        if h % d == 0 and d <= target:
            best = d
    return best


def _im2col_3x3(z1, scale, shift, stride):
    """bf16 (M', 9*C) operand for the strided conv2 fallback (stride != 1 only).

    bn2 affine + ReLU are applied before the zero pad, so pad pixels are exact zeros.
    TODO(synk): replace with a halo-aware strided kernel (blowup here is 9/stride^2).
    """
    n, h, w, c = z1.shape
    ho = (h + 2 - 3) // stride + 1
    wo = (w + 2 - 3) // stride + 1
    a = jnp.maximum(z1.astype(jnp.float32) * scale.reshape(1, 1, 1, c)
                    + shift.reshape(1, 1, 1, c), 0.0).astype(MXU_DTYPE)
    ap = jnp.pad(a, ((0, 0), (1, 1), (1, 1), (0, 0)))
    cols = []
    for kh in range(3):
        for kw in range(3):
            tap = ap[:, kh:kh + (ho - 1) * stride + 1:stride,
                        kw:kw + (wo - 1) * stride + 1:stride, :]
            cols.append(tap.reshape(n * ho * wo, c))
    return jnp.concatenate(cols, axis=1), ho, wo               # K order (kh, kw, cin)


# ----------------------------- forward pass -----------------------------

def preact_bottleneck_forward(x_nchw, params, stride):
    # TODO(synk): when stacking blocks, keep activations NHWC between blocks and hoist
    #             the NCHW<->NHWC transposes to the network boundary.
    x = jnp.transpose(x_nchw, (0, 2, 3, 1))                    # NCHW -> NHWC
    n, h, w, cin = x.shape
    planes = params['w1'].shape[0]
    cout = EXPANSION * planes

    cin_p = _round_up(cin, LANES)
    cp_p = _round_up(planes, LANES)
    cout_p = _round_up(cout, LANES)

    # bf16 input, channel-padded to lane multiples (padded channels are zero -> they
    # stay exactly zero through the whole block since gammas/betas/weights are zero-padded).
    xb = jnp.pad(x.astype(ACT_DTYPE), ((0, 0), (0, 0), (0, 0), (0, cin_p - cin)))
    x2d = xb.reshape(n * h * w, cin_p)
    m = n * h * w

    # ---- bn1 statistics: one tiled partial-stats pass over the bf16 input ----
    s_part, q_part = _tiled_call(_stats_kernel, [x2d], [], [],
                                 [(cin_p, jnp.float32), (cin_p, jnp.float32)])
    s1, b1 = _fold_bn(s_part, q_part, m, params['bn1_g'], params['bn1_b'], cin_p)

    # ---- conv1 (1x1) with bn1+ReLU prologue, fused bn2 partial stats, bf16 output ----
    w1 = _conv1x1_w(params['w1'], cin_p, cp_p)
    has_sc = 'w_sc' in params

    if has_sc and stride == 1:
        w_sc = _conv1x1_w(params['w_sc'], cin_p, cout_p)
        z1_2d, shortcut2d, zs, zq = _tiled_call(
            functools.partial(_affine_relu_mm2_stats_kernel, m),
            [x2d], [s1, b1, w1, w_sc],
            [(cp_p, ACT_DTYPE), (cout_p, ACT_DTYPE)],
            [(cp_p, jnp.float32), (cp_p, jnp.float32)])
    else:
        z1_2d, zs, zq = _tiled_call(
            functools.partial(_affine_relu_mm_stats_kernel, m),
            [x2d], [s1, b1, w1],
            [(cp_p, ACT_DTYPE)],
            [(cp_p, jnp.float32), (cp_p, jnp.float32)])
        if has_sc:
            # Strided projection shortcut: subsample first (per-channel affine commutes
            # with spatial subsampling), then a plain fused 1x1.
            # TODO(synk): fold the ::stride subsample into a BlockSpec index_map instead
            #             of an XLA strided copy.
            w_sc = _conv1x1_w(params['w_sc'], cin_p, cout_p)
            xs2d = xb[:, ::stride, ::stride, :].reshape(-1, cin_p)
            (shortcut2d,) = _tiled_call(_affine_relu_mm_kernel,
                                        [xs2d], [s1, b1, w_sc],
                                        [(cout_p, ACT_DTYPE)], [])
        else:
            shortcut2d = x2d                                   # identity shortcut

    s2, b2 = _fold_bn(zs, zq, m, params['bn2_g'], params['bn2_b'], cp_p)

    # ---- conv2 (3x3) with bn2+ReLU prologue, fused bn3 partial stats, bf16 output ----
    z1 = z1_2d.reshape(n, h, w, cp_p)
    if stride == 1:
        z1p = jnp.pad(z1, ((0, 0), (1, 1), (1, 1), (0, 0)))    # spatial zero pad only
        tr = _pick_tr(h, w)
        n_rb = h // tr
        w2k = _conv3x3_w(params['w2'], cp_p, cp_p).reshape(9, cp_p, cp_p)
        z2, z2s, z2q = pl.pallas_call(
            functools.partial(_conv3x3_halo_kernel, h, w, tr),
            grid=(n, n_rb),
            in_specs=[pl.BlockSpec((1, h + 2, w + 2, cp_p), lambda bi, ri: (bi, 0, 0, 0)),
                      pl.BlockSpec((1, cp_p), lambda bi, ri: (0, 0)),
                      pl.BlockSpec((1, cp_p), lambda bi, ri: (0, 0)),
                      pl.BlockSpec((9, cp_p, cp_p), lambda bi, ri: (0, 0, 0))],
            out_specs=(pl.BlockSpec((1, tr, w, cp_p), lambda bi, ri: (bi, ri, 0, 0)),
                       pl.BlockSpec((1, cp_p), lambda bi, ri: (bi * n_rb + ri, 0)),
                       pl.BlockSpec((1, cp_p), lambda bi, ri: (bi * n_rb + ri, 0))),
            out_shape=(jax.ShapeDtypeStruct((n, h, w, cp_p), ACT_DTYPE),
                       jax.ShapeDtypeStruct((n * n_rb, cp_p), jnp.float32),
                       jax.ShapeDtypeStruct((n * n_rb, cp_p), jnp.float32)),
            compiler_params=_cparams(("parallel", "parallel")),
        )(z1p, s2, b2, w2k)
        ho, wo = h, w
        m2 = n * ho * wo
        z2_2d = z2.reshape(m2, cp_p)
    else:
        patches, ho, wo = _im2col_3x3(z1, s2, b2, stride)
        w2f = _conv3x3_w(params['w2'], cp_p, cp_p).reshape(9 * cp_p, cp_p)
        m2 = n * ho * wo
        z2_2d, z2s, z2q = _tiled_call(
            _mm_stats_kernel, [patches], [w2f],
            [(cp_p, ACT_DTYPE)],
            [(cp_p, jnp.float32), (cp_p, jnp.float32)])

    s3, b3 = _fold_bn(z2s, z2q, m2, params['bn3_g'], params['bn3_b'], cp_p)

    # ---- conv3 (1x1) with bn3+ReLU prologue and residual-add epilogue ----
    w3 = _conv1x1_w(params['w3'], cp_p, cout_p)
    (out2d,) = _tiled_call(_affine_relu_mm_add_kernel,
                           [z2_2d, shortcut2d], [s3, b3, w3],
                           [(cout_p, jnp.float32)], [])
    out = out2d.reshape(n, ho, wo, cout_p)[:, :, :, :cout]
    return jnp.transpose(out, (0, 3, 1, 2))                    # NHWC -> NCHW


# ----------------------------- params / reference -----------------------------

def init_params(key, in_planes, planes, stride):
    ks = jax.random.split(key, 10)
    f32 = jnp.float32
    p = {
        'bn1_g': 1.0 + 0.1 * jax.random.normal(ks[0], (in_planes,), f32),
        'bn1_b': 0.1 * jax.random.normal(ks[1], (in_planes,), f32),
        'w1': 0.2 * jax.random.normal(ks[2], (planes, in_planes, 1, 1), f32),
        'bn2_g': 1.0 + 0.1 * jax.random.normal(ks[3], (planes,), f32),
        'bn2_b': 0.1 * jax.random.normal(ks[4], (planes,), f32),
        'w2': 0.2 * jax.random.normal(ks[5], (planes, planes, 3, 3), f32),
        'bn3_g': 1.0 + 0.1 * jax.random.normal(ks[6], (planes,), f32),
        'bn3_b': 0.1 * jax.random.normal(ks[7], (planes,), f32),
        'w3': 0.2 * jax.random.normal(ks[8], (EXPANSION * planes, planes, 1, 1), f32),
    }
    if stride != 1 or in_planes != EXPANSION * planes:
        p['w_sc'] = 0.2 * jax.random.normal(ks[9], (EXPANSION * planes, in_planes, 1, 1), f32)
    return p


def _ref_forward(x_nchw, params, stride):
    # Pure-jnp, f32 HIGHEST-precision reference (training-mode BN, biased variance).
    hp = jax.lax.Precision.HIGHEST
    x = jnp.transpose(x_nchw, (0, 2, 3, 1))

    def bnr(x, g, b):
        m = x.mean(axis=(0, 1, 2), keepdims=True)
        v = ((x - m) ** 2).mean(axis=(0, 1, 2), keepdims=True)
        return jnp.maximum((x - m) / jnp.sqrt(v + EPS) * g + b, 0.0)

    def c1(x, w, s=1):
        if s != 1:
            x = x[:, ::s, ::s, :]
        return jnp.einsum('nhwc,oc->nhwo', x, w[:, :, 0, 0], precision=hp)

    def c3(x, w, s):
        N, H, W, C = x.shape
        Ho = (H + 2 - 3) // s + 1
        Wo = (W + 2 - 3) // s + 1
        xp = jnp.pad(x, ((0, 0), (1, 1), (1, 1), (0, 0)))
        acc = 0.0
        for kh in range(3):
            for kw in range(3):
                tap = xp[:, kh:kh + (Ho - 1) * s + 1:s, kw:kw + (Wo - 1) * s + 1:s, :]
                acc = acc + jnp.einsum('nhwc,oc->nhwo', tap, w[:, :, kh, kw], precision=hp)
        return acc

    out = bnr(x, params['bn1_g'], params['bn1_b'])
    shortcut = c1(out, params['w_sc'], stride) if 'w_sc' in params else x
    out = c1(out, params['w1'])
    out = bnr(out, params['bn2_g'], params['bn2_b'])
    out = c3(out, params['w2'], stride)
    out = bnr(out, params['bn3_g'], params['bn3_b'])
    out = c1(out, params['w3']) + shortcut
    return jnp.transpose(out, (0, 3, 1, 2))


if __name__ == "__main__":
    key = jax.random.PRNGKey(0)
    fwd = jax.jit(preact_bottleneck_forward, static_argnums=2)

    configs = [
        # (N, in_planes, planes, stride, H)
        (2, 16, 8, 2, 16),   # strided projection shortcut (im2col fallback conv2)
        (2, 16, 8, 1, 8),    # stride-1 projection shortcut (dual-matmul + halo conv2)
        (2, 32, 8, 1, 8),    # identity shortcut (halo conv2)
    ]

    ok = True
    worst = 0.0
    for idx, (N, cin, planes, stride, H) in enumerate(configs):
        kx, kp = jax.random.split(jax.random.fold_in(key, idx))
        x = jax.random.normal(kx, (N, cin, H, H), jnp.float32)   # NCHW like PyTorch
        params = init_params(kp, cin, planes, stride)

        out = jax.block_until_ready(fwd(x, params, stride))
        assert out.shape == (N, EXPANSION * planes, H // stride, H // stride), out.shape

        ref = _ref_forward(x, params, stride)
        err = float(jnp.max(jnp.abs(out - ref)))
        rel = err / max(1.0, float(jnp.max(jnp.abs(ref))))
        worst = max(worst, rel)
        ok = ok and (rel < 5e-2)   # bf16 MXU operands + bf16 intermediates

    if ok:
        print("KERNEL_OK")
    else:
        print(f"MISMATCH worst_rel_err={worst}")
</pallas_src>

<mosaic_0001>
module attributes {stable_mosaic.version = 11 : i64} {
  func.func @_stats_kernel(%arg0: i32, %arg1: memref<512x128xbf16, #tpu.memory_space<vmem>>, %arg2: memref<1x128xf32, #tpu.memory_space<vmem>>, %arg3: memref<1x128xf32, #tpu.memory_space<vmem>>) attributes {dimension_semantics = [#tpu.dimension_semantics<parallel>], iteration_bounds = array<i64: 1>, scalar_prefetch = 0 : i64, scratch_operands = 0 : i64, tpu.core_type = #tpu.core_type<tc>, window_params = [{transform_indices = @transform_0, window_bounds = array<i64: 512, 128>}, {transform_indices = @transform_1, window_bounds = array<i64: 1, 128>}, {transform_indices = @transform_2, window_bounds = array<i64: 1, 128>}]} {
    %c0 = arith.constant 0 : index
    %c0_0 = arith.constant 0 : index
    %0 = vector.load %arg1[%c0, %c0_0] : memref<512x128xbf16, #tpu.memory_space<vmem>>, vector<512x128xbf16>
    %1 = arith.extf %0 : vector<512x128xbf16> to vector<512x128xf32>
    %cst = arith.constant dense<0.000000e+00> : vector<128xf32>
    %2 = vector.multi_reduction <add>, %1, %cst [0] : vector<512x128xf32> to vector<128xf32>
    %3 = vector.shape_cast %2 : vector<128xf32> to vector<1x128xf32>
    %c0_1 = arith.constant 0 : index
    %c0_2 = arith.constant 0 : index
    %4 = vector.load %arg2[%c0_1, %c0_2] : memref<1x128xf32, #tpu.memory_space<vmem>>, vector<1x128xf32>
    tpu.vector_store %arg2[%c0_1, %c0_2], %3 {strides = array<i32>} : memref<1x128xf32, #tpu.memory_space<vmem>>, vector<1x128xf32>,
    %5 = arith.mulf %1, %1 : vector<512x128xf32>
    %cst_3 = arith.constant dense<0.000000e+00> : vector<128xf32>
    %6 = vector.multi_reduction <add>, %5, %cst_3 [0] : vector<512x128xf32> to vector<128xf32>
    %7 = vector.shape_cast %6 : vector<128xf32> to vector<1x128xf32>
    %c0_4 = arith.constant 0 : index
    %c0_5 = arith.constant 0 : index
    %8 = vector.load %arg3[%c0_4, %c0_5] : memref<1x128xf32, #tpu.memory_space<vmem>>, vector<1x128xf32>
    tpu.vector_store %arg3[%c0_4, %c0_5], %7 {strides = array<i32>} : memref<1x128xf32, #tpu.memory_space<vmem>>, vector<1x128xf32>,
    return
  }
  func.func @transform_0(%arg0: i32) -> (i32, i32) {
    %c0_i32 = arith.constant 0 : i32
    %c0_i32_0 = arith.constant 0 : i32
    return %arg0, %c0_i32 : i32, i32
  }
  func.func @transform_1(%arg0: i32) -> (i32, i32) {
    %c0_i32 = arith.constant 0 : i32
    %c0_i32_0 = arith.constant 0 : i32
    return %arg0, %c0_i32 : i32, i32
  }
  func.func @transform_2(%arg0: i32) -> (i32, i32) {
    %c0_i32 = arith.constant 0 : i32
    %c0_i32_0 = arith.constant 0 : i32
    return %arg0, %c0_i32 : i32, i32
  }
}

module attributes {stable_mosaic.version = 11 : i64} {
  func.func @_affine_relu_mm_stats_kernel(%arg0: i32, %arg1: memref<512x128xbf16, #tpu.memory_space<vmem>>, %arg2: memref<1x128xf32, #tpu.memory_space<vmem>>, %arg3: memref<1x128xf32, #tpu.memory_space<vmem>>, %arg4: memref<128x128xbf16, #tpu.memory_space<vmem>>, %arg5: memref<512x128xbf16, #tpu.memory_space<vmem>>, %arg6: memref<1x128xf32, #tpu.memory_space<vmem>>, %arg7: memref<1x128xf32, #tpu.memory_space<vmem>>) attributes {dimension_semantics = [#tpu.dimension_semantics<parallel>], iteration_bounds = array<i64: 1>, scalar_prefetch = 0 : i64, scratch_operands = 0 : i64, tpu.core_type = #tpu.core_type<tc>, window_params = [{transform_indices = @transform_0, window_bounds = array<i64: 512, 128>}, {pipeline_mode = #tpu.pipeline_mode<synchronous>, transform_indices = @transform_1, window_bounds = array<i64: 1, 128>}, {pipeline_mode = #tpu.pipeline_mode<synchronous>, transform_indices = @transform_2, window_bounds = array<i64: 1, 128>}, {pipeline_mode = #tpu.pipeline_mode<synchronous>, transform_indices = @transform_3, window_bounds = array<i64: 128, 128>}, {transform_indices = @transform_4, window_bounds = array<i64: 512, 128>}, {transform_indices = @transform_5, window_bounds = array<i64: 1, 128>}, {transform_indices = @transform_6, window_bounds = array<i64: 1, 128>}]} {
    %c0 = arith.constant 0 : index
    %c0_0 = arith.constant 0 : index
    %0 = vector.load %arg1[%c0, %c0_0] : memref<512x128xbf16, #tpu.memory_space<vmem>>, vector<512x128xbf16>
    %1 = arith.extf %0 : vector<512x128xbf16> to vector<512x128xf32>
    %c0_1 = arith.constant 0 : index
    %c0_2 = arith.constant 0 : index
    %2 = vector.load %arg2[%c0_1, %c0_2] : memref<1x128xf32, #tpu.memory_space<vmem>>, vector<1x128xf32>
    %3 = vector.broadcast %2 : vector<1x128xf32> to vector<512x128xf32>
    %4 = arith.mulf %1, %3 : vector<512x128xf32>
    %c0_3 = arith.constant 0 : index
    %c0_4 = arith.constant 0 : index
    %5 = vector.load %arg3[%c0_3, %c0_4] : memref<1x128xf32, #tpu.memory_space<vmem>>, vector<1x128xf32>
    %6 = vector.broadcast %5 : vector<1x128xf32> to vector<512x128xf32>
    %7 = arith.addf %4, %6 : vector<512x128xf32>
    %cst = arith.constant 0.000000e+00 : f32
    %8 = vector.broadcast %cst : f32 to vector<512x128xf32>
    %9 = arith.maximumf %7, %8 : vector<512x128xf32>
    %10 = tpu.iota {dimensions = array<i32: 0>} : vector<512x1xi32>
    %c512_i32 = arith.constant 512 : i32
    %11 = arith.muli %arg0, %c512_i32 : i32
    %12 = vector.broadcast %11 : i32 to vector<512x1xi32>
    %13 = arith.addi %10, %12 : vector<512x1xi32>
    %c512_i32_5 = arith.constant 512 : i32
    %14 = vector.broadcast %c512_i32_5 : i32 to vector<512x1xi32>
    %15 = arith.cmpi slt, %13, %14 : vector<512x1xi32>
    %cst_6 = arith.constant 0.000000e+00 : f32
    %16 = vector.shape_cast %15 : vector<512x1xi1> to vector<512x1xi1>
    %17 = vector.broadcast %16 : vector<512x1xi1> to vector<512x128xi1>
    %18 = vector.broadcast %cst_6 : f32 to vector<512x128xf32>
    %19 = arith.select %17, %9, %18 : vector<512x128xi1>, vector<512x128xf32>
    %20 = arith.truncf %19 : vector<512x128xf32> to vector<512x128xbf16>
    %c0_7 = arith.constant 0 : index
    %c0_8 = arith.constant 0 : index
    %21 = vector.load %arg4[%c0_7, %c0_8] : memref<128x128xbf16, #tpu.memory_space<vmem>>, vector<128x128xbf16>
    %cst_9 = arith.constant dense<0.000000e+00> : vector<512x128xf32>
    %22 = tpu.matmul %20, %21, %cst_9 {dimension_numbers = #tpu.dot_dimension_numbers<[1], [0], [0], [1], [0, 0, 1, 1], [], []>} : vector<512x128xbf16>, vector<128x128xbf16>, vector<512x128xf32> -> vector<512x128xf32>
    %23 = arith.truncf %22 : vector<512x128xf32> to vector<512x128xbf16>
    %c0_10 = arith.constant 0 : index
    %c0_11 = arith.constant 0 : index
    %24 = vector.load %arg5[%c0_10, %c0_11] : memref<512x128xbf16, #tpu.memory_space<vmem>>, vector<512x128xbf16>
    tpu.vector_store %arg5[%c0_10, %c0_11], %23 {strides = array<i32>} : memref<512x128xbf16, #tpu.memory_space<vmem>>, vector<512x128xbf16>,
    %cst_12 = arith.constant dense<0.000000e+00> : vector<128xf32>
    %25 = vector.multi_reduction <add>, %22, %cst_12 [0] : vector<512x128xf32> to vector<128xf32>
    %26 = vector.shape_cast %25 : vector<128xf32> to vector<1x128xf32>
    %c0_13 = arith.constant 0 : index
    %c0_14 = arith.constant 0 : index
    %27 = vector.load %arg6[%c0_13, %c0_14] : memref<1x128xf32, #tpu.memory_space<vmem>>, vector<1x128xf32>
    tpu.vector_store %arg6[%c0_13, %c0_14], %26 {strides = array<i32>} : memref<1x128xf32, #tpu.memory_space<vmem>>, vector<1x128xf32>,
    %28 = arith.mulf %22, %22 : vector<512x128xf32>
    %cst_15 = arith.constant dense<0.000000e+00> : vector<128xf32>
    %29 = vector.multi_reduction <add>, %28, %cst_15 [0] : vector<512x128xf32> to vector<128xf32>
    %30 = vector.shape_cast %29 : vector<128xf32> to vector<1x128xf32>
    %c0_16 = arith.constant 0 : index
    %c0_17 = arith.constant 0 : index
    %31 = vector.load %arg7[%c0_16, %c0_17] : memref<1x128xf32, #tpu.memory_space<vmem>>, vector<1x128xf32>
    tpu.vector_store %arg7[%c0_16, %c0_17], %30 {strides = array<i32>} : memref<1x128xf32, #tpu.memory_space<vmem>>, vector<1x128xf32>,
    return
  }
  func.func @transform_0(%arg0: i32) -> (i32, i32) {
    %c0_i32 = arith.constant 0 : i32
    %c0_i32_0 = arith.constant 0 : i32
    return %arg0, %c0_i32 : i32, i32
  }
  func.func @transform_1(%arg0: i32) -> (i32, i32) {
    %c0_i32 = arith.constant 0 : i32
    %c0_i32_0 = arith.constant 0 : i32
    %c0_i32_1 = arith.constant 0 : i32
    return %c0_i32, %c0_i32_0 : i32, i32
  }
  func.func @transform_2(%arg0: i32) -> (i32, i32) {
    %c0_i32 = arith.constant 0 : i32
    %c0_i32_0 = arith.constant 0 : i32
    %c0_i32_1 = arith.constant 0 : i32
    return %c0_i32, %c0_i32_0 : i32, i32
  }
  func.func @transform_3(%arg0: i32) -> (i32, i32) {
    %c0_i32 = arith.constant 0 : i32
    %c0_i32_0 = arith.constant 0 : i32
    %c0_i32_1 = arith.constant 0 : i32
    return %c0_i32, %c0_i32_0 : i32, i32
  }
  func.func @transform_4(%arg0: i32) -> (i32, i32) {
    %c0_i32 = arith.constant 0 : i32
    %c0_i32_0 = arith.constant 0 : i32
    return %arg0, %c0_i32 : i32, i32
  }
  func.func @transform_5(%arg0: i32) -> (i32, i32) {
    %c0_i32 = arith.constant 0 : i32
    %c0_i32_0 = arith.constant 0 : i32
    return %arg0, %c0_i32 : i32, i32
  }
  func.func @transform_6(%arg0: i32) -> (i32, i32) {
    %c0_i32 = arith.constant 0 : i32
    %c0_i32_0 = arith.constant 0 : i32
    return %arg0, %c0_i32 : i32, i32
  }
}

module attributes {stable_mosaic.version = 11 : i64} {
  func.func @_mm_stats_kernel(%arg0: i32, %arg1: memref<128x1152xbf16, #tpu.memory_space<vmem>>, %arg2: memref<1152x128xbf16, #tpu.memory_space<vmem>>, %arg3: memref<128x128xbf16, #tpu.memory_space<vmem>>, %arg4: memref<1x128xf32, #tpu.memory_space<vmem>>, %arg5: memref<1x128xf32, #tpu.memory_space<vmem>>) attributes {dimension_semantics = [#tpu.dimension_semantics<parallel>], iteration_bounds = array<i64: 1>, scalar_prefetch = 0 : i64, scratch_operands = 0 : i64, tpu.core_type = #tpu.core_type<tc>, window_params = [{transform_indices = @transform_0, window_bounds = array<i64: 128, 1152>}, {pipeline_mode = #tpu.pipeline_mode<synchronous>, transform_indices = @transform_1, window_bounds = array<i64: 1152, 128>}, {transform_indices = @transform_2, window_bounds = array<i64: 128, 128>}, {transform_indices = @transform_3, window_bounds = array<i64: 1, 128>}, {transform_indices = @transform_4, window_bounds = array<i64: 1, 128>}]} {
    %c0 = arith.constant 0 : index
    %c0_0 = arith.constant 0 : index
    %0 = vector.load %arg1[%c0, %c0_0] : memref<128x1152xbf16, #tpu.memory_space<vmem>>, vector<128x1152xbf16>
    %c0_1 = arith.constant 0 : index
    %c0_2 = arith.constant 0 : index
    %1 = vector.load %arg2[%c0_1, %c0_2] : memref<1152x128xbf16, #tpu.memory_space<vmem>>, vector<1152x128xbf16>
    %cst = arith.constant dense<0.000000e+00> : vector<128x128xf32>
    %2 = tpu.matmul %0, %1, %cst {dimension_numbers = #tpu.dot_dimension_numbers<[1], [0], [0], [1], [0, 0, 1, 1], [], []>} : vector<128x1152xbf16>, vector<1152x128xbf16>, vector<128x128xf32> -> vector<128x128xf32>
    %3 = arith.truncf %2 : vector<128x128xf32> to vector<128x128xbf16>
    %c0_3 = arith.constant 0 : index
    %c0_4 = arith.constant 0 : index
    %4 = vector.load %arg3[%c0_3, %c0_4] : memref<128x128xbf16, #tpu.memory_space<vmem>>, vector<128x128xbf16>
    tpu.vector_store %arg3[%c0_3, %c0_4], %3 {strides = array<i32>} : memref<128x128xbf16, #tpu.memory_space<vmem>>, vector<128x128xbf16>,
    %cst_5 = arith.constant dense<0.000000e+00> : vector<128xf32>
    %5 = vector.multi_reduction <add>, %2, %cst_5 [0] : vector<128x128xf32> to vector<128xf32>
    %6 = vector.shape_cast %5 : vector<128xf32> to vector<1x128xf32>
    %c0_6 = arith.constant 0 : index
    %c0_7 = arith.constant 0 : index
    %7 = vector.load %arg4[%c0_6, %c0_7] : memref<1x128xf32, #tpu.memory_space<vmem>>, vector<1x128xf32>
    tpu.vector_store %arg4[%c0_6, %c0_7], %6 {strides = array<i32>} : memref<1x128xf32, #tpu.memory_space<vmem>>, vector<1x128xf32>,
    %8 = arith.mulf %2, %2 : vector<128x128xf32>
    %cst_8 = arith.constant dense<0.000000e+00> : vector<128xf32>
    %9 = vector.multi_reduction <add>, %8, %cst_8 [0] : vector<128x128xf32> to vector<128xf32>
    %10 = vector.shape_cast %9 : vector<128xf32> to vector<1x128xf32>
    %c0_9 = arith.constant 0 : index
    %c0_10 = arith.constant 0 : index
    %11 = vector.load %arg5[%c0_9, %c0_10] : memref<1x128xf32, #tpu.memory_space<vmem>>, vector<1x128xf32>
    tpu.vector_store %arg5[%c0_9, %c0_10], %10 {strides = array<i32>} : memref<1x128xf32, #tpu.memory_space<vmem>>, vector<1x128xf32>,
    return
  }
  func.func @transform_0(%arg0: i32) -> (i32, i32) {
    %c0_i32 = arith.constant 0 : i32
    %c0_i32_0 = arith.constant 0 : i32
    return %arg0, %c0_i32 : i32, i32
  }
  func.func @transform_1(%arg0: i32) -> (i32, i32) {
    %c0_i32 = arith.constant 0 : i32
    %c0_i32_0 = arith.constant 0 : i32
    %c0_i32_1 = arith.constant 0 : i32
    return %c0_i32, %c0_i32_0 : i32, i32
  }
  func.func @transform_2(%arg0: i32) -> (i32, i32) {
    %c0_i32 = arith.constant 0 : i32
    %c0_i32_0 = arith.constant 0 : i32
    return %arg0, %c0_i32 : i32, i32
  }
  func.func @transform_3(%arg0: i32) -> (i32, i32) {
    %c0_i32 = arith.constant 0 : i32
    %c0_i32_0 = arith.constant 0 : i32
    return %arg0, %c0_i32 : i32, i32
  }
  func.func @transform_4(%arg0: i32) -> (i32, i32) {
    %c0_i32 = arith.constant 0 : i32
    %c0_i32_0 = arith.constant 0 : i32
    return %arg0, %c0_i32 : i32, i32
  }
}

module attributes {stable_mosaic.version = 11 : i64} {
  func.func @_affine_relu_mm_kernel(%arg0: i32, %arg1: memref<128x128xbf16, #tpu.memory_space<vmem>>, %arg2: memref<1x128xf32, #tpu.memory_space<vmem>>, %arg3: memref<1x128xf32, #tpu.memory_space<vmem>>, %arg4: memref<128x128xbf16, #tpu.memory_space<vmem>>, %arg5: memref<128x128xbf16, #tpu.memory_space<vmem>>) attributes {dimension_semantics = [#tpu.dimension_semantics<parallel>], iteration_bounds = array<i64: 1>, scalar_prefetch = 0 : i64, scratch_operands = 0 : i64, tpu.core_type = #tpu.core_type<tc>, window_params = [{transform_indices = @transform_0, window_bounds = array<i64: 128, 128>}, {pipeline_mode = #tpu.pipeline_mode<synchronous>, transform_indices = @transform_1, window_bounds = array<i64: 1, 128>}, {pipeline_mode = #tpu.pipeline_mode<synchronous>, transform_indices = @transform_2, window_bounds = array<i64: 1, 128>}, {pipeline_mode = #tpu.pipeline_mode<synchronous>, transform_indices = @transform_3, window_bounds = array<i64: 128, 128>}, {transform_indices = @transform_4, window_bounds = array<i64: 128, 128>}]} {
    %c0 = arith.constant 0 : index
    %c0_0 = arith.constant 0 : index
    %0 = vector.load %arg1[%c0, %c0_0] : memref<128x128xbf16, #tpu.memory_space<vmem>>, vector<128x128xbf16>
    %1 = arith.extf %0 : vector<128x128xbf16> to vector<128x128xf32>
    %c0_1 = arith.constant 0 : index
    %c0_2 = arith.constant 0 : index
    %2 = vector.load %arg2[%c0_1, %c0_2] : memref<1x128xf32, #tpu.memory_space<vmem>>, vector<1x128xf32>
    %3 = vector.broadcast %2 : vector<1x128xf32> to vector<128x128xf32>
    %4 = arith.mulf %1, %3 : vector<128x128xf32>
    %c0_3 = arith.constant 0 : index
    %c0_4 = arith.constant 0 : index
    %5 = vector.load %arg3[%c0_3, %c0_4] : memref<1x128xf32, #tpu.memory_space<vmem>>, vector<1x128xf32>
    %6 = vector.broadcast %5 : vector<1x128xf32> to vector<128x128xf32>
    %7 = arith.addf %4, %6 : vector<128x128xf32>
    %cst = arith.constant 0.000000e+00 : f32
    %8 = vector.broadcast %cst : f32 to vector<128x128xf32>
    %9 = arith.maximumf %7, %8 : vector<128x128xf32>
    %10 = arith.truncf %9 : vector<128x128xf32> to vector<128x128xbf16>
    %c0_5 = arith.constant 0 : index
    %c0_6 = arith.constant 0 : index
    %11 = vector.load %arg4[%c0_5, %c0_6] : memref<128x128xbf16, #tpu.memory_space<vmem>>, vector<128x128xbf16>
    %cst_7 = arith.constant dense<0.000000e+00> : vector<128x128xf32>
    %12 = tpu.matmul %10, %11, %cst_7 {dimension_numbers = #tpu.dot_dimension_numbers<[1], [0], [0], [1], [0, 0, 1, 1], [], []>} : vector<128x128xbf16>, vector<128x128xbf16>, vector<128x128xf32> -> vector<128x128xf32>
    %13 = arith.truncf %12 : vector<128x128xf32> to vector<128x128xbf16>
    %c0_8 = arith.constant 0 : index
    %c0_9 = arith.constant 0 : index
    %14 = vector.load %arg5[%c0_8, %c0_9] : memref<128x128xbf16, #tpu.memory_space<vmem>>, vector<128x128xbf16>
    tpu.vector_store %arg5[%c0_8, %c0_9], %13 {strides = array<i32>} : memref<128x128xbf16, #tpu.memory_space<vmem>>, vector<128x128xbf16>,
    return
  }
  func.func @transform_0(%arg0: i32) -> (i32, i32) {
    %c0_i32 = arith.constant 0 : i32
    %c0_i32_0 = arith.constant 0 : i32
    return %arg0, %c0_i32 : i32, i32
  }
  func.func @transform_1(%arg0: i32) -> (i32, i32) {
    %c0_i32 = arith.constant 0 : i32
    %c0_i32_0 = arith.constant 0 : i32
    %c0_i32_1 = arith.constant 0 : i32
    return %c0_i32, %c0_i32_0 : i32, i32
  }
  func.func @transform_2(%arg0: i32) -> (i32, i32) {
    %c0_i32 = arith.constant 0 : i32
    %c0_i32_0 = arith.constant 0 : i32
    %c0_i32_1 = arith.constant 0 : i32
    return %c0_i32, %c0_i32_0 : i32, i32
  }
  func.func @transform_3(%arg0: i32) -> (i32, i32) {
    %c0_i32 = arith.constant 0 : i32
    %c0_i32_0 = arith.constant 0 : i32
    %c0_i32_1 = arith.constant 0 : i32
    return %c0_i32, %c0_i32_0 : i32, i32
  }
  func.func @transform_4(%arg0: i32) -> (i32, i32) {
    %c0_i32 = arith.constant 0 : i32
    %c0_i32_0 = arith.constant 0 : i32
    return %arg0, %c0_i32 : i32, i32
  }
}

module attributes {stable_mosaic.version = 11 : i64} {
  func.func @_affine_relu_mm_add_kernel(%arg0: i32, %arg1: memref<128x128xbf16, #tpu.memory_space<vmem>>, %arg2: memref<128x128xbf16, #tpu.memory_space<vmem>>, %arg3: memref<1x128xf32, #tpu.memory_space<vmem>>, %arg4: memref<1x128xf32, #tpu.memory_space<vmem>>, %arg5: memref<128x128xbf16, #tpu.memory_space<vmem>>, %arg6: memref<128x128xf32, #tpu.memory_space<vmem>>) attributes {dimension_semantics = [#tpu.dimension_semantics<parallel>], iteration_bounds = array<i64: 1>, scalar_prefetch = 0 : i64, scratch_operands = 0 : i64, tpu.core_type = #tpu.core_type<tc>, window_params = [{transform_indices = @transform_0, window_bounds = array<i64: 128, 128>}, {transform_indices = @transform_1, window_bounds = array<i64: 128, 128>}, {pipeline_mode = #tpu.pipeline_mode<synchronous>, transform_indices = @transform_2, window_bounds = array<i64: 1, 128>}, {pipeline_mode = #tpu.pipeline_mode<synchronous>, transform_indices = @transform_3, window_bounds = array<i64: 1, 128>}, {pipeline_mode = #tpu.pipeline_mode<synchronous>, transform_indices = @transform_4, window_bounds = array<i64: 128, 128>}, {transform_indices = @transform_5, window_bounds = array<i64: 128, 128>}]} {
    %c0 = arith.constant 0 : index
    %c0_0 = arith.constant 0 : index
    %0 = vector.load %arg1[%c0, %c0_0] : memref<128x128xbf16, #tpu.memory_space<vmem>>, vector<128x128xbf16>
    %1 = arith.extf %0 : vector<128x128xbf16> to vector<128x128xf32>
    %c0_1 = arith.constant 0 : index
    %c0_2 = arith.constant 0 : index
    %2 = vector.load %arg3[%c0_1, %c0_2] : memref<1x128xf32, #tpu.memory_space<vmem>>, vector<1x128xf32>
    %3 = vector.broadcast %2 : vector<1x128xf32> to vector<128x128xf32>
    %4 = arith.mulf %1, %3 : vector<128x128xf32>
    %c0_3 = arith.constant 0 : index
    %c0_4 = arith.constant 0 : index
    %5 = vector.load %arg4[%c0_3, %c0_4] : memref<1x128xf32, #tpu.memory_space<vmem>>, vector<1x128xf32>
    %6 = vector.broadcast %5 : vector<1x128xf32> to vector<128x128xf32>
    %7 = arith.addf %4, %6 : vector<128x128xf32>
    %cst = arith.constant 0.000000e+00 : f32
    %8 = vector.broadcast %cst : f32 to vector<128x128xf32>
    %9 = arith.maximumf %7, %8 : vector<128x128xf32>
    %10 = arith.truncf %9 : vector<128x128xf32> to vector<128x128xbf16>
    %c0_5 = arith.constant 0 : index
    %c0_6 = arith.constant 0 : index
    %11 = vector.load %arg5[%c0_5, %c0_6] : memref<128x128xbf16, #tpu.memory_space<vmem>>, vector<128x128xbf16>
    %cst_7 = arith.constant dense<0.000000e+00> : vector<128x128xf32>
    %12 = tpu.matmul %10, %11, %cst_7 {dimension_numbers = #tpu.dot_dimension_numbers<[1], [0], [0], [1], [0, 0, 1, 1], [], []>} : vector<128x128xbf16>, vector<128x128xbf16>, vector<128x128xf32> -> vector<128x128xf32>
    %c0_8 = arith.constant 0 : index
    %c0_9 = arith.constant 0 : index
    %13 = vector.load %arg2[%c0_8, %c0_9] : memref<128x128xbf16, #tpu.memory_space<vmem>>, vector<128x128xbf16>
    %14 = arith.extf %13 : vector<128x128xbf16> to vector<128x128xf32>
    %15 = arith.addf %12, %14 : vector<128x128xf32>
    %c0_10 = arith.constant 0 : index
    %c0_11 = arith.constant 0 : index
    %16 = vector.load %arg6[%c0_10, %c0_11] : memref<128x128xf32, #tpu.memory_space<vmem>>, vector<128x128xf32>
    tpu.vector_store %arg6[%c0_10, %c0_11], %15 {strides = array<i32>} : memref<128x128xf32, #tpu.memory_space<vmem>>, vector<128x128xf32>,
    return
  }
  func.func @transform_0(%arg0: i32) -> (i32, i32) {
    %c0_i32 = arith.constant 0 : i32
    %c0_i32_0 = arith.constant 0 : i32
    return %arg0, %c0_i32 : i32, i32
  }
  func.func @transform_1(%arg0: i32) -> (i32, i32) {
    %c0_i32 = arith.constant 0 : i32
    %c0_i32_0 = arith.constant 0 : i32
    return %arg0, %c0_i32 : i32, i32
  }
  func.func @transform_2(%arg0: i32) -> (i32, i32) {
    %c0_i32 = arith.constant 0 : i32
    %c0_i32_0 = arith.constant 0 : i32
    %c0_i32_1 = arith.constant 0 : i32
    return %c0_i32, %c0_i32_0 : i32, i32
  }
  func.func @transform_3(%arg0: i32) -> (i32, i32) {
    %c0_i32 = arith.constant 0 : i32
    %c0_i32_0 = arith.constant 0 : i32
    %c0_i32_1 = arith.constant 0 : i32
    return %c0_i32, %c0_i32_0 : i32, i32
  }
  func.func @transform_4(%arg0: i32) -> (i32, i32) {
    %c0_i32 = arith.constant 0 : i32
    %c0_i32_0 = arith.constant 0 : i32
    %c0_i32_1 = arith.constant 0 : i32
    return %c0_i32, %c0_i32_0 : i32, i32
  }
  func.func @transform_5(%arg0: i32) -> (i32, i32) {
    %c0_i32 = arith.constant 0 : i32
    %c0_i32_0 = arith.constant 0 : i32
    return %arg0, %c0_i32 : i32, i32
  }
}

</mosaic_0001>

<bundles_post_ra>
// kernel: preact_bottleneck_forward.5
= control target key start
LH: loop header
LB: loop body
LE: loop exit
PB: predicated region body
PF: predicated region fallthrough
CT: control target
= control target key end

     0   :  { %s626_s0 = inlined_call_operand.vmem [shape: bf16[512,128], index: 0, kind: input, shape index: {}]   ;;  %s627_s1 = inlined_call_operand.vmem [shape: f32[1,128], index: 1, kind: output, shape index: {0}]   ;;  %s628_s2 = inlined_call_operand.vmem [shape: f32[1,128], index: 2, kind: output, shape index: {1}]  }
   0x1   :  { %v351_v0 = vld [vmem:[%s626_s0] sm:$0xff]   ;;  %v478_v1 = vld [vmem:[%s626_s0 + $0x8] sm:$0xff]   ;;  %v479_v6 = vld [vmem:[%s626_s0 + $0x10] sm:$0xff]  }
   0x2   :  { %v352_v2 = vunpack.c.l.bf16 %v351_v0  ;;  %v353_v3 = vunpack.c.h.bf16 %v351_v0  ;;  %v356_v4 = vunpack.c.l.bf16 %v478_v1  ;;  %v357_v7 = vunpack.c.h.bf16 %v478_v1  ;;  %v480_v11 = vld [vmem:[%s626_s0 + $0x18] sm:$0xff]   ;;  %v481_v16 = vld [vmem:[%s626_s0 + $0x20] sm:$0xff]   ;;  %v482_v21 = vld [vmem:[%s626_s0 + $0x28] sm:$0xff]  }
   0x3   :  { %v360_v9 = vunpack.c.l.bf16 %v479_v6  ;;  %v361_v12 = vunpack.c.h.bf16 %v479_v6  ;;  %v364_v14 = vunpack.c.l.bf16 %v480_v11  ;;  %v365_v17 = vunpack.c.h.bf16 %v480_v11  ;;  %v483_v29 = vld [vmem:[%s626_s0 + $0x30] sm:$0xff]   ;;  %v484_v38 = vld [vmem:[%s626_s0 + $0x38] sm:$0xff]   ;;  %v485_v47 = vld [vmem:[%s626_s0 + $0x40] sm:$0xff]  }
   0x4   :  { %v138_v5 = vadd.f32 %v353_v3, %v352_v2  ;;  %v368_v19 = vunpack.c.l.bf16 %v481_v16  ;;  %v369_v22 = vunpack.c.h.bf16 %v481_v16  ;;  %v208_v24 = vmul.f32 %v352_v2, %v352_v2  ;;  %v486_v56 = vld [vmem:[%s626_s0 + $0x48] sm:$0xff]   ;;  %v487_v1 = vld [vmem:[%s626_s0 + $0x50] sm:$0xff]  }
   0x5   :  { %v209_v25 = vmul.f32 %v353_v3, %v353_v3  ;;  %v372_v26 = vunpack.c.l.bf16 %v482_v21  ;;  %v210_v28 = vmul.f32 %v356_v4, %v356_v4  ;;  %v373_v30 = vunpack.c.h.bf16 %v482_v21 }
   0x6   :  { %v139_v8 = vadd.f32 %v356_v4, %v138_v5  ;;  %v211_v32 = vmul.f32 %v357_v7, %v357_v7  ;;  %v376_v34 = vunpack.c.l.bf16 %v483_v29  ;;  %v212_v36 = vmul.f32 %v360_v9, %v360_v9 }
   0x7   :  { %v272_v33 = vadd.f32 %v209_v25, %v208_v24  ;;  %v377_v39 = vunpack.c.h.bf16 %v483_v29  ;;  %v213_v41 = vmul.f32 %v361_v12, %v361_v12  ;;  %v380_v43 = vunpack.c.l.bf16 %v484_v38 }
   0x8   :  { %v140_v10 = vadd.f32 %v357_v7, %v139_v8  ;;  %v214_v45 = vmul.f32 %v364_v14, %v364_v14  ;;  %v381_v48 = vunpack.c.h.bf16 %v484_v38  ;;  %v215_v50 = vmul.f32 %v365_v17, %v365_v17 }
   0x9   :  { %v273_v37 = vadd.f32 %v272_v33, %v210_v28  ;;  %v384_v52 = vunpack.c.l.bf16 %v485_v47  ;;  %v216_v54 = vmul.f32 %v368_v19, %v368_v19  ;;  %v385_v57 = vunpack.c.h.bf16 %v485_v47  ;;  %v490_v28 = vld [vmem:[%s626_s0 + $0x68] sm:$0xff]  }
   0xa   :  { %v141_v13 = vadd.f32 %v360_v9, %v140_v10  ;;  %v217_v59 = vmul.f32 %v369_v22, %v369_v22  ;;  %v388_v61 = vunpack.c.l.bf16 %v486_v56  ;;  %v218_v63 = vmul.f32 %v372_v26, %v372_v26  ;;  %v488_v10 = vld [vmem:[%s626_s0 + $0x58] sm:$0xff]  }
   0xb   :  { %v274_v42 = vadd.f32 %v273_v37, %v211_v32  ;;  %v389_v2 = vunpack.c.h.bf16 %v486_v56  ;;  %v219_v4 = vmul.f32 %v373_v30, %v373_v30  ;;  %v392_v6 = vunpack.c.l.bf16 %v487_v1  ;;  %v491_v37 = vld [vmem:[%s626_s0 + $0x70] sm:$0xff]  }
   0xc   :  { %v142_v15 = vadd.f32 %v361_v12, %v141_v13  ;;  %v220_v8 = vmul.f32 %v376_v34, %v376_v34  ;;  %v393_v11 = vunpack.c.h.bf16 %v487_v1  ;;  %v221_v13 = vmul.f32 %v377_v39, %v377_v39 }
   0xd   :  { %v275_v46 = vadd.f32 %v274_v42, %v212_v36  ;;  %v404_v33 = vunpack.c.l.bf16 %v490_v28  ;;  %v405_v38 = vunpack.c.h.bf16 %v490_v28  ;;  %v408_v42 = vunpack.c.l.bf16 %v491_v37 }
   0xe   :  { %v143_v18 = vadd.f32 %v364_v14, %v142_v15  ;;  %v396_v15 = vunpack.c.l.bf16 %v488_v10  ;;  %v409_v47 = vunpack.c.h.bf16 %v491_v37 }
   0xf   :  { %v276_v51 = vadd.f32 %v275_v46, %v213_v41  ;;  %v492_v46 = vld [vmem:[%s626_s0 + $0x78] sm:$0xff]  }
  0x10   :  { %v144_v20 = vadd.f32 %v365_v17, %v143_v18  ;;  %v222_v17 = vmul.f32 %v380_v43, %v380_v43  ;;  %v413_v56 = vunpack.c.h.bf16 %v492_v46 }
  0x11   :  { %v277_v55 = vadd.f32 %v276_v51, %v214_v45  ;;  %v412_v51 = vunpack.c.l.bf16 %v492_v46 }
  0x12   :  { %v145_v23 = vadd.f32 %v368_v19, %v144_v20  ;;  %v489_v19 = vld [vmem:[%s626_s0 + $0x60] sm:$0xff]   ;;  %v397_v20 = vunpack.c.h.bf16 %v488_v10 }
  0x13   :  { %v278_v60 = vadd.f32 %v277_v55, %v215_v50  ;;  %v400_v24 = vunpack.c.l.bf16 %v489_v19  ;;  %v401_v29 = vunpack.c.h.bf16 %v489_v19  ;;  %v493_v55 = vld [vmem:[%s626_s0 + $0x80] sm:$0xff]  }
  0x14   :  { %v146_v27 = vadd.f32 %v369_v22, %v145_v23  ;;  %v223_v22 = vmul.f32 %v381_v48, %v381_v48  ;;  %v417_v1 = vunpack.c.h.bf16 %v493_v55 }
  0x15   :  { %v279_v0 = vadd.f32 %v278_v60, %v216_v54  ;;  %v416_v60 = vunpack.c.l.bf16 %v493_v55 }
  0x16   :  { %v147_v31 = vadd.f32 %v372_v26, %v146_v27  ;;  %v224_v26 = vmul.f32 %v384_v52, %v384_v52 }
  0x17   :  { %v280_v5 = vadd.f32 %v279_v0, %v217_v59  ;;  %v494_v0 = vld [vmem:[%s626_s0 + $0x88] sm:$0xff]  }
  0x18   :  { %v148_v35 = vadd.f32 %v373_v30, %v147_v31  ;;  %v225_v31 = vmul.f32 %v385_v57, %v385_v57  ;;  %v421_v10 = vunpack.c.h.bf16 %v494_v0 }
  0x19   :  { %v281_v9 = vadd.f32 %v280_v5, %v218_v63  ;;  %v420_v5 = vunpack.c.l.bf16 %v494_v0 }
  0x1a   :  { %v149_v40 = vadd.f32 %v376_v34, %v148_v35  ;;  %v226_v35 = vmul.f32 %v388_v61, %v388_v61 }
  0x1b   :  { %v282_v14 = vadd.f32 %v281_v9, %v219_v4  ;;  %v495_v9 = vld [vmem:[%s626_s0 + $0x90] sm:$0xff]  }
  0x1c   :  { %v150_v44 = vadd.f32 %v377_v39, %v149_v40  ;;  %v227_v40 = vmul.f32 %v389_v2, %v389_v2  ;;  %v425_v19 = vunpack.c.h.bf16 %v495_v9 }
  0x1d   :  { %v283_v18 = vadd.f32 %v282_v14, %v220_v8  ;;  %v424_v14 = vunpack.c.l.bf16 %v495_v9 }
  0x1e   :  { %v151_v49 = vadd.f32 %v380_v43, %v150_v44  ;;  %v228_v44 = vmul.f32 %v392_v6, %v392_v6 }
  0x1f   :  { %v284_v23 = vadd.f32 %v283_v18, %v221_v13  ;;  %v496_v18 = vld [vmem:[%s626_s0 + $0x98] sm:$0xff]  }
  0x20   :  { %v152_v53 = vadd.f32 %v381_v48, %v151_v49  ;;  %v229_v49 = vmul.f32 %v393_v11, %v393_v11  ;;  %v429_v28 = vunpack.c.h.bf16 %v496_v18 }
  0x21   :  { %v285_v27 = vadd.f32 %v284_v23, %v222_v17  ;;  %v428_v23 = vunpack.c.l.bf16 %v496_v18 }
  0x22   :  { %v153_v58 = vadd.f32 %v384_v52, %v152_v53  ;;  %v230_v53 = vmul.f32 %v396_v15, %v396_v15 }
  0x23   :  { %v286_v32 = vadd.f32 %v285_v27, %v223_v22  ;;  %v497_v27 = vld [vmem:[%s626_s0 + $0xa0] sm:$0xff]  }
  0x24   :  { %v154_v62 = vadd.f32 %v385_v57, %v153_v58  ;;  %v231_v58 = vmul.f32 %v397_v20, %v397_v20  ;;  %v433_v37 = vunpack.c.h.bf16 %v497_v27 }
  0x25   :  { %v287_v36 = vadd.f32 %v286_v32, %v224_v26  ;;  %v432_v32 = vunpack.c.l.bf16 %v497_v27 }
  0x26   :  { %v155_v3 = vadd.f32 %v388_v61, %v154_v62  ;;  %v232_v62 = vmul.f32 %v400_v24, %v400_v24 }
  0x27   :  { %v288_v41 = vadd.f32 %v287_v36, %v225_v31  ;;  %v498_v36 = vld [vmem:[%s626_s0 + $0xa8] sm:$0xff]  }
  0x28   :  { %v156_v7 = vadd.f32 %v389_v2, %v155_v3  ;;  %v233_v3 = vmul.f32 %v401_v29, %v401_v29  ;;  %v437_v46 = vunpack.c.h.bf16 %v498_v36 }
  0x29   :  { %v289_v45 = vadd.f32 %v288_v41, %v226_v35  ;;  %v436_v41 = vunpack.c.l.bf16 %v498_v36 }
  0x2a   :  { %v157_v12 = vadd.f32 %v392_v6, %v156_v7  ;;  %v234_v7 = vmul.f32 %v404_v33, %v404_v33 }
  0x2b   :  { %v290_v50 = vadd.f32 %v289_v45, %v227_v40  ;;  %v499_v45 = vld [vmem:[%s626_s0 + $0xb0] sm:$0xff]  }
  0x2c   :  { %v158_v16 = vadd.f32 %v393_v11, %v157_v12  ;;  %v235_v12 = vmul.f32 %v405_v38, %v405_v38  ;;  %v441_v55 = vunpack.c.h.bf16 %v499_v45 }
  0x2d   :  { %v291_v54 = vadd.f32 %v290_v50, %v228_v44  ;;  %v440_v50 = vunpack.c.l.bf16 %v499_v45 }
  0x2e   :  { %v159_v21 = vadd.f32 %v396_v15, %v158_v16  ;;  %v236_v16 = vmul.f32 %v408_v42, %v408_v42 }
  0x2f   :  { %v292_v59 = vadd.f32 %v291_v54, %v229_v49  ;;  %v500_v54 = vld [vmem:[%s626_s0 + $0xb8] sm:$0xff]  }
  0x30   :  { %v160_v25 = vadd.f32 %v397_v20, %v159_v21  ;;  %v237_v21 = vmul.f32 %v409_v47, %v409_v47  ;;  %v445_v0 = vunpack.c.h.bf16 %v500_v54 }
  0x31   :  { %v293_v63 = vadd.f32 %v292_v59, %v230_v53  ;;  %v444_v59 = vunpack.c.l.bf16 %v500_v54 }
  0x32   :  { %v161_v30 = vadd.f32 %v400_v24, %v160_v25  ;;  %v238_v25 = vmul.f32 %v412_v51, %v412_v51 }
  0x33   :  { %v294_v4 = vadd.f32 %v293_v63, %v231_v58  ;;  %v501_v63 = vld [vmem:[%s626_s0 + $0xc0] sm:$0xff]  }
  0x34   :  { %v162_v34 = vadd.f32 %v401_v29, %v161_v30  ;;  %v239_v30 = vmul.f32 %v413_v56, %v413_v56  ;;  %v449_v9 = vunpack.c.h.bf16 %v501_v63 }
  0x35   :  { %v295_v8 = vadd.f32 %v294_v4, %v232_v62  ;;  %v448_v4 = vunpack.c.l.bf16 %v501_v63 }
  0x36   :  { %v163_v39 = vadd.f32 %v404_v33, %v162_v34  ;;  %v240_v34 = vmul.f32 %v416_v60, %v416_v60 }
  0x37   :  { %v296_v13 = vadd.f32 %v295_v8, %v233_v3  ;;  %v502_v8 = vld [vmem:[%s626_s0 + $0xc8] sm:$0xff]  }
  0x38   :  { %v164_v43 = vadd.f32 %v405_v38, %v163_v39  ;;  %v241_v39 = vmul.f32 %v417_v1, %v417_v1  ;;  %v453_v18 = vunpack.c.h.bf16 %v502_v8 }
  0x39   :  { %v297_v17 = vadd.f32 %v296_v13, %v234_v7  ;;  %v452_v13 = vunpack.c.l.bf16 %v502_v8 }
  0x3a   :  { %v165_v48 = vadd.f32 %v408_v42, %v164_v43  ;;  %v242_v43 = vmul.f32 %v420_v5, %v420_v5 }
  0x3b   :  { %v298_v22 = vadd.f32 %v297_v17, %v235_v12  ;;  %v503_v17 = vld [vmem:[%s626_s0 + $0xd0] sm:$0xff]  }
  0x3c   :  { %v166_v52 = vadd.f32 %v409_v47, %v165_v48  ;;  %v243_v48 = vmul.f32 %v421_v10, %v421_v10  ;;  %v457_v27 = vunpack.c.h.bf16 %v503_v17 }
  0x3d   :  { %v299_v26 = vadd.f32 %v298_v22, %v236_v16  ;;  %v456_v22 = vunpack.c.l.bf16 %v503_v17 }
  0x3e   :  { %v167_v57 = vadd.f32 %v412_v51, %v166_v52  ;;  %v244_v52 = vmul.f32 %v424_v14, %v424_v14 }
  0x3f   :  { %v300_v31 = vadd.f32 %v299_v26, %v237_v21  ;;  %v504_v26 = vld [vmem:[%s626_s0 + $0xd8] sm:$0xff]  }
  0x40   :  { %v168_v61 = vadd.f32 %v413_v56, %v167_v57  ;;  %v245_v57 = vmul.f32 %v425_v19, %v425_v19  ;;  %v461_v36 = vunpack.c.h.bf16 %v504_v26 }
  0x41   :  { %v301_v35 = vadd.f32 %v300_v31, %v238_v25  ;;  %v460_v31 = vunpack.c.l.bf16 %v504_v26 }
  0x42   :  { %v169_v2 = vadd.f32 %v416_v60, %v168_v61  ;;  %v246_v61 = vmul.f32 %v428_v23, %v428_v23 }
  0x43   :  { %v302_v40 = vadd.f32 %v301_v35, %v239_v30  ;;  %v505_v35 = vld [vmem:[%s626_s0 + $0xe0] sm:$0xff]  }
  0x44   :  { %v170_v6 = vadd.f32 %v417_v1, %v169_v2  ;;  %v247_v2 = vmul.f32 %v429_v28, %v429_v28  ;;  %v465_v45 = vunpack.c.h.bf16 %v505_v35 }
  0x45   :  { %v303_v44 = vadd.f32 %v302_v40, %v240_v34  ;;  %v464_v40 = vunpack.c.l.bf16 %v505_v35 }
  0x46   :  { %v171_v11 = vadd.f32 %v420_v5, %v170_v6  ;;  %v248_v6 = vmul.f32 %v432_v32, %v432_v32 }
  0x47   :  { %v304_v49 = vadd.f32 %v303_v44, %v241_v39  ;;  %v506_v44 = vld [vmem:[%s626_s0 + $0xe8] sm:$0xff]  }
  0x48   :  { %v172_v15 = vadd.f32 %v421_v10, %v171_v11  ;;  %v249_v11 = vmul.f32 %v433_v37, %v433_v37  ;;  %v469_v54 = vunpack.c.h.bf16 %v506_v44 }
  0x49   :  { %v305_v53 = vadd.f32 %v304_v49, %v242_v43  ;;  %v468_v49 = vunpack.c.l.bf16 %v506_v44 }
  0x4a   :  { %v173_v20 = vadd.f32 %v424_v14, %v172_v15  ;;  %v250_v15 = vmul.f32 %v436_v41, %v436_v41 }
  0x4b   :  { %v306_v58 = vadd.f32 %v305_v53, %v243_v48  ;;  %v507_v53 = vld [vmem:[%s626_s0 + $0xf0] sm:$0xff]  }
  0x4c   :  { %v174_v24 = vadd.f32 %v425_v19, %v173_v20  ;;  %v251_v20 = vmul.f32 %v437_v46, %v437_v46  ;;  %v473_v63 = vunpack.c.h.bf16 %v507_v53 }
  0x4d   :  { %v307_v62 = vadd.f32 %v306_v58, %v244_v52  ;;  %v472_v58 = vunpack.c.l.bf16 %v507_v53 }
  0x4e   :  { %v175_v29 = vadd.f32 %v428_v23, %v174_v24  ;;  %v252_v24 = vmul.f32 %v440_v50, %v440_v50 }
  0x4f   :  { %v308_v3 = vadd.f32 %v307_v62, %v245_v57  ;;  %v508_v62 = vld [vmem:[%s626_s0 + $0xf8] sm:$0xff]  }
  0x50   :  { %v176_v33 = vadd.f32 %v429_v28, %v175_v29  ;;  %v253_v29 = vmul.f32 %v441_v55, %v441_v55 }
  0x51   :  { %v309_v7 = vadd.f32 %v308_v3, %v246_v61  ;;  %v476_v3 = vunpack.c.l.bf16 %v508_v62 }
  0x52   :  { %v177_v38 = vadd.f32 %v432_v32, %v176_v33  ;;  %v254_v33 = vmul.f32 %v444_v59, %v444_v59 }
  0x53   :  { %v310_v12 = vadd.f32 %v309_v7, %v247_v2  ;;  %v477_v7 = vunpack.c.h.bf16 %v508_v62 }
  0x54   :  { %v178_v42 = vadd.f32 %v433_v37, %v177_v38  ;;  %v255_v38 = vmul.f32 %v445_v0, %v445_v0 }
  0x55   :  { %v311_v16 = vadd.f32 %v310_v12, %v248_v6  ;;  %v264_v12 = vmul.f32 %v464_v40, %v464_v40 }
  0x56   :  { %v179_v47 = vadd.f32 %v436_v41, %v178_v42  ;;  %v256_v42 = vmul.f32 %v448_v4, %v448_v4 }
  0x57   :  { %v312_v21 = vadd.f32 %v311_v16, %v249_v11 }
  0x58   :  { %v180_v51 = vadd.f32 %v437_v46, %v179_v47  ;;  %v257_v47 = vmul.f32 %v449_v9, %v449_v9 }
  0x59   :  { %v313_v25 = vadd.f32 %v312_v21, %v250_v15  ;;  %v265_v15 = vmul.f32 %v465_v45, %v465_v45  ;;  %v267_v21 = vmul.f32 %v469_v54, %v469_v54 }
  0x5a   :  { %v181_v56 = vadd.f32 %v440_v50, %v180_v51  ;;  %v258_v51 = vmul.f32 %v452_v13, %v452_v13 }
  0x5b   :  { %v314_v30 = vadd.f32 %v313_v25, %v251_v20 }
  0x5c   :  { %v182_v60 = vadd.f32 %v441_v55, %v181_v56  ;;  %v259_v56 = vmul.f32 %v453_v18, %v453_v18 }
  0x5d   :  { %v315_v34 = vadd.f32 %v314_v30, %v252_v24  ;;  %v268_v24 = vmul.f32 %v472_v58, %v472_v58  ;;  %v270_v30 = vmul.f32 %v476_v3, %v476_v3 }
  0x5e   :  { %v183_v1 = vadd.f32 %v444_v59, %v182_v60  ;;  %v260_v60 = vmul.f32 %v456_v22, %v456_v22 }
  0x5f   :  { %v316_v39 = vadd.f32 %v315_v34, %v253_v29 }
  0x60   :  { %v184_v5 = vadd.f32 %v445_v0, %v183_v1  ;;  %v261_v1 = vmul.f32 %v457_v27, %v457_v27 }
  0x61   :  { %v317_v43 = vadd.f32 %v316_v39, %v254_v33 }
  0x62   :  { %v185_v10 = vadd.f32 %v448_v4, %v184_v5  ;;  %v262_v5 = vmul.f32 %v460_v31, %v460_v31 }
  0x63   :  { %v318_v48 = vadd.f32 %v317_v43, %v255_v38 }
  0x64   :  { %v186_v14 = vadd.f32 %v449_v9, %v185_v10  ;;  %v263_v9 = vmul.f32 %v461_v36, %v461_v36 }
  0x65   :  { %v319_v52 = vadd.f32 %v318_v48, %v256_v42 }
  0x66   :  { %v187_v19 = vadd.f32 %v452_v13, %v186_v14 }
  0x67   :  { %v320_v57 = vadd.f32 %v319_v52, %v257_v47 }
  0x68   :  { %v188_v23 = vadd.f32 %v453_v18, %v187_v19  ;;  %v266_v18 = vmul.f32 %v468_v49, %v468_v49 }
  0x69   :  { %v321_v61 = vadd.f32 %v320_v57, %v258_v51 }
  0x6a   :  { %v189_v28 = vadd.f32 %v456_v22, %v188_v23 }
  0x6b   :  { %v322_v2 = vadd.f32 %v321_v61, %v259_v56 }
  0x6c   :  { %v190_v32 = vadd.f32 %v457_v27, %v189_v28  ;;  %v269_v27 = vmul.f32 %v473_v63, %v473_v63 }
  0x6d   :  { %v323_v6 = vadd.f32 %v322_v2, %v260_v60 }
  0x6e   :  { %v191_v37 = vadd.f32 %v460_v31, %v190_v32  ;;  %v271_v32 = vmul.f32 %v477_v7, %v477_v7 }
  0x6f   :  { %v324_v10 = vadd.f32 %v323_v6, %v261_v1 }
  0x70   :  { %v192_v41 = vadd.f32 %v461_v36, %v191_v37 }
  0x71   :  { %v325_v13 = vadd.f32 %v324_v10, %v262_v5 }
  0x72   :  { %v193_v46 = vadd.f32 %v464_v40, %v192_v41 }
  0x73   :  { %v326_v16 = vadd.f32 %v325_v13, %v263_v9 }
  0x74   :  { %v194_v50 = vadd.f32 %v465_v45, %v193_v46 }
  0x75   :  { %v327_v19 = vadd.f32 %v326_v16, %v264_v12 }
  0x76   :  { %v195_v55 = vadd.f32 %v468_v49, %v194_v50 }
  0x77   :  { %v328_v22 = vadd.f32 %v327_v19, %v265_v15 }
  0x78   :  { %v196_v59 = vadd.f32 %v469_v54, %v195_v55 }
  0x79   :  { %v329_v25 = vadd.f32 %v328_v22, %v266_v18 }
  0x7a   :  { %v197_v0 = vadd.f32 %v472_v58, %v196_v59 }
  0x7b   :  { %v330_v28 = vadd.f32 %v329_v25, %v267_v21 }
  0x7c   :  { %v198_v4 = vadd.f32 %v473_v63, %v197_v0 }
  0x7d   :  { %v331_v31 = vadd.f32 %v330_v28, %v268_v24 }
  0x7e   :  { %v199_v8 = vadd.f32 %v476_v3, %v198_v4 }
  0x7f   :  { %v332_v33 = vadd.f32 %v331_v31, %v269_v27 }
  0x80   :  { %v200_v11 = vadd.f32 %v477_v7, %v199_v8 }
  0x81   :  { %v333_v34 = vadd.f32 %v332_v33, %v270_v30 }
  0x82   :  { %v201_v14 = vrot.slane %v200_v11, 4 }
  0x83   :  { %v334_v35 = vadd.f32 %v333_v34, %v271_v32 }
  0x84   :  { %v202_v17 = vadd.f32 %v201_v14, %v200_v11 }
  0x85   :  { %v335_v36 = vrot.slane %v334_v35, 4 }
  0x86   :  { %v203_v20 = vrot.slane %v202_v17, 2 }
  0x87   :  { %v336_v37 = vadd.f32 %v335_v36, %v334_v35 }
  0x88   :  { %v204_v23 = vadd.f32 %v203_v20, %v202_v17 }
  0x89   :  { %v337_v38 = vrot.slane %v336_v37, 2 }
  0x8a   :  { %v205_v26 = vrot.slane %v204_v23, 1 }
  0x8b   :  { %v338_v39 = vadd.f32 %v337_v38, %v336_v37 }
  0x8c   :  { %v206_v29 = vadd.f32 %v205_v26, %v204_v23 }
  0x8d   :  { %v339_v40 = vrot.slane %v338_v39, 1 }
  0x8e   :  { %207 = vst [vmem:[%s627_s1] sm:$0x1] %v206_v29 }
  0x8f   :  { %v340_v41 = vadd.f32 %v339_v40, %v338_v39 }
  0x91   :  { %341 = vst [vmem:[%s628_s2] sm:$0x1] %v340_v41 }

// kernel: preact_bottleneck_forward.6
= control target key start
LH: loop header
LB: loop body
LE: loop exit
PB: predicated region body
PF: predicated region fallthrough
CT: control target
= control target key end

     0   :  { %s2916_s3 = inlined_call_operand.vmem [shape: bf16[128,128], index: 3, kind: input, shape index: {}]   ;;  %s2917_s0 = inlined_call_operand.vmem [shape: bf16[512,128], index: 0, kind: input, shape index: {}]   ;;  %s2918_s1 = inlined_call_operand.vmem [shape: f32[1,128], index: 1, kind: input, shape index: {}]   ;;  %s2919_s2 = inlined_call_operand.vmem [shape: f32[1,128], index: 2, kind: input, shape index: {}]   ;;  %s2920_s4 = inlined_call_operand.vmem [shape: bf16[512,128], index: 4, kind: output, shape index: {0}]   ;;  %s2921_s5 = inlined_call_operand.vmem [shape: f32[1,128], index: 5, kind: output, shape index: {1}]   ;;  %s2922_s6 = inlined_call_operand.vmem [shape: f32[1,128], index: 6, kind: output, shape index: {2}]  }
   0x1   :  { %v2287_v0 = vld [vmem:[%s2916_s3 + $0x38] sm:$0xff]   ;;  %v2288_v1 = vld [vmem:[%s2916_s3 + $0x30] sm:$0xff]   ;;  %v2289_v2 = vld [vmem:[%s2916_s3 + $0x28] sm:$0xff]  }
   0x2   :  { %2191 = vmatprep.subr.bf16.mxu0 %v2287_v0  ;;  %2271 = vmatprep.subr.bf16.mxu1 %v2287_v0  ;;  %v2290_v3 = vld [vmem:[%s2916_s3 + $0x20] sm:$0xff]   ;;  %v2089_v8 = vld [vmem:[%s2917_s0 + $0x8] sm:$0xff]   ;;  %v2090_v9 = vld [vmem:[%s2917_s0 + $0x10] sm:$0xff]  }
   0x3   :  { %2192 = vmatpush3.bf16.msra.mxu0 %v2287_v0  ;;  %2279 = vmatpush3.bf16.msra.mxu1 %v2287_v0  ;;  %v1802_v4 = vld [vmem:[%s2917_s0] sm:$0xff]   ;;  %v2291_v13 = vld [vmem:[%s2916_s3 + $0x18] sm:$0xff]   ;;  %v1807_v14 = vunpack.c.l.bf16 %v2089_v8  ;;  %v1808_v15 = vunpack.c.h.bf16 %v2089_v8  ;;  %v1811_v16 = vunpack.c.l.bf16 %v2090_v9  ;;  %v1812_v19 = vunpack.c.h.bf16 %v2090_v9  ;;  %v2292_v22 = vld [vmem:[%s2916_s3 + $0x10] sm:$0xff]  }
   0x4   :  { %2193 = vmatprep.subr.bf16.mxu0 %v2288_v1  ;;  %2272 = vmatprep.subr.bf16.mxu1 %v2288_v1  ;;  %v2348_v5 = vld [vmem:[%s2918_s1] ss:$0 sm:$0xff]  ;;  %v1803_v6 = vunpack.c.l.bf16 %v1802_v4  ;;  %v1804_v7 = vunpack.c.h.bf16 %v1802_v4  ;;  %v2091_v26 = vld [vmem:[%s2917_s0 + $0x18] sm:$0xff]   ;;  %v2293_v31 = vld [vmem:[%s2916_s3 + $0x8] sm:$0xff]  }
   0x5   :  { %v2359_v10 = vld [vmem:[%s2919_s2] ss:$0 sm:$0xff]  ;;  %v158_v23 = vmul.f32 %v1807_v14, %v2348_v5  ;;  %v159_v24 = vmul.f32 %v1808_v15, %v2348_v5  ;;  %v160_v25 = vmul.f32 %v1811_v16, %v2348_v5  ;;  %v161_v28 = vmul.f32 %v1812_v19, %v2348_v5  ;;  %v2093_v38 = vld [vmem:[%s2917_s0 + $0x28] sm:$0xff]   ;;  %v2094_v41 = vld [vmem:[%s2917_s0 + $0x30] sm:$0xff]  }
   0x6   :  { %v156_v11 = vmul.f32 %v1803_v6, %v2348_v5  ;;  %v157_v12 = vmul.f32 %v1804_v7, %v2348_v5  ;;  %v2092_v29 = vld [vmem:[%s2917_s0 + $0x20] sm:$0xff]   ;;  %v1815_v30 = vunpack.c.l.bf16 %v2091_v26  ;;  %v1816_v35 = vunpack.c.h.bf16 %v2091_v26  ;;  %v2095_v42 = vld [vmem:[%s2917_s0 + $0x38] sm:$0xff]   ;;  %v2097_v63 = vld [vmem:[%s2917_s0 + $0x48] sm:$0xff]  }
   0x7   :  { %2194 = vmatpush3.bf16.msra.mxu0 %v2288_v1  ;;  %2280 = vmatpush3.bf16.msra.mxu1 %v2288_v1  ;;  %v229_v32 = vadd.f32 %v2359_v10, %v158_v23  ;;  %v230_v33 = vadd.f32 %v2359_v10, %v159_v24  ;;  %v231_v34 = vadd.f32 %v2359_v10, %v160_v25  ;;  %v1819_v37 = vunpack.c.l.bf16 %v2092_v29  ;;  %v2294_v43 = vld [vmem:[%s2916_s3] sm:$0xff]   ;;  %v2098_v4 = vld [vmem:[%s2917_s0 + $0x50] sm:$0xff]   ;;  %v2099_v23 = vld [vmem:[%s2917_s0 + $0x58] sm:$0xff]  }
   0x8   :  { %2195 = vmatprep.subr.bf16.mxu0 %v2289_v2  ;;  %2273 = vmatprep.subr.bf16.mxu1 %v2289_v2  ;;  %v227_v17 = vadd.f32 %v2359_v10, %v156_v11  ;;  %v228_v18 = vadd.f32 %v2359_v10, %v157_v12  ;;  %v232_v36 = vadd.f32 %v2359_v10, %v161_v28  ;;  %v1820_v40 = vunpack.c.h.bf16 %v2092_v29  ;;  %v2096_v48 = vld [vmem:[%s2917_s0 + $0x40] sm:$0xff]  }
   0x9   :  { %v162_v39 = vmul.f32 %v1815_v30, %v2348_v5  ;;  %v293_v44 = vmax.f32 %v229_v32, 0.0  ;;  %v294_v45 = vmax.f32 %v230_v33, 0.0  ;;  %v295_v46 = vmax.f32 %v231_v34, 0.0 }
   0xa   :  { %v291_v20 = vmax.f32 %v227_v17, 0.0  ;;  %v292_v21 = vmax.f32 %v228_v18, 0.0  ;;  %v163_v47 = vmul.f32 %v1816_v35, %v2348_v5  ;;  %v296_v49 = vmax.f32 %v232_v36, 0.0 }
   0xb   :  { %2196 = vmatpush3.bf16.msra.mxu0 %v2289_v2  ;;  %2281 = vmatpush3.bf16.msra.mxu1 %v2289_v2  ;;  %v164_v50 = vmul.f32 %v1819_v37, %v2348_v5  ;;  %v1823_v51 = vunpack.c.l.bf16 %v2093_v38  ;;  %v1824_v52 = vunpack.c.h.bf16 %v2093_v38  ;;  %v1827_v53 = vunpack.c.l.bf16 %v2094_v41 }
   0xc   :  { %2197 = vmatprep.subr.bf16.mxu0 %v2290_v3  ;;  %2274 = vmatprep.subr.bf16.mxu1 %v2290_v3  ;;  %v742_v27 = vpack.c.bf16 %v292_v21, %v291_v20  ;;  %v1828_v54 = vunpack.c.h.bf16 %v2094_v41  ;;  %v1831_v55 = vunpack.c.l.bf16 %v2095_v42  ;;  %v1832_v56 = vunpack.c.h.bf16 %v2095_v42 }
   0xd   :  { %v165_v57 = vmul.f32 %v1820_v40, %v2348_v5  ;;  %v1835_v58 = vunpack.c.l.bf16 %v2096_v48  ;;  %v1836_v59 = vunpack.c.h.bf16 %v2096_v48  ;;  %v743_v60 = vpack.c.bf16 %v294_v45, %v293_v44  ;;  %v2104_v44 = vld [vmem:[%s2917_s0 + $0x80] sm:$0xff]  }
   0xe   :  { %2207 = vmatprep.mubr.bf16.mxu0 %v742_v27  ;;  %v233_v61 = vadd.f32 %v2359_v10, %v162_v39  ;;  %v234_v62 = vadd.f32 %v2359_v10, %v163_v47  ;;  %v744_v0 = vpack.c.bf16 %v296_v49, %v295_v46  ;;  %v235_v1 = vadd.f32 %v2359_v10, %v164_v50 }
   0xf   :  { %2198 = vmatpush3.bf16.msra.mxu0 %v2290_v3  ;;  %2282 = vmatpush3.bf16.msra.mxu1 %v2290_v3  ;;  %v166_v2 = vmul.f32 %v1823_v51, %v2348_v5  ;;  %v167_v3 = vmul.f32 %v1824_v52, %v2348_v5  ;;  %v168_v6 = vmul.f32 %v1827_v53, %v2348_v5  ;;  %v1839_v14 = vunpack.c.l.bf16 %v2097_v63  ;;  %v2452_v52 = vld [vmem:[%s2917_s0 + $0x60] sm:$0xff]  }
  0x10   :  { %2199 = vmatprep.subr.bf16.mxu0 %v2291_v13  ;;  %2275 = vmatprep.subr.bf16.mxu1 %v2291_v13  ;;  %v169_v7 = vmul.f32 %v1828_v54, %v2348_v5  ;;  %v170_v8 = vmul.f32 %v1831_v55, %v2348_v5  ;;  %v171_v9 = vmul.f32 %v1832_v56, %v2348_v5  ;;  %v297_v15 = vmax.f32 %v233_v61, 0.0 }
  0x11   :  { %v236_v11 = vadd.f32 %v2359_v10, %v165_v57  ;;  %v172_v12 = vmul.f32 %v1835_v58, %v2348_v5  ;;  %v298_v16 = vmax.f32 %v234_v62, 0.0  ;;  %v1840_v17 = vunpack.c.h.bf16 %v2097_v63 }
  0x12   :  { %v1843_v18 = vunpack.c.l.bf16 %v2098_v4  ;;  %v299_v19 = vmax.f32 %v235_v1, 0.0  ;;  %v237_v20 = vadd.f32 %v2359_v10, %v166_v2  ;;  %v238_v21 = vadd.f32 %v2359_v10, %v167_v3 }
  0x13   :  { %2200 = vmatpush3.bf16.msra.mxu0 %v2291_v13  ;;  %2283 = vmatpush3.bf16.msra.mxu1 %v2291_v13  ;;  %v173_v13 = vmul.f32 %v1836_v59, %v2348_v5  ;;  %v239_v24 = vadd.f32 %v2359_v10, %v168_v6  ;;  %v240_v25 = vadd.f32 %v2359_v10, %v169_v7  ;;  %v300_v28 = vmax.f32 %v236_v11, 0.0  ;;  %v2105_v59 = vld [vmem:[%s2917_s0 + $0x88] sm:$0xff]   ;;  %v2107_v11 = vld [vmem:[%s2917_s0 + $0x98] sm:$0xff]  }
  0x14   :  { %2201 = vmatprep.subr.bf16.mxu0 %v2292_v22  ;;  %2276 = vmatprep.subr.bf16.mxu1 %v2292_v22  ;;  %v241_v26 = vadd.f32 %v2359_v10, %v170_v8  ;;  %v242_v27 = vadd.f32 %v2359_v10, %v171_v9  ;;  %v243_v29 = vadd.f32 %v2359_v10, %v172_v12  ;;  %v1847_v35 = vunpack.c.l.bf16 %v2099_v23 }
  0x15   :  { %v244_v30 = vadd.f32 %v2359_v10, %v173_v13  ;;  %v745_v32 = vpack.c.bf16 %v298_v16, %v297_v15  ;;  %v175_v33 = vmul.f32 %v1840_v17, %v2348_v5  ;;  %v176_v34 = vmul.f32 %v1843_v18, %v2348_v5 }
  0x16   :  { %v301_v36 = vmax.f32 %v237_v20, 0.0  ;;  %v302_v37 = vmax.f32 %v238_v21, 0.0  ;;  %v1848_v39 = vunpack.c.h.bf16 %v2099_v23  ;;  %v303_v40 = vmax.f32 %v239_v24, 0.0  ;;  %v2108_v24 = vld [vmem:[%s2917_s0 + $0xa0] sm:$0xff]  }
  0x17   :  { %2202 = vmatpush3.bf16.msra.mxu0 %v2292_v22  ;;  %2284 = vmatpush3.bf16.msra.mxu1 %v2292_v22  ;;  %v1844_v22 = vunpack.c.h.bf16 %v2098_v4  ;;  %v304_v41 = vmax.f32 %v240_v25, 0.0  ;;  %v305_v42 = vmax.f32 %v241_v26, 0.0  ;;  %v746_v45 = vpack.c.bf16 %v300_v28, %v299_v19 }
  0x18   :  { %2203 = vmatprep.subr.bf16.mxu0 %v2293_v31  ;;  %2277 = vmatprep.subr.bf16.mxu1 %v2293_v31  ;;  %v307_v46 = vmax.f32 %v243_v29, 0.0  ;;  %v308_v47 = vmax.f32 %v244_v30, 0.0  ;;  %v246_v49 = vadd.f32 %v2359_v10, %v175_v33  ;;  %v2446_v50 = vadd.f32 %v2359_v10, %v176_v34  ;;  %v2109_v33 = vld [vmem:[%s2917_s0 + $0xa8] sm:$0xff]  }
  0x19   :  { %v177_v38 = vmul.f32 %v1844_v22, %v2348_v5  ;;  %v178_v51 = vmul.f32 %v1847_v35, %v2348_v5  ;;  %v179_v54 = vmul.f32 %v1848_v39, %v2348_v5  ;;  %v1867_v55 = vunpack.c.l.bf16 %v2104_v44 }
  0x1a   :  { %v747_v56 = vpack.c.bf16 %v302_v37, %v301_v36  ;;  %v748_v57 = vpack.c.bf16 %v304_v41, %v303_v40  ;;  %v1851_v62 = vunpack.c.l.bf16 %v2452_v52  ;;  %v1868_v63 = vunpack.c.h.bf16 %v2104_v44 }
  0x1b   :  { %2204 = vmatpush3.bf16.msra.mxu0 %v2293_v31  ;;  %2285 = vmatpush3.bf16.msra.mxu1 %v2293_v31  ;;  %v174_v31 = vmul.f32 %v1839_v14, %v2348_v5  ;;  %v2455_v53 = vadd.f32 %v2359_v10, %v177_v38  ;;  %v310_v1 = vmax.f32 %v246_v49, 0.0  ;;  %v311_v2 = vmax.f32 %v2446_v50, 0.0 }
  0x1c   :  { %2205 = vmatprep.subr.bf16.mxu0 %v2294_v43  ;;  %2278 = vmatprep.subr.bf16.mxu1 %v2294_v43  ;;  %v2471_v3 = vadd.f32 %v2359_v10, %v178_v51  ;;  %v188_v4 = vmul.f32 %v1867_v55, %v2348_v5  ;;  %v2476_v7 = vadd.f32 %v2359_v10, %v179_v54  ;;  %v1871_v9 = vunpack.c.l.bf16 %v2105_v59 }
  0x1d   :  { %v245_v48 = vadd.f32 %v2359_v10, %v174_v31  ;;  %v312_v6 = vmax.f32 %v2455_v53, 0.0  ;;  %v189_v8 = vmul.f32 %v1868_v63, %v2348_v5  ;;  %v1852_v12 = vunpack.c.h.bf16 %v2452_v52 }
  0x1e   :  { %v259_v13 = vadd.f32 %v2359_v10, %v188_v4  ;;  %v1872_v14 = vunpack.c.h.bf16 %v2105_v59  ;;  %v2485_v16 = vmul.f32 %v1851_v62, %v2348_v5  ;;  %v190_v18 = vmul.f32 %v1871_v9, %v2348_v5 }
  0x1f   :  { %2206 = vmatpush3.bf16.msra.mxu0 %v2294_v43  ;;  %2286 = vmatpush3.bf16.msra.mxu1 %v2294_v43  ;;  %v306_v43 = vmax.f32 %v242_v27, 0.0  ;;  %v309_v61 = vmax.f32 %v245_v48, 0.0  ;;  %v260_v17 = vadd.f32 %v2359_v10, %v189_v8  ;;  %v1879_v23 = vunpack.c.l.bf16 %v2107_v11 }
  0x20   :  { %v323_v20 = vmax.f32 %v259_v13, 0.0  ;;  %v191_v21 = vmul.f32 %v1872_v14, %v2348_v5  ;;  %v261_v27 = vadd.f32 %v2359_v10, %v190_v18  ;;  %v1880_v31 = vunpack.c.h.bf16 %v2107_v11  ;;  %v2112_v18 = vld [vmem:[%s2917_s0 + $0xc0] sm:$0xff]  }
  0x21   :  { %v2458_v58 = vpack.c.bf16 %v306_v43, %v305_v42  ;;  %v2494_v25 = vpack.c.bf16 %v310_v1, %v309_v61  ;;  %v324_v26 = vmax.f32 %v260_v17, 0.0  ;;  %v1883_v37 = vunpack.c.l.bf16 %v2108_v24  ;;  %v2111_v1 = vld [vmem:[%s2917_s0 + $0xb8] sm:$0xff]  }
  0x22   :  { %2208 = vmatmul.mubr.bf16.vlgmr.msra.gmra.mxu0 %v743_v60  ;;  %v2463_v60 = vpack.c.bf16 %v308_v47, %v307_v46  ;;  %v262_v29 = vadd.f32 %v2359_v10, %v191_v21  ;;  %v325_v35 = vmax.f32 %v261_v27, 0.0  ;;  %v195_v40 = vmul.f32 %v1880_v31, %v2348_v5  ;;  %v2110_v46 = vld [vmem:[%s2917_s0 + $0xb0] sm:$0xff]   ;;  %v2101_v47 = vld [vmem:[%s2917_s0 + $0x68] sm:$0xff]  }
  0x23   :  { %2211 = vmatprep.mubr.bf16.mxu0 %v744_v0  ;;  %v2106_v0 = vld [vmem:[%s2917_s0 + $0x90] sm:$0xff]   ;;  %v758_v34 = vpack.c.bf16 %v324_v26, %v323_v20  ;;  %v1884_v43 = vunpack.c.h.bf16 %v2108_v24  ;;  %v196_v44 = vmul.f32 %v1883_v37, %v2348_v5  ;;  %v1888_v54 = vunpack.c.h.bf16 %v2109_v33 }
  0x24   :  { %v1875_v15 = vunpack.c.l.bf16 %v2106_v0  ;;  %v1876_v19 = vunpack.c.h.bf16 %v2106_v0  ;;  %v326_v38 = vmax.f32 %v262_v29, 0.0  ;;  %v266_v49 = vadd.f32 %v2359_v10, %v195_v40  ;;  %v2114_v40 = vld [vmem:[%s2917_s0 + $0xd0] sm:$0xff]  }
  0x25   :  { %2239 = vmatprep.mubr.bf16.mxu1 %v758_v34  ;;  %v199_v62 = vmul.f32 %v1888_v54, %v2348_v5  ;;  %v1891_v63 = vunpack.c.l.bf16 %v2110_v46  ;;  %v1892_v0 = vunpack.c.h.bf16 %v2110_v46  ;;  %v313_v4 = vmax.f32 %v2471_v3, 0.0 }
  0x26   :  { %v192_v22 = vmul.f32 %v1875_v15, %v2348_v5  ;;  %v193_v28 = vmul.f32 %v1876_v19, %v2348_v5  ;;  %v759_v48 = vpack.c.bf16 %v326_v38, %v325_v35  ;;  %v330_v61 = vmax.f32 %v266_v49, 0.0 }
  0x27   :  { %v1855_v8 = vunpack.c.l.bf16 %v2101_v47  ;;  %v314_v13 = vmax.f32 %v2476_v7, 0.0  ;;  %v1856_v14 = vunpack.c.h.bf16 %v2101_v47  ;;  %v200_v15 = vmul.f32 %v1891_v63, %v2348_v5 }
  0x28   :  { %v263_v30 = vadd.f32 %v2359_v10, %v192_v22  ;;  %v264_v36 = vadd.f32 %v2359_v10, %v193_v28  ;;  %2240 = vmatmul.mubr.bf16.vlgmr.msra.gmra.mxu1 %v759_v48  ;;  %v201_v17 = vmul.f32 %v1892_v0, %v2348_v5  ;;  %v181_v3 = vmul.f32 %v1852_v12, %v2348_v5 }
  0x29   :  { %v1895_v19 = vunpack.c.l.bf16 %v2111_v1  ;;  %v1896_v20 = vunpack.c.h.bf16 %v2111_v1  ;;  %v271_v24 = vadd.f32 %v2359_v10, %v200_v15  ;;  %v1899_v27 = vunpack.c.l.bf16 %v2112_v18  ;;  %v2115_v15 = vld [vmem:[%s2917_s0 + $0xd8] sm:$0xff]  }
  0x2a   :  { %2212 = vmatmul.mubr.bf16.gmra.mxu0 %v745_v32  ;;  %v194_v32 = vmul.f32 %v1879_v23, %v2348_v5  ;;  %v327_v39 = vmax.f32 %v263_v30, 0.0  ;;  %v328_v42 = vmax.f32 %v264_v36, 0.0  ;;  %v270_v23 = vadd.f32 %v2359_v10, %v199_v62 }
  0x2b   :  { %2215 = vmatprep.mubr.bf16.mxu0 %v746_v45  ;;  %v1887_v45 = vunpack.c.l.bf16 %v2109_v33  ;;  %v1900_v52 = vunpack.c.h.bf16 %v2112_v18  ;;  %v752_v12 = vpack.c.bf16 %v312_v6, %v311_v2  ;;  %v251_v28 = vadd.f32 %v2359_v10, %v2485_v16  ;;  %v2103_v33 = vld [vmem:[%s2917_s0 + $0x78] sm:$0xff]   ;;  %v2113_v16 = vld [vmem:[%s2917_s0 + $0xc8] sm:$0xff]  }
  0x2c   :  { %v265_v41 = vadd.f32 %v2359_v10, %v194_v32  ;;  %v760_v55 = vpack.c.bf16 %v328_v42, %v327_v39  ;;  %v252_v31 = vadd.f32 %v2359_v10, %v181_v3  ;;  %v182_v32 = vmul.f32 %v1855_v8, %v2348_v5 }
  0x2d   :  { %v198_v59 = vmul.f32 %v1887_v45, %v2348_v5  ;;  %v202_v34 = vmul.f32 %v1895_v19, %v2348_v5  ;;  %v203_v50 = vmul.f32 %v1896_v20, %v2348_v5  ;;  %v753_v35 = vpack.c.bf16 %v314_v13, %v313_v4 }
  0x2e   :  { %v329_v51 = vmax.f32 %v265_v41, 0.0  ;;  %2243 = vmatprep.mubr.bf16.mxu1 %v760_v55  ;;  %v183_v53 = vmul.f32 %v1856_v14, %v2348_v5  ;;  %v334_v6 = vmax.f32 %v270_v23, 0.0  ;;  %v335_v36 = vmax.f32 %v271_v24, 0.0 }
  0x2f   :  { %v269_v22 = vadd.f32 %v2359_v10, %v198_v59  ;;  %v204_v38 = vmul.f32 %v1899_v27, %v2348_v5  ;;  %v205_v39 = vmul.f32 %v1900_v52, %v2348_v5  ;;  %v315_v41 = vmax.f32 %v251_v28, 0.0 }
  0x30   :  { %v761_v21 = vpack.c.bf16 %v330_v61, %v329_v51  ;;  %v316_v45 = vmax.f32 %v252_v31, 0.0  ;;  %v273_v46 = vadd.f32 %v2359_v10, %v202_v34  ;;  %v274_v47 = vadd.f32 %v2359_v10, %v203_v50 }
  0x31   :  { %v333_v2 = vmax.f32 %v269_v22, 0.0  ;;  %v1903_v48 = vunpack.c.l.bf16 %v2113_v16  ;;  %v1904_v51 = vunpack.c.h.bf16 %v2113_v16  ;;  %v1907_v54 = vunpack.c.l.bf16 %v2114_v40 }
  0x32   :  { %2216 = vmatmul.mubr.bf16.gmra.mxu0 %v747_v56  ;;  %v197_v56 = vmul.f32 %v1884_v43, %v2348_v5  ;;  %2244 = vmatmul.mubr.bf16.gmra.mxu1 %v761_v21  ;;  %v1908_v55 = vunpack.c.h.bf16 %v2114_v40  ;;  %v276_v59 = vadd.f32 %v2359_v10, %v205_v39  ;;  %v254_v61 = vadd.f32 %v2359_v10, %v183_v53  ;;  %v2116_v21 = vld [vmem:[%s2917_s0 + $0xe0] sm:$0xff]  }
  0x33   :  { %2219 = vmatprep.mubr.bf16.mxu0 %v748_v57  ;;  %v267_v57 = vadd.f32 %v2359_v10, %v196_v44  ;;  %v1863_v44 = vunpack.c.l.bf16 %v2103_v33  ;;  %v763_v49 = vpack.c.bf16 %v334_v6, %v333_v2  ;;  %v1864_v0 = vunpack.c.h.bf16 %v2103_v33 }
  0x34   :  { %v268_v9 = vadd.f32 %v2359_v10, %v197_v56  ;;  %v253_v56 = vadd.f32 %v2359_v10, %v182_v32  ;;  %v754_v1 = vpack.c.bf16 %v316_v45, %v315_v41  ;;  %v337_v4 = vmax.f32 %v273_v46, 0.0  ;;  %v2118_v41 = vld [vmem:[%s2917_s0 + $0xf0] sm:$0xff]  }
  0x35   :  { %v331_v11 = vmax.f32 %v267_v57, 0.0  ;;  %v275_v57 = vadd.f32 %v2359_v10, %v204_v38  ;;  %v338_v8 = vmax.f32 %v274_v47, 0.0  ;;  %v208_v13 = vmul.f32 %v1907_v54, %v2348_v5 }
  0x36   :  { %v332_v7 = vmax.f32 %v268_v9, 0.0  ;;  %v206_v9 = vmul.f32 %v1903_v48, %v2348_v5  ;;  %v209_v14 = vmul.f32 %v1908_v55, %v2348_v5  ;;  %v340_v3 = vmax.f32 %v276_v59, 0.0 }
  0x37   :  { %v339_v18 = vmax.f32 %v275_v57, 0.0  ;;  %v187_v20 = vmul.f32 %v1864_v0, %v2348_v5  ;;  %v765_v23 = vpack.c.bf16 %v338_v8, %v337_v4  ;;  %v279_v27 = vadd.f32 %v2359_v10, %v208_v13 }
  0x38   :  { %v762_v26 = vpack.c.bf16 %v332_v7, %v331_v11  ;;  %v207_v11 = vmul.f32 %v1904_v51, %v2348_v5  ;;  %v318_v7 = vmax.f32 %v254_v61, 0.0  ;;  %v277_v24 = vadd.f32 %v2359_v10, %v206_v9 }
  0x39   :  { %v280_v52 = vadd.f32 %v2359_v10, %v209_v14  ;;  %v766_v28 = vpack.c.bf16 %v340_v3, %v339_v18  ;;  %v258_v33 = vadd.f32 %v2359_v10, %v187_v20  ;;  %v343_v2 = vmax.f32 %v279_v27, 0.0 }
  0x3a   :  { %2220 = vmatmul.mubr.bf16.gmra.mxu0 %v2458_v58  ;;  %v2102_v58 = vld [vmem:[%s2917_s0 + $0x70] sm:$0xff]   ;;  %2247 = vmatprep.mubr.bf16.mxu1 %v762_v26  ;;  %v1911_v26 = vunpack.c.l.bf16 %v2115_v15  ;;  %v341_v50 = vmax.f32 %v277_v24, 0.0  ;;  %v1923_v51 = vunpack.c.l.bf16 %v2118_v41  ;;  %v1924_v54 = vunpack.c.h.bf16 %v2118_v41 }
  0x3b   :  { %2223 = vmatprep.mubr.bf16.mxu0 %v2463_v60  ;;  %v272_v60 = vadd.f32 %v2359_v10, %v201_v17  ;;  %v1859_v29 = vunpack.c.l.bf16 %v2102_v58  ;;  %v1860_v30 = vunpack.c.h.bf16 %v2102_v58  ;;  %2248 = vmatmul.mubr.bf16.gmra.mxu1 %v763_v49  ;;  %v186_v17 = vmul.f32 %v1863_v44, %v2348_v5 }
  0x3c   :  { %v317_v58 = vmax.f32 %v253_v56, 0.0  ;;  %v344_v6 = vmax.f32 %v280_v52, 0.0  ;;  %v322_v40 = vmax.f32 %v258_v33, 0.0  ;;  %v217_v0 = vmul.f32 %v1924_v54, %v2348_v5 }
  0x3d   :  { %v336_v37 = vmax.f32 %v272_v60, 0.0  ;;  %v184_v42 = vmul.f32 %v1859_v29, %v2348_v5  ;;  %v185_v43 = vmul.f32 %v1860_v30, %v2348_v5  ;;  %v278_v60 = vadd.f32 %v2359_v10, %v207_v11 }
  0x3e   :  { %v1915_v29 = vunpack.c.l.bf16 %v2116_v21  ;;  %v1916_v30 = vunpack.c.h.bf16 %v2116_v21  ;;  %v755_v31 = vpack.c.bf16 %v318_v7, %v317_v58  ;;  %v257_v32 = vadd.f32 %v2359_v10, %v186_v17 }
  0x3f   :  { %v255_v62 = vadd.f32 %v2359_v10, %v184_v42  ;;  %v256_v63 = vadd.f32 %v2359_v10, %v185_v43  ;;  %v342_v53 = vmax.f32 %v278_v60, 0.0  ;;  %v768_v45 = vpack.c.bf16 %v344_v6, %v343_v2 }
  0x40   :  { %v213_v38 = vmul.f32 %v1916_v30, %v2348_v5  ;;  %v321_v39 = vmax.f32 %v257_v32, 0.0  ;;  %v288_v17 = vadd.f32 %v2359_v10, %v217_v0 }
  0x41   :  { %v319_v19 = vmax.f32 %v255_v62, 0.0  ;;  %v320_v22 = vmax.f32 %v256_v63, 0.0  ;;  %v767_v44 = vpack.c.bf16 %v342_v53, %v341_v50  ;;  %v216_v63 = vmul.f32 %v1923_v51, %v2348_v5 }
  0x42   :  { %2224 = vmatmul.mubr.bf16.gmra.mxu0 %v2494_v25  ;;  %v764_v25 = vpack.c.bf16 %v336_v37, %v335_v36  ;;  %v2117_v36 = vld [vmem:[%s2917_s0 + $0xe8] sm:$0xff]   ;;  %v212_v37 = vmul.f32 %v1915_v29, %v2348_v5  ;;  %v284_v49 = vadd.f32 %v2359_v10, %v213_v38  ;;  %v757_v55 = vpack.c.bf16 %v322_v40, %v321_v39 }
  0x43   :  { %2227 = vmatprep.mubr.bf16.mxu0 %v752_v12  ;;  %v1912_v12 = vunpack.c.h.bf16 %v2115_v15  ;;  %v756_v34 = vpack.c.bf16 %v320_v22, %v319_v19  ;;  %v1919_v43 = vunpack.c.l.bf16 %v2117_v36  ;;  %v1920_v47 = vunpack.c.h.bf16 %v2117_v36 }
  0x44   :  { %2251 = vmatprep.mubr.bf16.mxu1 %v764_v25  ;;  %v283_v48 = vadd.f32 %v2359_v10, %v212_v37  ;;  %v348_v62 = vmax.f32 %v284_v49, 0.0  ;;  %v287_v15 = vadd.f32 %v2359_v10, %v216_v63  ;;  %v352_v20 = vmax.f32 %v288_v17, 0.0 }
  0x45   :  { %2252 = vmatmul.mubr.bf16.gmra.mxu1 %v765_v23  ;;  %v211_v16 = vmul.f32 %v1912_v12, %v2348_v5  ;;  %v214_v56 = vmul.f32 %v1919_v43, %v2348_v5  ;;  %v215_v59 = vmul.f32 %v1920_v47, %v2348_v5 }
  0x46   :  { %2255 = vmatprep.mubr.bf16.mxu1 %v766_v28  ;;  %v347_v61 = vmax.f32 %v283_v48, 0.0  ;;  %v351_v19 = vmax.f32 %v287_v15, 0.0 }
  0x47   :  { %v282_v46 = vadd.f32 %v2359_v10, %v211_v16  ;;  %v285_v4 = vadd.f32 %v2359_v10, %v214_v56  ;;  %v286_v9 = vadd.f32 %v2359_v10, %v215_v59 }
  0x48   :  { %v770_v14 = vpack.c.bf16 %v348_v62, %v347_v61  ;;  %v772_v24 = vpack.c.bf16 %v352_v20, %v351_v19 }
  0x49   :  { %v346_v57 = vmax.f32 %v282_v46, 0.0  ;;  %v349_v18 = vmax.f32 %v285_v4, 0.0  ;;  %v350_v3 = vmax.f32 %v286_v9, 0.0 }
  0x4a   :  { %2228 = vmatmul.mubr.bf16.gmra.mxu0 %v753_v35  ;;  %v210_v35 = vmul.f32 %v1911_v26, %v2348_v5 }
  0x4b   :  { %2231 = vmatprep.mubr.bf16.mxu0 %v754_v1  ;;  %v2119_v1 = vld [vmem:[%s2917_s0 + $0xf8] sm:$0xff]   ;;  %v771_v21 = vpack.c.bf16 %v350_v3, %v349_v18 }
  0x4c   :  { %v281_v42 = vadd.f32 %v2359_v10, %v210_v35  ;;  %v1927_v11 = vunpack.c.l.bf16 %v2119_v1  ;;  %v1928_v13 = vunpack.c.h.bf16 %v2119_v1 }
  0x4d   :  { %2256 = vmatmul.mubr.bf16.gmra.mxu1 %v767_v44 }
  0x4e   :  { %v345_v25 = vmax.f32 %v281_v42, 0.0  ;;  %2259 = vmatprep.mubr.bf16.mxu1 %v768_v45  ;;  %v218_v58 = vmul.f32 %v1927_v11, %v2348_v5  ;;  %v219_v7 = vmul.f32 %v1928_v13, %v2348_v5 }
  0x50   :  { %v769_v8 = vpack.c.bf16 %v346_v57, %v345_v25  ;;  %v289_v22 = vadd.f32 %v2359_v10, %v218_v58  ;;  %v290_v23 = vadd.f32 %v2359_v10, %v219_v7 }
  0x52   :  { %2232 = vmatmul.mubr.bf16.gmra.mxu0 %v755_v31  ;;  %v353_v26 = vmax.f32 %v289_v22, 0.0  ;;  %v354_v60 = vmax.f32 %v290_v23, 0.0 }
  0x53   :  { %2235 = vmatprep.mubr.bf16.mxu0 %v756_v34 }
  0x54   :  { %v773_v27 = vpack.c.bf16 %v354_v60, %v353_v26 }
  0x55   :  { %2260 = vmatmul.mubr.bf16.gmra.mxu1 %v769_v8 }
  0x56   :  { %2263 = vmatprep.mubr.bf16.mxu1 %v770_v14 }
  0x5a   :  { %2236 = vmatmul.mubr.bf16.gmra.mxu0 %v757_v55 }
  0x5d   :  { %2264 = vmatmul.mubr.bf16.gmra.mxu1 %v771_v21 }
  0x5e   :  { %2267 = vmatprep.mubr.bf16.mxu1 %v772_v24 }
  0x65   :  { %2268 = vmatmul.mubr.bf16.gmra.mxu1 %v773_v27 }
  0xe2   :  { %v2209_v52 = vpop.f32.mrf.mxu0 }
  0xe3   :  { %v1519_v34 = vmul.f32 %v2209_v52, %v2209_v52 }
  0xe4   :  { %v872_v12 = vpop.f32.mrf.mxu0 }
  0xe5   :  { %v1517_v30 = vmul.f32 %v872_v12, %v872_v12 }
  0xe6   :  { %v2210_v28 = vpop.f32.mrf.mxu0 }
  0xe7   :  { %v1937_v29 = vpack.c.bf16 %v2210_v28, %v2209_v52  ;;  %v1520_v2 = vmul.f32 %v2210_v28, %v2210_v28 }
  0xe8   :  { %v875_v5 = vpop.f32.mrf.mxu0  ;;  %v2634_v0 = vpop.f32.mrf.mxu1 }
  0xe9   :  { %2120 = vst [vmem:[%s2920_s4 + $0x8] sm:$0xff] %v1937_v29   ;;  %v1932_v31 = vpack.c.bf16 %v875_v5, %v872_v12  ;;  %v1447_v32 = vadd.f32 %v875_v5, %v872_v12  ;;  %v1518_v10 = vmul.f32 %v875_v5, %v875_v5 }
  0xea   :  { %v2213_v33 = vpop.f32.mrf.mxu0  ;;  %v2639_v13 = vpop.f32.mrf.mxu1 }
  0xeb   :  { %1933 = vst [vmem:[%s2920_s4] sm:$0xff] %v1932_v31   ;;  %v1448_v50 = vadd.f32 %v2209_v52, %v1447_v32  ;;  %v1581_v35 = vadd.f32 %v1518_v10, %v1517_v30  ;;  %v1523_v47 = vmul.f32 %v2213_v33, %v2213_v33 }
  0xec   :  { %v888_v53 = vpop.f32.mrf.mxu0  ;;  %v2644_v3 = vpop.f32.mrf.mxu1 }
  0xed   :  { %v1582_v6 = vadd.f32 %v1581_v35, %v1519_v34  ;;  %v1449_v16 = vadd.f32 %v2210_v28, %v1448_v50  ;;  %v1521_v38 = vmul.f32 %v888_v53, %v888_v53  ;;  %v2017_v20 = vpack.c.bf16 %v2644_v3, %v2634_v0 }
  0xee   :  { %v2214_v36 = vpop.f32.mrf.mxu0  ;;  %v2648_v22 = vpop.f32.mrf.mxu1 }
  0xef   :  { %v1450_v37 = vadd.f32 %v1449_v16, %v888_v53  ;;  %v1583_v39 = vadd.f32 %v1582_v6, %v1520_v2  ;;  %v1947_v40 = vpack.c.bf16 %v2214_v36, %v2213_v33  ;;  %v1524_v54 = vmul.f32 %v2214_v36, %v2214_v36  ;;  %2136 = vst [vmem:[%s2920_s4 + $0x88] sm:$0xff] %v2017_v20  }
  0xf0   :  { %v891_v41 = vpop.f32.mrf.mxu0  ;;  %v2012_v52 = vpack.c.bf16 %v2648_v22, %v2639_v13 }
  0xf1   :  { %v1584_v42 = vadd.f32 %v1583_v39, %v1521_v38  ;;  %2122 = vst [vmem:[%s2920_s4 + $0x18] sm:$0xff] %v1947_v40   ;;  %v1942_v43 = vpack.c.bf16 %v891_v41, %v888_v53  ;;  %v1451_v44 = vadd.f32 %v1450_v37, %v891_v41  ;;  %v1522_v45 = vmul.f32 %v891_v41, %v891_v41 }
  0xf2   :  { %v2217_v46 = vpop.f32.mrf.mxu0  ;;  %v2655_v12 = vpop.f32.mrf.mxu1  ;;  %2135 = vst [vmem:[%s2920_s4 + $0x80] sm:$0xff] %v2012_v52  }
  0xf3   :  { %2121 = vst [vmem:[%s2920_s4 + $0x10] sm:$0xff] %v1942_v43   ;;  %v1452_v48 = vadd.f32 %v2213_v33, %v1451_v44  ;;  %v1585_v49 = vadd.f32 %v1584_v42, %v1522_v45  ;;  %v1527_v14 = vmul.f32 %v2217_v46, %v2217_v46 }
  0xf4   :  { %v904_v51 = vpop.f32.mrf.mxu0  ;;  %v2663_v32 = vpop.f32.mrf.mxu1 }
  0xf5   :  { %v1586_v55 = vadd.f32 %v1585_v49, %v1523_v47  ;;  %v1453_v56 = vadd.f32 %v2214_v36, %v1452_v48  ;;  %v1525_v59 = vmul.f32 %v904_v51, %v904_v51 }
  0xf6   :  { %v2218_v25 = vpop.f32.mrf.mxu0  ;;  %v2668_v35 = vpop.f32.mrf.mxu1 }
  0xf7   :  { %v1454_v57 = vadd.f32 %v1453_v56, %v904_v51  ;;  %v1587_v61 = vadd.f32 %v1586_v55, %v1524_v54  ;;  %v1957_v62 = vpack.c.bf16 %v2218_v25, %v2217_v46  ;;  %v1528_v58 = vmul.f32 %v2218_v25, %v2218_v25 }
  0xf8   :  { %v907_v63 = vpop.f32.mrf.mxu0  ;;  %v2027_v16 = vpack.c.bf16 %v2668_v35, %v2655_v12  ;;  %v2672_v37 = vpop.f32.mrf.mxu1 }
  0xf9   :  { %v1588_v1 = vadd.f32 %v1587_v61, %v1525_v59  ;;  %2124 = vst [vmem:[%s2920_s4 + $0x28] sm:$0xff] %v1957_v62   ;;  %v1952_v4 = vpack.c.bf16 %v907_v63, %v904_v51  ;;  %v1455_v8 = vadd.f32 %v1454_v57, %v907_v63  ;;  %v1526_v9 = vmul.f32 %v907_v63, %v907_v63 }
  0xfa   :  { %v2221_v11 = vpop.f32.mrf.mxu0  ;;  %2138 = vst [vmem:[%s2920_s4 + $0x98] sm:$0xff] %v2027_v16   ;;  %v2022_v43 = vpack.c.bf16 %v2672_v37, %v2663_v32 }
  0xfb   :  { %2123 = vst [vmem:[%s2920_s4 + $0x20] sm:$0xff] %v1952_v4   ;;  %v1456_v15 = vadd.f32 %v2217_v46, %v1455_v8  ;;  %v1589_v17 = vadd.f32 %v1588_v1, %v1526_v9  ;;  %v1531_v10 = vmul.f32 %v2221_v11, %v2221_v11  ;;  %v2679_v44 = vpop.f32.mrf.mxu1 }
  0xfc   :  { %v920_v18 = vpop.f32.mrf.mxu0  ;;  %2137 = vst [vmem:[%s2920_s4 + $0x90] sm:$0xff] %v2022_v43  }
  0xfd   :  { %v1590_v7 = vadd.f32 %v1589_v17, %v1527_v14  ;;  %v1457_v19 = vadd.f32 %v2218_v25, %v1456_v15  ;;  %v1529_v24 = vmul.f32 %v920_v18, %v920_v18  ;;  %v2687_v51 = vpop.f32.mrf.mxu1 }
  0xfe   :  { %v2222_v21 = vpop.f32.mrf.mxu0 }
  0xff   :  { %v1458_v23 = vadd.f32 %v1457_v19, %v920_v18  ;;  %v1591_v26 = vadd.f32 %v1590_v7, %v1528_v58  ;;  %v1967_v60 = vpack.c.bf16 %v2222_v21, %v2221_v11  ;;  %v1532_v53 = vmul.f32 %v2222_v21, %v2222_v21  ;;  %v2692_v57 = vpop.f32.mrf.mxu1 }
 0x100   :  { %v923_v27 = vpop.f32.mrf.mxu0  ;;  %v2037_v63 = vpack.c.bf16 %v2692_v57, %v2679_v44 }
 0x101   :  { %v1592_v28 = vadd.f32 %v1591_v26, %v1529_v24  ;;  %2126 = vst [vmem:[%s2920_s4 + $0x38] sm:$0xff] %v1967_v60   ;;  %v1962_v29 = vpack.c.bf16 %v923_v27, %v920_v18  ;;  %v1459_v5 = vadd.f32 %v1458_v23, %v923_v27  ;;  %v1530_v30 = vmul.f32 %v923_v27, %v923_v27  ;;  %v2696_v4 = vpop.f32.mrf.mxu1 }
 0x102   :  { %v2225_v31 = vpop.f32.mrf.mxu0  ;;  %2140 = vst [vmem:[%s2920_s4 + $0xa8] sm:$0xff] %v2037_v63   ;;  %v2032_v17 = vpack.c.bf16 %v2696_v4, %v2687_v51 }
 0x103   :  { %2125 = vst [vmem:[%s2920_s4 + $0x30] sm:$0xff] %v1962_v29   ;;  %v1460_v33 = vadd.f32 %v2221_v11, %v1459_v5  ;;  %v1593_v34 = vadd.f32 %v1592_v28, %v1530_v30  ;;  %v1535_v54 = vmul.f32 %v2225_v31, %v2225_v31 }
 0x104   :  { %v936_v50 = vpop.f32.mrf.mxu0  ;;  %2139 = vst [vmem:[%s2920_s4 + $0xa0] sm:$0xff] %v2032_v17  }
 0x105   :  { %v1594_v2 = vadd.f32 %v1593_v34, %v1531_v10  ;;  %v1461_v6 = vadd.f32 %v2222_v21, %v1460_v33  ;;  %v1533_v39 = vmul.f32 %v936_v50, %v936_v50  ;;  %v2703_v18 = vpop.f32.mrf.mxu1 }
 0x106   :  { %v2226_v36 = vpop.f32.mrf.mxu0 }
 0x107   :  { %v1462_v38 = vadd.f32 %v1461_v6, %v936_v50  ;;  %v1595_v40 = vadd.f32 %v1594_v2, %v1532_v53  ;;  %v1977_v41 = vpack.c.bf16 %v2226_v36, %v2225_v31  ;;  %v1536_v59 = vmul.f32 %v2226_v36, %v2226_v36  ;;  %v2711_v23 = vpop.f32.mrf.mxu1 }
 0x108   :  { %v939_v42 = vpop.f32.mrf.mxu0 }
 0x109   :  { %v1596_v45 = vadd.f32 %v1595_v40, %v1533_v39  ;;  %2128 = vst [vmem:[%s2920_s4 + $0x48] sm:$0xff] %v1977_v41   ;;  %v1972_v46 = vpack.c.bf16 %v939_v42, %v936_v50  ;;  %v1463_v47 = vadd.f32 %v1462_v38, %v939_v42  ;;  %v1534_v48 = vmul.f32 %v939_v42, %v939_v42  ;;  %v2716_v52 = vpop.f32.mrf.mxu1 }
 0x10a   :  { %v2229_v49 = vpop.f32.mrf.mxu0  ;;  %v2047_v30 = vpack.c.bf16 %v2716_v52, %v2703_v18 }
 0x10b   :  { %2127 = vst [vmem:[%s2920_s4 + $0x40] sm:$0xff] %v1972_v46   ;;  %v1464_v55 = vadd.f32 %v2225_v31, %v1463_v47  ;;  %v1597_v56 = vadd.f32 %v1596_v45, %v1534_v48  ;;  %v1539_v24 = vmul.f32 %v2229_v49, %v2229_v49  ;;  %v2720_v10 = vpop.f32.mrf.mxu1 }
 0x10c   :  { %v952_v25 = vpop.f32.mrf.mxu0  ;;  %2142 = vst [vmem:[%s2920_s4 + $0xb8] sm:$0xff] %v2047_v30   ;;  %v2042_v6 = vpack.c.bf16 %v2720_v10, %v2711_v23 }
 0x10d   :  { %v1598_v61 = vadd.f32 %v1597_v56, %v1535_v54  ;;  %v1465_v62 = vadd.f32 %v2226_v36, %v1464_v55  ;;  %v1537_v9 = vmul.f32 %v952_v25, %v952_v25  ;;  %v2727_v16 = vpop.f32.mrf.mxu1 }
 0x10e   :  { %v2230_v1 = vpop.f32.mrf.mxu0  ;;  %2141 = vst [vmem:[%s2920_s4 + $0xb0] sm:$0xff] %v2042_v6   ;;  %v1551_v6 = vmul.f32 %v2634_v0, %v2634_v0 }
 0x10f   :  { %v1466_v8 = vadd.f32 %v1465_v62, %v952_v25  ;;  %v1599_v11 = vadd.f32 %v1598_v61, %v1536_v59  ;;  %v1987_v14 = vpack.c.bf16 %v2230_v1, %v2229_v49  ;;  %v1540_v28 = vmul.f32 %v2230_v1, %v2230_v1  ;;  %v2735_v42 = vpop.f32.mrf.mxu1 }
 0x110   :  { %v955_v15 = vpop.f32.mrf.mxu0 }
 0x111   :  { %v1600_v58 = vadd.f32 %v1599_v11, %v1537_v9  ;;  %2130 = vst [vmem:[%s2920_s4 + $0x58] sm:$0xff] %v1987_v14   ;;  %v1982_v7 = vpack.c.bf16 %v955_v15, %v952_v25  ;;  %v1467_v19 = vadd.f32 %v1466_v8, %v955_v15  ;;  %v1538_v20 = vmul.f32 %v955_v15, %v955_v15  ;;  %v2740_v48 = vpop.f32.mrf.mxu1 }
 0x112   :  { %v2233_v21 = vpop.f32.mrf.mxu0  ;;  %v2057_v56 = vpack.c.bf16 %v2740_v48, %v2727_v16 }
 0x113   :  { %2129 = vst [vmem:[%s2920_s4 + $0x50] sm:$0xff] %v1982_v7   ;;  %v1468_v26 = vadd.f32 %v2229_v49, %v1467_v19  ;;  %v1601_v60 = vadd.f32 %v1600_v58, %v1538_v20  ;;  %v1543_v43 = vmul.f32 %v2233_v21, %v2233_v21  ;;  %v2744_v59 = vpop.f32.mrf.mxu1 }
 0x114   :  { %v968_v27 = vpop.f32.mrf.mxu0  ;;  %2144 = vst [vmem:[%s2920_s4 + $0xc8] sm:$0xff] %v2057_v56   ;;  %v2052_v9 = vpack.c.bf16 %v2744_v59, %v2735_v42  ;;  %v1554_v56 = vmul.f32 %v2672_v37, %v2672_v37 }
 0x115   :  { %v1602_v29 = vadd.f32 %v1601_v60, %v1539_v24  ;;  %v1469_v5 = vadd.f32 %v2230_v1, %v1468_v26  ;;  %v1541_v34 = vmul.f32 %v968_v27, %v968_v27  ;;  %v2751_v11 = vpop.f32.mrf.mxu1 }
 0x116   :  { %v2234_v31 = vpop.f32.mrf.mxu0  ;;  %2143 = vst [vmem:[%s2920_s4 + $0xc0] sm:$0xff] %v2052_v9  }
 0x117   :  { %v1470_v33 = vadd.f32 %v1469_v5, %v968_v27  ;;  %v1603_v50 = vadd.f32 %v1602_v29, %v1540_v28  ;;  %v1997_v53 = vpack.c.bf16 %v2234_v31, %v2233_v21  ;;  %v1544_v49 = vmul.f32 %v2234_v31, %v2234_v31  ;;  %v2759_v7 = vpop.f32.mrf.mxu1 }
 0x118   :  { %v971_v2 = vpop.f32.mrf.mxu0  ;;  %v1549_v5 = vmul.f32 %v2639_v13, %v2639_v13 }
 0x119   :  { %v1604_v36 = vadd.f32 %v1603_v50, %v1541_v34  ;;  %2132 = vst [vmem:[%s2920_s4 + $0x68] sm:$0xff] %v1997_v53   ;;  %v1992_v38 = vpack.c.bf16 %v971_v2, %v968_v27  ;;  %v1471_v39 = vadd.f32 %v1470_v33, %v971_v2  ;;  %v1542_v40 = vmul.f32 %v971_v2, %v971_v2  ;;  %v2764_v24 = vpop.f32.mrf.mxu1 }
 0x11a   :  { %v2237_v41 = vpop.f32.mrf.mxu0  ;;  %v2067_v28 = vpack.c.bf16 %v2764_v24, %v2751_v11  ;;  %v1550_v53 = vmul.f32 %v2648_v22, %v2648_v22 }
 0x11b   :  { %2131 = vst [vmem:[%s2920_s4 + $0x60] sm:$0xff] %v1992_v38   ;;  %v1472_v45 = vadd.f32 %v2233_v21, %v1471_v39  ;;  %v1605_v46 = vadd.f32 %v1604_v36, %v1542_v40  ;;  %v1547_v19 = vmul.f32 %v2237_v41, %v2237_v41  ;;  %v2768_v29 = vpop.f32.mrf.mxu1  ;;  %v1552_v40 = vmul.f32 %v2644_v3, %v2644_v3 }
 0x11c   :  { %v984_v47 = vpop.f32.mrf.mxu0  ;;  %2146 = vst [vmem:[%s2920_s4 + $0xd8] sm:$0xff] %v2067_v28   ;;  %v2062_v33 = vpack.c.bf16 %v2768_v29, %v2759_v7 }
 0x11d   :  { %v1606_v54 = vadd.f32 %v1605_v46, %v1543_v43  ;;  %v1473_v55 = vadd.f32 %v2234_v31, %v1472_v45  ;;  %v1545_v62 = vmul.f32 %v984_v47, %v984_v47  ;;  %v2778_v34 = vpop.f32.mrf.mxu1 }
 0x11e   :  { %v2238_v25 = vpop.f32.mrf.mxu0  ;;  %2145 = vst [vmem:[%s2920_s4 + $0xd0] sm:$0xff] %v2062_v33  }
 0x11f   :  { %v1474_v61 = vadd.f32 %v1473_v55, %v984_v47  ;;  %v1607_v63 = vadd.f32 %v1606_v54, %v1544_v49  ;;  %v2007_v1 = vpack.c.bf16 %v2238_v25, %v2237_v41  ;;  %v1548_v26 = vmul.f32 %v2238_v25, %v2238_v25 }
 0x120   :  { %v987_v8 = vpop.f32.mrf.mxu0 }
 0x121   :  { %v1608_v14 = vadd.f32 %v1607_v63, %v1545_v62  ;;  %2134 = vst [vmem:[%s2920_s4 + $0x78] sm:$0xff] %v2007_v1   ;;  %v2002_v15 = vpack.c.bf16 %v987_v8, %v984_v47  ;;  %v1475_v17 = vadd.f32 %v1474_v61, %v987_v8  ;;  %v1546_v58 = vmul.f32 %v987_v8, %v987_v8 }
 0x122   :  { %v1553_v47 = vmul.f32 %v2663_v32, %v2663_v32  ;;  %v1556_v1 = vmul.f32 %v2668_v35, %v2668_v35 }
 0x123   :  { %2133 = vst [vmem:[%s2920_s4 + $0x70] sm:$0xff] %v2002_v15   ;;  %v1476_v20 = vadd.f32 %v2237_v41, %v1475_v17  ;;  %v1609_v21 = vadd.f32 %v1608_v14, %v1546_v58  ;;  %v1557_v17 = vmul.f32 %v2687_v51, %v2687_v51 }
 0x125   :  { %v1477_v60 = vadd.f32 %v2238_v25, %v1476_v20  ;;  %v1610_v27 = vadd.f32 %v1609_v21, %v1547_v19  ;;  %v1555_v25 = vmul.f32 %v2655_v12, %v2655_v12  ;;  %v1558_v20 = vmul.f32 %v2696_v4, %v2696_v4 }
 0x127   :  { %v1611_v30 = vadd.f32 %v1610_v27, %v1548_v26  ;;  %v1478_v31 = vadd.f32 %v1477_v60, %v2639_v13  ;;  %v2786_v13 = vpop.f32.mrf.mxu1  ;;  %v1560_v60 = vmul.f32 %v2692_v57, %v2692_v57 }
 0x129   :  { %v1479_v50 = vadd.f32 %v1478_v31, %v2648_v22  ;;  %v1612_v2 = vadd.f32 %v1611_v30, %v1549_v5  ;;  %v2791_v39 = vpop.f32.mrf.mxu1 }
 0x12a   :  { %v2077_v43 = vpack.c.bf16 %v2791_v39, %v2778_v34 }
 0x12b   :  { %v1480_v36 = vadd.f32 %v2634_v0, %v1479_v50  ;;  %v1613_v38 = vadd.f32 %v1612_v2, %v1550_v53  ;;  %v2798_v45 = vpop.f32.mrf.mxu1  ;;  %v1562_v50 = vmul.f32 %v2720_v10, %v2720_v10 }
 0x12c   :  { %2148 = vst [vmem:[%s2920_s4 + $0xe8] sm:$0xff] %v2077_v43   ;;  %v2072_v49 = vpack.c.bf16 %v2798_v45, %v2786_v13 }
 0x12d   :  { %v1614_v41 = vadd.f32 %v1613_v38, %v1551_v6  ;;  %v1481_v22 = vadd.f32 %v2644_v3, %v1480_v36  ;;  %v2808_v54 = vpop.f32.mrf.mxu1  ;;  %v1565_v38 = vmul.f32 %v2735_v42, %v2735_v42 }
 0x12e   :  { %2147 = vst [vmem:[%s2920_s4 + $0xe0] sm:$0xff] %v2072_v49   ;;  %v1569_v49 = vmul.f32 %v2759_v7, %v2759_v7 }
 0x12f   :  { %v1482_v46 = vadd.f32 %v1481_v22, %v2663_v32  ;;  %v1615_v0 = vadd.f32 %v1614_v41, %v1552_v40  ;;  %v2816_v32 = vpop.f32.mrf.mxu1  ;;  %v1566_v22 = vmul.f32 %v2744_v59, %v2744_v59 }
 0x131   :  { %v1616_v3 = vadd.f32 %v1615_v0, %v1553_v47  ;;  %v1483_v55 = vadd.f32 %v1482_v46, %v2672_v37  ;;  %v2821_v63 = vpop.f32.mrf.mxu1 }
 0x132   :  { %v2087_v9 = vpack.c.bf16 %v2821_v63, %v2808_v54 }
 0x133   :  { %v1484_v61 = vadd.f32 %v2655_v12, %v1483_v55  ;;  %v1617_v62 = vadd.f32 %v1616_v3, %v1554_v56  ;;  %v2828_v14 = vpop.f32.mrf.mxu1  ;;  %v1570_v56 = vmul.f32 %v2768_v29, %v2768_v29 }
 0x134   :  { %2150 = vst [vmem:[%s2920_s4 + $0xf8] sm:$0xff] %v2087_v9   ;;  %v2082_v58 = vpack.c.bf16 %v2828_v14, %v2816_v32 }
 0x135   :  { %v1618_v8 = vadd.f32 %v1617_v62, %v1555_v25  ;;  %v1485_v37 = vadd.f32 %v2668_v35, %v1484_v61 }
 0x136   :  { %2149 = vst [vmem:[%s2920_s4 + $0xf0] sm:$0xff] %v2082_v58  }
 0x137   :  { %v1486_v15 = vadd.f32 %v1485_v37, %v2687_v51  ;;  %v1619_v12 = vadd.f32 %v1618_v8, %v1556_v1  ;;  %v1559_v51 = vmul.f32 %v2679_v44, %v2679_v44  ;;  %v1573_v8 = vmul.f32 %v2786_v13, %v2786_v13 }
 0x139   :  { %v1620_v19 = vadd.f32 %v1619_v12, %v1557_v17  ;;  %v1487_v35 = vadd.f32 %v1486_v15, %v2696_v4  ;;  %v1561_v4 = vmul.f32 %v2711_v23, %v2711_v23  ;;  %v1574_v15 = vmul.f32 %v2798_v45, %v2798_v45 }
 0x13b   :  { %v1488_v21 = vadd.f32 %v2679_v44, %v1487_v35  ;;  %v1621_v26 = vadd.f32 %v1620_v19, %v1558_v20  ;;  %v1563_v44 = vmul.f32 %v2703_v18, %v2703_v18  ;;  %v1577_v35 = vmul.f32 %v2816_v32, %v2816_v32 }
 0x13d   :  { %v1622_v27 = vadd.f32 %v1621_v26, %v1559_v51  ;;  %v1489_v28 = vadd.f32 %v2692_v57, %v1488_v21  ;;  %v1564_v57 = vmul.f32 %v2716_v52, %v2716_v52  ;;  %v1578_v21 = vmul.f32 %v2828_v14, %v2828_v14 }
 0x13f   :  { %v1490_v5 = vadd.f32 %v1489_v28, %v2711_v23  ;;  %v1623_v30 = vadd.f32 %v1622_v27, %v1560_v60 }
 0x141   :  { %v1624_v31 = vadd.f32 %v1623_v30, %v1561_v4  ;;  %v1491_v33 = vadd.f32 %v1490_v5, %v2720_v10 }
 0x143   :  { %v1492_v53 = vadd.f32 %v2703_v18, %v1491_v33  ;;  %v1625_v2 = vadd.f32 %v1624_v31, %v1562_v50  ;;  %v1567_v18 = vmul.f32 %v2727_v16, %v2727_v16 }
 0x145   :  { %v1626_v6 = vadd.f32 %v1625_v2, %v1563_v44  ;;  %v1493_v36 = vadd.f32 %v2716_v52, %v1492_v53  ;;  %v1568_v52 = vmul.f32 %v2740_v48, %v2740_v48 }
 0x147   :  { %v1494_v23 = vadd.f32 %v1493_v36, %v2735_v42  ;;  %v1627_v40 = vadd.f32 %v1626_v6, %v1564_v57 }
 0x149   :  { %v1628_v41 = vadd.f32 %v1627_v40, %v1565_v38  ;;  %v1495_v10 = vadd.f32 %v1494_v23, %v2744_v59 }
 0x14b   :  { %v1496_v43 = vadd.f32 %v2727_v16, %v1495_v10  ;;  %v1629_v46 = vadd.f32 %v1628_v41, %v1566_v22  ;;  %v1571_v16 = vmul.f32 %v2751_v11, %v2751_v11 }
 0x14d   :  { %v1630_v47 = vadd.f32 %v1629_v46, %v1567_v18  ;;  %v1497_v0 = vadd.f32 %v2740_v48, %v1496_v43  ;;  %v1572_v48 = vmul.f32 %v2764_v24, %v2764_v24 }
 0x14f   :  { %v1498_v42 = vadd.f32 %v1497_v0, %v2759_v7  ;;  %v1631_v3 = vadd.f32 %v1630_v47, %v1568_v52 }
 0x151   :  { %v1632_v55 = vadd.f32 %v1631_v3, %v1569_v49  ;;  %v1499_v59 = vadd.f32 %v1498_v42, %v2768_v29 }
 0x153   :  { %v1500_v25 = vadd.f32 %v2751_v11, %v1499_v59  ;;  %v1633_v61 = vadd.f32 %v1632_v55, %v1570_v56  ;;  %v1575_v11 = vmul.f32 %v2778_v34, %v2778_v34 }
 0x155   :  { %v1634_v62 = vadd.f32 %v1633_v61, %v1571_v16  ;;  %v1501_v1 = vadd.f32 %v2764_v24, %v1500_v25  ;;  %v1576_v24 = vmul.f32 %v2791_v39, %v2791_v39 }
 0x157   :  { %v1502_v7 = vadd.f32 %v1501_v1, %v2786_v13  ;;  %v1635_v37 = vadd.f32 %v1634_v62, %v1572_v48 }
 0x159   :  { %v1636_v9 = vadd.f32 %v1635_v37, %v1573_v8  ;;  %v1503_v29 = vadd.f32 %v1502_v7, %v2798_v45 }
 0x15b   :  { %v1504_v17 = vadd.f32 %v2778_v34, %v1503_v29  ;;  %v1637_v12 = vadd.f32 %v1636_v9, %v1574_v15  ;;  %v1579_v34 = vmul.f32 %v2808_v54, %v2808_v54 }
 0x15d   :  { %v1638_v58 = vadd.f32 %v1637_v12, %v1575_v11  ;;  %v1505_v19 = vadd.f32 %v2791_v39, %v1504_v17  ;;  %v1580_v39 = vmul.f32 %v2821_v63, %v2821_v63 }
 0x15f   :  { %v1506_v13 = vadd.f32 %v1505_v19, %v2816_v32  ;;  %v1639_v20 = vadd.f32 %v1638_v58, %v1576_v24 }
 0x161   :  { %v1640_v51 = vadd.f32 %v1639_v20, %v1577_v35  ;;  %v1507_v45 = vadd.f32 %v1506_v13, %v2828_v14 }
 0x163   :  { %v1508_v26 = vadd.f32 %v2808_v54, %v1507_v45  ;;  %v1641_v60 = vadd.f32 %v1640_v51, %v1578_v21 }
 0x165   :  { %v1509_v27 = vadd.f32 %v2821_v63, %v1508_v26  ;;  %v1642_v28 = vadd.f32 %v1641_v60, %v1579_v34 }
 0x167   :  { %v1510_v32 = vrot.slane %v1509_v27, 4  ;;  %v1643_v5 = vadd.f32 %v1642_v28, %v1580_v39 }
 0x169   :  { %v1511_v4 = vadd.f32 %v1510_v32, %v1509_v27  ;;  %v1644_v30 = vrot.slane %v1643_v5, 4 }
 0x16b   :  { %v1512_v31 = vrot.slane %v1511_v4, 2  ;;  %v1645_v33 = vadd.f32 %v1644_v30, %v1643_v5 }
 0x16d   :  { %v1513_v50 = vadd.f32 %v1512_v31, %v1511_v4  ;;  %v1646_v14 = vrot.slane %v1645_v33, 2 }
 0x16f   :  { %v1514_v44 = vrot.slane %v1513_v50, 1  ;;  %v1647_v53 = vadd.f32 %v1646_v14, %v1645_v33 }
 0x171   :  { %v1515_v2 = vadd.f32 %v1514_v44, %v1513_v50  ;;  %v1648_v57 = vrot.slane %v1647_v53, 1 }
 0x173   :  { %1516 = vst [vmem:[%s2921_s5] sm:$0x1] %v1515_v2  ;;  %v1649_v54 = vadd.f32 %v1648_v57, %v1647_v53 }
 0x175   :  { %1650 = vst [vmem:[%s2922_s6] sm:$0x1] %v1649_v54 }

// kernel: preact_bottleneck_forward.8
= control target key start
LH: loop header
LB: loop body
LE: loop exit
PB: predicated region body
PF: predicated region fallthrough
CT: control target
= control target key end

     0   :  { %s2981_s1 = inlined_call_operand.vmem [shape: bf16[1152,128], index: 1, kind: input, shape index: {}]   ;;  %s2982_s0 = inlined_call_operand.vmem [shape: bf16[128,1152], index: 0, kind: input, shape index: {}]   ;;  %s2983_s2 = inlined_call_operand.vmem [shape: bf16[128,128], index: 2, kind: output, shape index: {0}]   ;;  %s2984_s3 = inlined_call_operand.vmem [shape: f32[1,128], index: 3, kind: output, shape index: {1}]   ;;  %s2985_s4 = inlined_call_operand.vmem [shape: f32[1,128], index: 4, kind: output, shape index: {2}]  }
   0x1   :  { %v2219_v0 = vld [vmem:[%s2981_s1 + $0x78] sm:$0xff]   ;;  %v2223_v4 = vld [vmem:[%s2981_s1 + $0x70] sm:$0xff]   ;;  %v2227_v8 = vld [vmem:[%s2981_s1 + $0x68] sm:$0xff]  }
   0x2   :  { %v2220_v1 = vld [vmem:[%s2981_s1 + $0xf8] sm:$0xff]   ;;  %1899 = vmatprep.subr.bf16.mxu0 %v2219_v0  ;;  %v2224_v5 = vld [vmem:[%s2981_s1 + $0xf0] sm:$0xff]   ;;  %v2228_v9 = vld [vmem:[%s2981_s1 + $0xe8] sm:$0xff]  }
   0x3   :  { %v2221_v2 = vld [vmem:[%s2981_s1 + $0x38] sm:$0xff]   ;;  %1963 = vmatprep.subr.bf16.mxu1 %v2220_v1  ;;  %v2225_v6 = vld [vmem:[%s2981_s1 + $0x30] sm:$0xff]   ;;  %v2229_v10 = vld [vmem:[%s2981_s1 + $0x28] sm:$0xff]  }
   0x4   :  { %v2222_v3 = vld [vmem:[%s2981_s1 + $0xb8] sm:$0xff]   ;;  %1900 = vmatpush3.bf16.msra.mxu0 %v2221_v2  ;;  %v2226_v7 = vld [vmem:[%s2981_s1 + $0xb0] sm:$0xff]   ;;  %v2230_v11 = vld [vmem:[%s2981_s1 + $0xa8] sm:$0xff]  }
   0x5   :  { %1964 = vmatpush3.bf16.msra.mxu1 %v2222_v3  ;;  %1901 = vmatprep.subr.bf16.mxu0 %v2223_v4  ;;  %v2231_v12 = vld [vmem:[%s2981_s1 + $0x60] sm:$0xff]   ;;  %v2235_v16 = vld [vmem:[%s2981_s1 + $0x58] sm:$0xff]   ;;  %v2239_v20 = vld [vmem:[%s2981_s1 + $0x50] sm:$0xff]  }
   0x6   :  { %1965 = vmatprep.subr.bf16.mxu1 %v2224_v5  ;;  %v2232_v13 = vld [vmem:[%s2981_s1 + $0xe0] sm:$0xff]   ;;  %v2236_v17 = vld [vmem:[%s2981_s1 + $0xd8] sm:$0xff]   ;;  %v2240_v21 = vld [vmem:[%s2981_s1 + $0xd0] sm:$0xff]  }
   0x7   :  { %v2233_v14 = vld [vmem:[%s2981_s1 + $0x20] sm:$0xff]   ;;  %v2237_v18 = vld [vmem:[%s2981_s1 + $0x18] sm:$0xff]   ;;  %v2241_v22 = vld [vmem:[%s2981_s1 + $0x10] sm:$0xff]  }
   0x8   :  { %1902 = vmatpush3.bf16.msra.mxu0 %v2225_v6  ;;  %v2234_v15 = vld [vmem:[%s2981_s1 + $0xa0] sm:$0xff]   ;;  %v2238_v19 = vld [vmem:[%s2981_s1 + $0x98] sm:$0xff]   ;;  %v2242_v23 = vld [vmem:[%s2981_s1 + $0x90] sm:$0xff]  }
   0x9   :  { %1966 = vmatpush3.bf16.msra.mxu1 %v2226_v7  ;;  %1903 = vmatprep.subr.bf16.mxu0 %v2227_v8  ;;  %v2243_v24 = vld [vmem:[%s2981_s1 + $0x48] sm:$0xff]   ;;  %v2247_v28 = vld [vmem:[%s2981_s1 + $0x40] sm:$0xff]   ;;  %v2257_v36 = vld [vmem:[%s2981_s1 + $0x178] sm:$0xff]  }
   0xa   :  { %1967 = vmatprep.subr.bf16.mxu1 %v2228_v9  ;;  %v2244_v25 = vld [vmem:[%s2981_s1 + $0xc8] sm:$0xff]   ;;  %v2248_v29 = vld [vmem:[%s2981_s1 + $0xc0] sm:$0xff]   ;;  %v2258_v37 = vld [vmem:[%s2981_s1 + $0x138] sm:$0xff]  }
   0xb   :  { %v2245_v26 = vld [vmem:[%s2981_s1 + $0x8] sm:$0xff]   ;;  %v2249_v30 = vld [vmem:[%s2981_s1] sm:$0xff]   ;;  %v2261_v39 = vld [vmem:[%s2982_s0 + $0x54] ss:$36 sps:$4 sm:$0xff]  }
   0xc   :  { %1904 = vmatpush3.bf16.msra.mxu0 %v2229_v10  ;;  %v2246_v27 = vld [vmem:[%s2981_s1 + $0x88] sm:$0xff]   ;;  %v2250_v31 = vld [vmem:[%s2981_s1 + $0x80] sm:$0xff]   ;;  %v2264_v41 = vld [vmem:[%s2982_s0 + $0x50] ss:$36 sps:$4 sm:$0xff]  }
   0xd   :  { %1968 = vmatpush3.bf16.msra.mxu1 %v2230_v11  ;;  %1905 = vmatprep.subr.bf16.mxu0 %v2231_v12  ;;  %v2251_v32 = vld [vmem:[%s2982_s0] ss:$36 sps:$4 sm:$0xff]   ;;  %v2254_v34 = vld [vmem:[%s2982_s0 + $0x8] ss:$36 sps:$4 sm:$0xff]   ;;  %v2265_v42 = vld [vmem:[%s2981_s1 + $0x170] sm:$0xff]  }
   0xe   :  { %1969 = vmatprep.subr.bf16.mxu1 %v2232_v13  ;;  %v2253_v33 = vld [vmem:[%s2982_s0 + $0x4] ss:$36 sps:$4 sm:$0xff]   ;;  %v2256_v35 = vld [vmem:[%s2982_s0 + $0xc] ss:$36 sps:$4 sm:$0xff]   ;;  %v2267_v44 = vld [vmem:[%s2982_s0 + $0x94] ss:$36 sps:$4 sm:$0xff]  }
   0xf   :  { %1071 = vmatprep.mubr.bf16.mxu0 %v2253_v33  ;;  %1168 = vmatprep.mubr.bf16.mxu1 %v2256_v35  ;;  %v2259_v38 = vld [vmem:[%s2982_s0 + $0x4c] ss:$36 sps:$4 sm:$0xff]   ;;  %v2269_v45 = vld [vmem:[%s2982_s0 + $0x9c] ss:$36 sps:$4 sm:$0xff]   ;;  %v2279_v53 = vld [vmem:[%s2982_s0 + $0xe4] ss:$36 sps:$4 sm:$0xff]  }
  0x10   :  { %1906 = vmatpush3.bf16.msra.mxu0 %v2233_v14  ;;  %v2263_v40 = vld [vmem:[%s2982_s0 + $0x48] ss:$36 sps:$4 sm:$0xff]   ;;  %v2266_v43 = vld [vmem:[%s2981_s1 + $0x130] sm:$0xff]   ;;  %v2274_v47 = vld [vmem:[%s2981_s1 + $0x1f8] sm:$0xff]  }
  0x11   :  { %1970 = vmatpush3.bf16.msra.mxu1 %v2234_v15  ;;  %1907 = vmatprep.subr.bf16.mxu0 %v2235_v16  ;;  %v2273_v46 = vld [vmem:[%s2981_s1 + $0x168] sm:$0xff]   ;;  %v2271_v48 = vld [vmem:[%s2982_s0 + $0x90] ss:$36 sps:$4 sm:$0xff]   ;;  %v2276_v50 = vld [vmem:[%s2981_s1 + $0x1b8] sm:$0xff]  }
  0x12   :  { %1971 = vmatprep.subr.bf16.mxu1 %v2236_v17  ;;  %v2275_v49 = vld [vmem:[%s2981_s1 + $0x128] sm:$0xff]   ;;  %v2272_v51 = vld [vmem:[%s2982_s0 + $0x98] ss:$36 sps:$4 sm:$0xff]   ;;  %v2283_v54 = vld [vmem:[%s2981_s1 + $0x160] sm:$0xff]  }
  0x13   :  { %v2277_v52 = vld [vmem:[%s2982_s0 + $0xdc] ss:$36 sps:$4 sm:$0xff]   ;;  %v2284_v55 = vld [vmem:[%s2981_s1 + $0x1f0] sm:$0xff]   ;;  %v2287_v60 = vld [vmem:[%s2982_s0 + $0x124] ss:$36 sps:$4 sm:$0xff]  }
  0x14   :  { %1908 = vmatpush3.bf16.msra.mxu0 %v2237_v18  ;;  %v2285_v56 = vld [vmem:[%s2981_s1 + $0x120] sm:$0xff]   ;;  %v2286_v57 = vld [vmem:[%s2981_s1 + $0x1b0] sm:$0xff]   ;;  %v2281_v58 = vld [vmem:[%s2982_s0 + $0xd8] ss:$36 sps:$4 sm:$0xff]  }
  0x15   :  { %1972 = vmatpush3.bf16.msra.mxu1 %v2238_v19  ;;  %1909 = vmatprep.subr.bf16.mxu0 %v2239_v20  ;;  %v2282_v59 = vld [vmem:[%s2982_s0 + $0xe0] ss:$36 sps:$4 sm:$0xff]   ;;  %v2289_v61 = vld [vmem:[%s2982_s0 + $0x12c] ss:$36 sps:$4 sm:$0xff]   ;;  %v2293_v62 = vld [vmem:[%s2981_s1 + $0x158] sm:$0xff]  }
  0x16   :  { %1973 = vmatprep.subr.bf16.mxu1 %v2240_v21  ;;  %v2294_v63 = vld [vmem:[%s2981_s1 + $0x1e8] sm:$0xff]   ;;  %v2295_v0 = vld [vmem:[%s2981_s1 + $0x118] sm:$0xff]   ;;  %v2291_v2 = vld [vmem:[%s2982_s0 + $0x120] ss:$36 sps:$4 sm:$0xff]  }
  0x17   :  { %v2296_v1 = vld [vmem:[%s2981_s1 + $0x1a8] sm:$0xff]   ;;  %v2299_v5 = vld [vmem:[%s2982_s0 + $0x174] ss:$36 sps:$4 sm:$0xff]   ;;  %v2304_v7 = vld [vmem:[%s2981_s1 + $0x1e0] sm:$0xff]  }
  0x18   :  { %1910 = vmatpush3.bf16.msra.mxu0 %v2241_v22  ;;  %v2292_v3 = vld [vmem:[%s2982_s0 + $0x128] ss:$36 sps:$4 sm:$0xff]   ;;  %v2303_v6 = vld [vmem:[%s2981_s1 + $0x150] sm:$0xff]   ;;  %v2306_v9 = vld [vmem:[%s2981_s1 + $0x1a0] sm:$0xff]  }
  0x19   :  { %1974 = vmatpush3.bf16.msra.mxu1 %v2242_v23  ;;  %1911 = vmatprep.subr.bf16.mxu0 %v2243_v24  ;;  %v2297_v4 = vld [vmem:[%s2982_s0 + $0x16c] ss:$36 sps:$4 sm:$0xff]   ;;  %v2307_v12 = vld [vmem:[%s2982_s0 + $0x1b4] ss:$36 sps:$4 sm:$0xff]   ;;  %v2309_v14 = vld [vmem:[%s2982_s0 + $0x1bc] ss:$36 sps:$4 sm:$0xff]  }
  0x1a   :  { %1975 = vmatprep.subr.bf16.mxu1 %v2244_v25  ;;  %v2305_v8 = vld [vmem:[%s2981_s1 + $0x110] sm:$0xff]   ;;  %v2301_v10 = vld [vmem:[%s2982_s0 + $0x168] ss:$36 sps:$4 sm:$0xff]   ;;  %v2314_v15 = vld [vmem:[%s2981_s1 + $0x1d8] sm:$0xff]  }
  0x1b   :  { %v2302_v11 = vld [vmem:[%s2982_s0 + $0x170] ss:$36 sps:$4 sm:$0xff]   ;;  %v2313_v13 = vld [vmem:[%s2981_s1 + $0x148] sm:$0xff]   ;;  %v2316_v17 = vld [vmem:[%s2981_s1 + $0x198] sm:$0xff]  }
  0x1c   :  { %1912 = vmatpush3.bf16.msra.mxu0 %v2245_v26  ;;  %v2315_v16 = vld [vmem:[%s2981_s1 + $0x108] sm:$0xff]   ;;  %v2317_v18 = vld [vmem:[%s2981_s1 + $0x1d0] sm:$0xff]   ;;  %v2312_v21 = vld [vmem:[%s2982_s0 + $0x1b8] ss:$36 sps:$4 sm:$0xff]  }
  0x1d   :  { %1976 = vmatpush3.bf16.msra.mxu1 %v2246_v27  ;;  %1913 = vmatprep.subr.bf16.mxu0 %v2247_v28  ;;  %v2318_v19 = vld [vmem:[%s2981_s1 + $0x190] sm:$0xff]   ;;  %v2319_v22 = vld [vmem:[%s2982_s0 + $0x1fc] ss:$36 sps:$4 sm:$0xff]   ;;  %v2321_v23 = vld [vmem:[%s2982_s0 + $0x204] ss:$36 sps:$4 sm:$0xff]  }
  0x1e   :  { %1977 = vmatprep.subr.bf16.mxu1 %v2248_v29  ;;  %v2311_v20 = vld [vmem:[%s2982_s0 + $0x1b0] ss:$36 sps:$4 sm:$0xff]   ;;  %v2325_v24 = vld [vmem:[%s2981_s1 + $0x140] sm:$0xff]   ;;  %v2326_v25 = vld [vmem:[%s2981_s1 + $0x1c8] sm:$0xff]  }
  0x1f   :  { %v2327_v26 = vld [vmem:[%s2981_s1 + $0x100] sm:$0xff]   ;;  %v2328_v27 = vld [vmem:[%s2981_s1 + $0x188] sm:$0xff]   ;;  %v2323_v29 = vld [vmem:[%s2982_s0 + $0x1f8] ss:$36 sps:$4 sm:$0xff]  }
  0x20   :  { %1914 = vmatpush3.bf16.msra.mxu0 %v2249_v30  ;;  %v2329_v28 = vld [vmem:[%s2981_s1 + $0x1c0] sm:$0xff]   ;;  %v2333_v33 = vld [vmem:[%s2982_s0 + $0x14] ss:$36 sps:$4 sm:$0xff]  }
  0x21   :  { %1978 = vmatpush3.bf16.msra.mxu1 %v2250_v31  ;;  %2027 = vmatprep.subr.bf16.mxu0 %v2257_v36  ;;  %v2324_v30 = vld [vmem:[%s2982_s0 + $0x200] ss:$36 sps:$4 sm:$0xff]   ;;  %v2331_v35 = vld [vmem:[%s2982_s0 + $0x10] ss:$36 sps:$4 sm:$0xff]   ;;  %v2334_v36 = vld [vmem:[%s2982_s0 + $0x18] ss:$36 sps:$4 sm:$0xff]  }
  0x22   :  { %2091 = vmatprep.subr.bf16.mxu1 %v2274_v47  ;;  %v2330_v31 = vld [vmem:[%s2981_s1 + $0x180] sm:$0xff]  }
  0x23   :  { %1072 = vmatmul.mubr.bf16.vlgmr.msra.gmra.mxu0 %v2251_v32  ;;  %v2337_v32 = vld [vmem:[%s2981_s1 + $0x238] sm:$0xff]   ;;  %v2349_v47 = vld [vmem:[%s2982_s0 + $0xa0] ss:$36 sps:$4 sm:$0xff]  }
  0x24   :  { %1169 = vmatmul.mubr.bf16.vlgmr.msra.gmra.mxu1 %v2254_v34  ;;  %2028 = vmatpush3.bf16.msra.mxu0 %v2258_v37  ;;  %v2336_v34 = vld [vmem:[%s2982_s0 + $0x1c] ss:$36 sps:$4 sm:$0xff]  }
  0x25   :  { %1079 = vmatprep.mubr.bf16.mxu0 %v2259_v38  ;;  %1176 = vmatprep.mubr.bf16.mxu1 %v2261_v39  ;;  %v2338_v37 = vld [vmem:[%s2982_s0 + $0x5c] ss:$36 sps:$4 sm:$0xff]   ;;  %v2340_v38 = vld [vmem:[%s2982_s0 + $0x64] ss:$36 sps:$4 sm:$0xff]   ;;  %v2344_v39 = vld [vmem:[%s2981_s1 + $0x230] sm:$0xff]  }
  0x26   :  { %2029 = vmatprep.subr.bf16.mxu0 %v2265_v42  ;;  %2092 = vmatpush3.bf16.msra.mxu1 %v2276_v50  ;;  %v2343_v42 = vld [vmem:[%s2982_s0 + $0x60] ss:$36 sps:$4 sm:$0xff]   ;;  %v2354_v50 = vld [vmem:[%s2982_s0 + $0xf4] ss:$36 sps:$4 sm:$0xff]  }
  0x27   :  { %2093 = vmatprep.subr.bf16.mxu1 %v2284_v55  ;;  %v2359_v55 = vld [vmem:[%s2982_s0 + $0x134] ss:$36 sps:$4 sm:$0xff]  }
  0x28   :  { %2030 = vmatpush3.bf16.msra.mxu0 %v2266_v43  ;;  %v2345_v43 = vld [vmem:[%s2982_s0 + $0xa4] ss:$36 sps:$4 sm:$0xff]  }
  0x29   :  { %2031 = vmatprep.subr.bf16.mxu0 %v2273_v46  ;;  %v2365_v46 = vld [vmem:[%s2981_s1 + $0x218] sm:$0xff]  }
  0x2a   :  { %2094 = vmatpush3.bf16.msra.mxu1 %v2286_v57  ;;  %v2386_v57 = vld [vmem:[%s2981_s1 + $0x200] sm:$0xff]  }
  0x2b   :  { %1080 = vmatmul.mubr.bf16.gmra.mxu0 %v2263_v40  ;;  %2095 = vmatprep.subr.bf16.mxu1 %v2294_v63  ;;  %v2351_v40 = vld [vmem:[%s2981_s1 + $0x228] sm:$0xff]   ;;  %v2371_v63 = vld [vmem:[%s2982_s0 + $0x180] ss:$36 sps:$4 sm:$0xff]  }
  0x2c   :  { %1177 = vmatmul.mubr.bf16.gmra.mxu1 %v2264_v41  ;;  %1087 = vmatprep.mubr.bf16.mxu0 %v2267_v44  ;;  %v2342_v41 = vld [vmem:[%s2982_s0 + $0x58] ss:$36 sps:$4 sm:$0xff]   ;;  %v2347_v44 = vld [vmem:[%s2982_s0 + $0xac] ss:$36 sps:$4 sm:$0xff]  }
  0x2d   :  { %1184 = vmatprep.mubr.bf16.mxu1 %v2269_v45  ;;  %2032 = vmatpush3.bf16.msra.mxu0 %v2275_v49  ;;  %v2358_v45 = vld [vmem:[%s2981_s1 + $0x220] sm:$0xff]   ;;  %v2352_v49 = vld [vmem:[%s2982_s0 + $0xec] ss:$36 sps:$4 sm:$0xff]  }
  0x2e   :  { %2033 = vmatprep.subr.bf16.mxu0 %v2283_v54  ;;  %2096 = vmatpush3.bf16.msra.mxu1 %v2296_v1  ;;  %v2357_v54 = vld [vmem:[%s2982_s0 + $0xf0] ss:$36 sps:$4 sm:$0xff]  }
  0x2f   :  { %2097 = vmatprep.subr.bf16.mxu1 %v2304_v7  ;;  %v2375_v1 = vld [vmem:[%s2982_s0 + $0x1cc] ss:$36 sps:$4 sm:$0xff]  }
  0x30   :  { %v2385_v7 = vld [vmem:[%s2982_s0 + $0x210] ss:$36 sps:$4 sm:$0xff]  }
  0x31   :  { %2034 = vmatpush3.bf16.msra.mxu0 %v2285_v56  ;;  %v2361_v56 = vld [vmem:[%s2982_s0 + $0x13c] ss:$36 sps:$4 sm:$0xff]  }
  0x32   :  { %2035 = vmatprep.subr.bf16.mxu0 %v2293_v62  ;;  %2098 = vmatpush3.bf16.msra.mxu1 %v2306_v9  ;;  %v2370_v62 = vld [vmem:[%s2982_s0 + $0x178] ss:$36 sps:$4 sm:$0xff]   ;;  %v2388_v9 = vld [vmem:[%s2982_s0 + $0x140] ss:$36 sps:$4 sm:$0xff]  }
  0x33   :  { %1088 = vmatmul.mubr.bf16.gmra.mxu0 %v2271_v48  ;;  %2099 = vmatprep.subr.bf16.mxu1 %v2314_v15  ;;  %v2350_v48 = vld [vmem:[%s2982_s0 + $0xa8] ss:$36 sps:$4 sm:$0xff]   ;;  %v2394_v15 = vld [vmem:[%s2982_s0 + $0x218] ss:$36 sps:$4 sm:$0xff]  }
  0x34   :  { %1185 = vmatmul.mubr.bf16.gmra.mxu1 %v2272_v51  ;;  %1095 = vmatprep.mubr.bf16.mxu0 %v2277_v52  ;;  %v2372_v51 = vld [vmem:[%s2981_s1 + $0x210] sm:$0xff]   ;;  %v2356_v52 = vld [vmem:[%s2982_s0 + $0xe8] ss:$36 sps:$4 sm:$0xff]  }
  0x35   :  { %1192 = vmatprep.mubr.bf16.mxu1 %v2279_v53  ;;  %2036 = vmatpush3.bf16.msra.mxu0 %v2295_v0  ;;  %v2379_v53 = vld [vmem:[%s2981_s1 + $0x208] sm:$0xff]  }
  0x36   :  { %2037 = vmatprep.subr.bf16.mxu0 %v2303_v6  ;;  %2100 = vmatpush3.bf16.msra.mxu1 %v2316_v17  ;;  %v2373_v0 = vld [vmem:[%s2982_s0 + $0x1c4] ss:$36 sps:$4 sm:$0xff]  }
  0x37   :  { %2101 = vmatprep.subr.bf16.mxu1 %v2317_v18  ;;  %v2384_v6 = vld [vmem:[%s2982_s0 + $0x208] ss:$36 sps:$4 sm:$0xff]  }
  0x39   :  { %2038 = vmatpush3.bf16.msra.mxu0 %v2305_v8  ;;  %v2387_v8 = vld [vmem:[%s2982_s0 + $0x20] ss:$36 sps:$4 sm:$0xff]  }
  0x3a   :  { %2039 = vmatprep.subr.bf16.mxu0 %v2313_v13  ;;  %2102 = vmatpush3.bf16.msra.mxu1 %v2318_v19  ;;  %v2392_v13 = vld [vmem:[%s2982_s0 + $0x1d0] ss:$36 sps:$4 sm:$0xff]  }
  0x3b   :  { %1096 = vmatmul.mubr.bf16.gmra.mxu0 %v2281_v58  ;;  %2103 = vmatprep.subr.bf16.mxu1 %v2326_v25  ;;  %v2363_v58 = vld [vmem:[%s2982_s0 + $0x130] ss:$36 sps:$4 sm:$0xff]  }
  0x3c   :  { %1193 = vmatmul.mubr.bf16.gmra.mxu1 %v2282_v59  ;;  %1103 = vmatprep.mubr.bf16.mxu0 %v2287_v60  ;;  %v2364_v59 = vld [vmem:[%s2982_s0 + $0x138] ss:$36 sps:$4 sm:$0xff]  }
  0x3d   :  { %1200 = vmatprep.mubr.bf16.mxu1 %v2289_v61  ;;  %2040 = vmatpush3.bf16.msra.mxu0 %v2315_v16  ;;  %v2366_v60 = vld [vmem:[%s2982_s0 + $0x17c] ss:$36 sps:$4 sm:$0xff]   ;;  %v2368_v61 = vld [vmem:[%s2982_s0 + $0x184] ss:$36 sps:$4 sm:$0xff]  }
  0x3e   :  { %2041 = vmatprep.subr.bf16.mxu0 %v2325_v24  ;;  %2104 = vmatpush3.bf16.msra.mxu1 %v2328_v27 }
  0x3f   :  { %2105 = vmatprep.subr.bf16.mxu1 %v2329_v28 }
  0x41   :  { %2042 = vmatpush3.bf16.msra.mxu0 %v2327_v26 }
  0x42   :  { %2171 = vmatprep.subr.bf16.mxu0 %v2337_v32  ;;  %2106 = vmatpush3.bf16.msra.mxu1 %v2330_v31 }
  0x43   :  { %1104 = vmatmul.mubr.bf16.gmra.mxu0 %v2291_v2  ;;  %2203 = vmatprep.subr.bf16.mxu1 %v2337_v32  ;;  %v2377_v2 = vld [vmem:[%s2982_s0 + $0x1c0] ss:$36 sps:$4 sm:$0xff]  }
  0x44   :  { %1201 = vmatmul.mubr.bf16.gmra.mxu1 %v2292_v3  ;;  %1111 = vmatprep.mubr.bf16.mxu0 %v2297_v4  ;;  %v2378_v3 = vld [vmem:[%s2982_s0 + $0x1c8] ss:$36 sps:$4 sm:$0xff]  }
  0x45   :  { %1208 = vmatprep.mubr.bf16.mxu1 %v2299_v5  ;;  %v2380_v4 = vld [vmem:[%s2982_s0 + $0x20c] ss:$36 sps:$4 sm:$0xff]   ;;  %v2382_v5 = vld [vmem:[%s2982_s0 + $0x214] ss:$36 sps:$4 sm:$0xff]  }
  0x4b   :  { %1112 = vmatmul.mubr.bf16.gmra.mxu0 %v2301_v10  ;;  %v2389_v10 = vld [vmem:[%s2982_s0 + $0x68] ss:$36 sps:$4 sm:$0xff]  }
  0x4c   :  { %1209 = vmatmul.mubr.bf16.gmra.mxu1 %v2302_v11  ;;  %1119 = vmatprep.mubr.bf16.mxu0 %v2307_v12  ;;  %v2390_v11 = vld [vmem:[%s2982_s0 + $0x188] ss:$36 sps:$4 sm:$0xff]   ;;  %v2391_v12 = vld [vmem:[%s2982_s0 + $0xb0] ss:$36 sps:$4 sm:$0xff]  }
  0x4d   :  { %1216 = vmatprep.mubr.bf16.mxu1 %v2309_v14  ;;  %v2393_v14 = vld [vmem:[%s2982_s0 + $0xf8] ss:$36 sps:$4 sm:$0xff]  }
  0x53   :  { %1120 = vmatmul.mubr.bf16.gmra.mxu0 %v2311_v20 }
  0x54   :  { %1217 = vmatmul.mubr.bf16.gmra.mxu1 %v2312_v21  ;;  %1127 = vmatprep.mubr.bf16.mxu0 %v2319_v22 }
  0x55   :  { %1224 = vmatprep.mubr.bf16.mxu1 %v2321_v23 }
  0x5b   :  { %1128 = vmatmul.mubr.bf16.gmra.mxu0 %v2323_v29 }
  0x5c   :  { %1225 = vmatmul.mubr.bf16.gmra.mxu1 %v2324_v30  ;;  %1265 = vmatprep.mubr.bf16.mxu0 %v2333_v33 }
  0x5d   :  { %1362 = vmatprep.mubr.bf16.mxu1 %v2336_v34 }
  0x63   :  { %1266 = vmatmul.mubr.bf16.vlgmr.msra.gmra.mxu0 %v2331_v35 }
  0x64   :  { %1363 = vmatmul.mubr.bf16.vlgmr.msra.gmra.mxu1 %v2334_v36  ;;  %2172 = vmatpush3.bf16.msra.mxu0 %v2337_v32 }
  0x65   :  { %1273 = vmatprep.mubr.bf16.mxu0 %v2338_v37  ;;  %1370 = vmatprep.mubr.bf16.mxu1 %v2340_v38 }
  0x66   :  { %2173 = vmatprep.subr.bf16.mxu0 %v2344_v39  ;;  %2211 = vmatpush3.bf16.msra.mxu1 %v2337_v32 }
  0x67   :  { %2204 = vmatprep.subr.bf16.mxu1 %v2344_v39 }
  0x68   :  { %2174 = vmatpush3.bf16.msra.mxu0 %v2344_v39 }
  0x69   :  { %2175 = vmatprep.subr.bf16.mxu0 %v2351_v40 }
  0x6a   :  { %2212 = vmatpush3.bf16.msra.mxu1 %v2344_v39 }
  0x6b   :  { %1274 = vmatmul.mubr.bf16.gmra.mxu0 %v2342_v41  ;;  %2205 = vmatprep.subr.bf16.mxu1 %v2351_v40 }
  0x6c   :  { %1371 = vmatmul.mubr.bf16.gmra.mxu1 %v2343_v42  ;;  %1281 = vmatprep.mubr.bf16.mxu0 %v2345_v43 }
  0x6d   :  { %1378 = vmatprep.mubr.bf16.mxu1 %v2347_v44  ;;  %2176 = vmatpush3.bf16.msra.mxu0 %v2351_v40 }
  0x6e   :  { %2177 = vmatprep.subr.bf16.mxu0 %v2358_v45  ;;  %2213 = vmatpush3.bf16.msra.mxu1 %v2351_v40 }
  0x6f   :  { %2206 = vmatprep.subr.bf16.mxu1 %v2358_v45 }
  0x71   :  { %2178 = vmatpush3.bf16.msra.mxu0 %v2358_v45 }
  0x72   :  { %2179 = vmatprep.subr.bf16.mxu0 %v2365_v46  ;;  %2214 = vmatpush3.bf16.msra.mxu1 %v2358_v45 }
  0x73   :  { %1282 = vmatmul.mubr.bf16.gmra.mxu0 %v2349_v47  ;;  %2207 = vmatprep.subr.bf16.mxu1 %v2365_v46 }
  0x74   :  { %1379 = vmatmul.mubr.bf16.gmra.mxu1 %v2350_v48  ;;  %1289 = vmatprep.mubr.bf16.mxu0 %v2352_v49 }
  0x75   :  { %1386 = vmatprep.mubr.bf16.mxu1 %v2354_v50  ;;  %2180 = vmatpush3.bf16.msra.mxu0 %v2365_v46 }
  0x76   :  { %2181 = vmatprep.subr.bf16.mxu0 %v2372_v51  ;;  %2215 = vmatpush3.bf16.msra.mxu1 %v2365_v46 }
  0x77   :  { %2208 = vmatprep.subr.bf16.mxu1 %v2372_v51 }
  0x79   :  { %2182 = vmatpush3.bf16.msra.mxu0 %v2372_v51 }
  0x7a   :  { %2183 = vmatprep.subr.bf16.mxu0 %v2379_v53  ;;  %2216 = vmatpush3.bf16.msra.mxu1 %v2372_v51 }
  0x7b   :  { %1290 = vmatmul.mubr.bf16.gmra.mxu0 %v2356_v52  ;;  %2209 = vmatprep.subr.bf16.mxu1 %v2379_v53 }
  0x7c   :  { %1387 = vmatmul.mubr.bf16.gmra.mxu1 %v2357_v54  ;;  %1297 = vmatprep.mubr.bf16.mxu0 %v2359_v55 }
  0x7d   :  { %1394 = vmatprep.mubr.bf16.mxu1 %v2361_v56  ;;  %2184 = vmatpush3.bf16.msra.mxu0 %v2379_v53 }
  0x7e   :  { %2185 = vmatprep.subr.bf16.mxu0 %v2386_v57  ;;  %2217 = vmatpush3.bf16.msra.mxu1 %v2379_v53 }
  0x7f   :  { %2210 = vmatprep.subr.bf16.mxu1 %v2386_v57 }
  0x81   :  { %2186 = vmatpush3.bf16.msra.mxu0 %v2386_v57 }
  0x82   :  { %2218 = vmatpush3.bf16.msra.mxu1 %v2386_v57 }
  0x83   :  { %1298 = vmatmul.mubr.bf16.gmra.mxu0 %v2363_v58 }
  0x84   :  { %1395 = vmatmul.mubr.bf16.gmra.mxu1 %v2364_v59  ;;  %1305 = vmatprep.mubr.bf16.mxu0 %v2366_v60 }
  0x85   :  { %1402 = vmatprep.mubr.bf16.mxu1 %v2368_v61 }
  0x8b   :  { %1306 = vmatmul.mubr.bf16.gmra.mxu0 %v2370_v62 }
  0x8c   :  { %1403 = vmatmul.mubr.bf16.gmra.mxu1 %v2371_v63  ;;  %1313 = vmatprep.mubr.bf16.mxu0 %v2373_v0 }
  0x8d   :  { %1410 = vmatprep.mubr.bf16.mxu1 %v2375_v1 }
  0x93   :  { %1314 = vmatmul.mubr.bf16.gmra.mxu0 %v2377_v2 }
  0x94   :  { %1411 = vmatmul.mubr.bf16.gmra.mxu1 %v2378_v3  ;;  %1321 = vmatprep.mubr.bf16.mxu0 %v2380_v4 }
  0x95   :  { %1418 = vmatprep.mubr.bf16.mxu1 %v2382_v5 }
  0x9b   :  { %1322 = vmatmul.mubr.bf16.gmra.mxu0 %v2384_v6 }
  0x9c   :  { %1419 = vmatmul.mubr.bf16.gmra.mxu1 %v2385_v7  ;;  %2187 = vmatprep.mubr.bf16.mxu0 %v2387_v8 }
  0x9d   :  { %2195 = vmatprep.mubr.bf16.mxu1 %v2388_v9 }
  0xa3   :  { %2188 = vmatmul.mubr.bf16.vlgmr.msra.gmra.mxu0 %v2389_v10 }
  0xa4   :  { %2196 = vmatmul.mubr.bf16.vlgmr.msra.gmra.mxu1 %v2390_v11  ;;  %2191 = vmatprep.mubr.bf16.mxu0 %v2391_v12 }
  0xa5   :  { %2199 = vmatprep.mubr.bf16.mxu1 %v2392_v13 }
  0xab   :  { %2192 = vmatmul.mubr.bf16.gmra.mxu0 %v2393_v14 }
  0xac   :  { %2200 = vmatmul.mubr.bf16.gmra.mxu1 %v2394_v15 }
  0xe3   :  { %v1915_v16 = vpop.f32.mrf.mxu0 }
  0xe4   :  { %v1979_v17 = vpop.f32.mrf.mxu1 }
  0xe5   :  { %v1916_v18 = vpop.f32.mrf.mxu0 }
  0xe6   :  { %v1917_v19 = vadd.f32 %v1916_v18, %v1915_v16  ;;  %v1980_v20 = vpop.f32.mrf.mxu1 }
  0xe7   :  { %v1981_v21 = vadd.f32 %v1980_v20, %v1979_v17  ;;  %v1918_v22 = vpop.f32.mrf.mxu0 }
  0xe8   :  { %v1982_v23 = vpop.f32.mrf.mxu1 }
  0xe9   :  { %v2852_v24 = vadd.f32 %v1981_v21, %v1917_v19  ;;  %v1919_v25 = vpop.f32.mrf.mxu0 }
  0xea   :  { %v1920_v26 = vadd.f32 %v1919_v25, %v1918_v22  ;;  %v1983_v27 = vpop.f32.mrf.mxu1 }
  0xeb   :  { %v1984_v28 = vadd.f32 %v1983_v27, %v1982_v23  ;;  %v1921_v29 = vpop.f32.mrf.mxu0 }
  0xec   :  { %v1985_v30 = vpop.f32.mrf.mxu1 }
  0xed   :  { %v2854_v31 = vadd.f32 %v1984_v28, %v1920_v26  ;;  %v1922_v32 = vpop.f32.mrf.mxu0 }
  0xee   :  { %v1923_v33 = vadd.f32 %v1922_v32, %v1921_v29  ;;  %v1986_v34 = vpop.f32.mrf.mxu1 }
  0xef   :  { %v1987_v35 = vadd.f32 %v1986_v34, %v1985_v30  ;;  %v1924_v36 = vpop.f32.mrf.mxu0 }
  0xf0   :  { %v1988_v37 = vpop.f32.mrf.mxu1 }
  0xf1   :  { %v2856_v38 = vadd.f32 %v1987_v35, %v1923_v33  ;;  %v1925_v39 = vpop.f32.mrf.mxu0 }
  0xf2   :  { %v1926_v40 = vadd.f32 %v1925_v39, %v1924_v36  ;;  %v1989_v41 = vpop.f32.mrf.mxu1 }
  0xf3   :  { %v1990_v42 = vadd.f32 %v1989_v41, %v1988_v37  ;;  %v1927_v43 = vpop.f32.mrf.mxu0 }
  0xf4   :  { %v1991_v44 = vpop.f32.mrf.mxu1 }
  0xf5   :  { %v2858_v45 = vadd.f32 %v1990_v42, %v1926_v40  ;;  %v1928_v46 = vpop.f32.mrf.mxu0 }
  0xf6   :  { %v1929_v47 = vadd.f32 %v1928_v46, %v1927_v43  ;;  %v1992_v48 = vpop.f32.mrf.mxu1 }
  0xf7   :  { %v1993_v49 = vadd.f32 %v1992_v48, %v1991_v44  ;;  %v1930_v50 = vpop.f32.mrf.mxu0 }
  0xf8   :  { %v1994_v51 = vpop.f32.mrf.mxu1 }
  0xf9   :  { %v2860_v52 = vadd.f32 %v1993_v49, %v1929_v47  ;;  %v1931_v53 = vpop.f32.mrf.mxu0 }
  0xfa   :  { %v1932_v54 = vadd.f32 %v1931_v53, %v1930_v50  ;;  %v1995_v55 = vpop.f32.mrf.mxu1 }
  0xfb   :  { %2986 = vst [vmem:[#allocation2_spill] sm:$0xff] %v2860_v52  ;;  %v1996_v56 = vadd.f32 %v1995_v55, %v1994_v51  ;;  %v1933_v57 = vpop.f32.mrf.mxu0 }
  0xfc   :  { %v1997_v58 = vpop.f32.mrf.mxu1 }
  0xfd   :  { %v2862_v59 = vadd.f32 %v1996_v56, %v1932_v54  ;;  %v1934_v60 = vpop.f32.mrf.mxu0 }
  0xfe   :  { %v1935_v61 = vadd.f32 %v1934_v60, %v1933_v57  ;;  %v1998_v62 = vpop.f32.mrf.mxu1 }
  0xff   :  { %2987 = vst [vmem:[#allocation3_spill] sm:$0xff] %v2862_v59  ;;  %v1999_v63 = vadd.f32 %v1998_v62, %v1997_v58  ;;  %v1936_v0 = vpop.f32.mrf.mxu0 }
 0x100   :  { %v2000_v1 = vpop.f32.mrf.mxu1 }
 0x101   :  { %v2864_v2 = vadd.f32 %v1999_v63, %v1935_v61  ;;  %v1937_v3 = vpop.f32.mrf.mxu0 }
 0x102   :  { %v1938_v4 = vadd.f32 %v1937_v3, %v1936_v0  ;;  %v2001_v5 = vpop.f32.mrf.mxu1 }
 0x103   :  { %2988 = vst [vmem:[#allocation4_spill] sm:$0xff] %v2864_v2  ;;  %v2002_v6 = vadd.f32 %v2001_v5, %v2000_v1  ;;  %v1939_v7 = vpop.f32.mrf.mxu0 }
 0x104   :  { %v2003_v8 = vpop.f32.mrf.mxu1 }
 0x105   :  { %v2866_v9 = vadd.f32 %v2002_v6, %v1938_v4  ;;  %v1940_v10 = vpop.f32.mrf.mxu0 }
 0x106   :  { %v1941_v11 = vadd.f32 %v1940_v10, %v1939_v7  ;;  %v2004_v12 = vpop.f32.mrf.mxu1 }
 0x107   :  { %2989 = vst [vmem:[#allocation5_spill] sm:$0xff] %v2866_v9  ;;  %v2005_v13 = vadd.f32 %v2004_v12, %v2003_v8  ;;  %v1942_v14 = vpop.f32.mrf.mxu0 }
 0x108   :  { %v2006_v15 = vpop.f32.mrf.mxu1 }
 0x109   :  { %v2868_v16 = vadd.f32 %v2005_v13, %v1941_v11  ;;  %v1943_v17 = vpop.f32.mrf.mxu0 }
 0x10a   :  { %v1944_v18 = vadd.f32 %v1943_v17, %v1942_v14  ;;  %v2007_v19 = vpop.f32.mrf.mxu1 }
 0x10b   :  { %2990 = vst [vmem:[#allocation6_spill] sm:$0xff] %v2868_v16  ;;  %v2008_v20 = vadd.f32 %v2007_v19, %v2006_v15  ;;  %v1945_v21 = vpop.f32.mrf.mxu0 }
 0x10c   :  { %v2009_v22 = vpop.f32.mrf.mxu1 }
 0x10d   :  { %v2870_v23 = vadd.f32 %v2008_v20, %v1944_v18  ;;  %v1946_v25 = vpop.f32.mrf.mxu0 }
 0x10e   :  { %v1947_v26 = vadd.f32 %v1946_v25, %v1945_v21  ;;  %v2010_v27 = vpop.f32.mrf.mxu1 }
 0x10f   :  { %2991 = vst [vmem:[#allocation7_spill] sm:$0xff] %v2870_v23  ;;  %v2011_v28 = vadd.f32 %v2010_v27, %v2009_v22  ;;  %v1948_v29 = vpop.f32.mrf.mxu0 }
 0x110   :  { %v2012_v30 = vpop.f32.mrf.mxu1 }
 0x111   :  { %v2872_v32 = vadd.f32 %v2011_v28, %v1947_v26  ;;  %v1949_v33 = vpop.f32.mrf.mxu0 }
 0x112   :  { %v1950_v34 = vadd.f32 %v1949_v33, %v1948_v29  ;;  %v2013_v35 = vpop.f32.mrf.mxu1 }
 0x113   :  { %2992 = vst [vmem:[#allocation8_spill] sm:$0xff] %v2872_v32  ;;  %v2014_v36 = vadd.f32 %v2013_v35, %v2012_v30  ;;  %v1951_v37 = vpop.f32.mrf.mxu0 }
 0x114   :  { %v2015_v39 = vpop.f32.mrf.mxu1 }
 0x115   :  { %v2874_v40 = vadd.f32 %v2014_v36, %v1950_v34  ;;  %v1952_v41 = vpop.f32.mrf.mxu0 }
 0x116   :  { %v1953_v42 = vadd.f32 %v1952_v41, %v1951_v37  ;;  %v2016_v43 = vpop.f32.mrf.mxu1 }
 0x117   :  { %2993 = vst [vmem:[#allocation9_spill] sm:$0xff] %v2874_v40  ;;  %v2017_v44 = vadd.f32 %v2016_v43, %v2015_v39  ;;  %v1954_v46 = vpop.f32.mrf.mxu0 }
 0x118   :  { %v2018_v47 = vpop.f32.mrf.mxu1 }
 0x119   :  { %v2876_v48 = vadd.f32 %v2017_v44, %v1953_v42  ;;  %v1955_v49 = vpop.f32.mrf.mxu0 }
 0x11a   :  { %v1956_v50 = vadd.f32 %v1955_v49, %v1954_v46  ;;  %v2019_v51 = vpop.f32.mrf.mxu1 }
 0x11b   :  { %2994 = vst [vmem:[#allocation10_spill] sm:$0xff] %v2876_v48  ;;  %v2020_v53 = vadd.f32 %v2019_v51, %v2018_v47  ;;  %v1957_v54 = vpop.f32.mrf.mxu0 }
 0x11c   :  { %v2021_v55 = vpop.f32.mrf.mxu1 }
 0x11d   :  { %v2878_v56 = vadd.f32 %v2020_v53, %v1956_v50  ;;  %v1958_v57 = vpop.f32.mrf.mxu0 }
 0x11e   :  { %v1959_v58 = vadd.f32 %v1958_v57, %v1957_v54  ;;  %v2022_v60 = vpop.f32.mrf.mxu1 }
 0x11f   :  { %2995 = vst [vmem:[#allocation11_spill] sm:$0xff] %v2878_v56  ;;  %v2023_v61 = vadd.f32 %v2022_v60, %v2021_v55  ;;  %v1960_v62 = vpop.f32.mrf.mxu0 }
 0x120   :  { %v2024_v63 = vpop.f32.mrf.mxu1 }
 0x121   :  { %v2880_v0 = vadd.f32 %v2023_v61, %v1959_v58  ;;  %v1961_v1 = vpop.f32.mrf.mxu0 }
 0x122   :  { %v1962_v3 = vadd.f32 %v1961_v1, %v1960_v62  ;;  %v2025_v4 = vpop.f32.mrf.mxu1 }
 0x123   :  { %2996 = vst [vmem:[#allocation12_spill] sm:$0xff] %v2880_v0  ;;  %v2026_v5 = vadd.f32 %v2025_v4, %v2024_v63  ;;  %v2043_v6 = vpop.f32.mrf.mxu0 }
 0x124   :  { %v2107_v7 = vpop.f32.mrf.mxu1 }
 0x125   :  { %v2882_v8 = vadd.f32 %v2026_v5, %v1962_v3  ;;  %v2044_v10 = vpop.f32.mrf.mxu0 }
 0x126   :  { %v2045_v11 = vadd.f32 %v2044_v10, %v2043_v6  ;;  %v2108_v12 = vpop.f32.mrf.mxu1 }
 0x127   :  { %2997 = vst [vmem:[#allocation13_spill] sm:$0xff] %v2882_v8  ;;  %v2109_v13 = vadd.f32 %v2108_v12, %v2107_v7  ;;  %v2046_v14 = vpop.f32.mrf.mxu0 }
 0x128   :  { %v1268_v15 = vadd.f32 %v2045_v11, %v2852_v24  ;;  %v2110_v17 = vpop.f32.mrf.mxu1 }
 0x129   :  { %v2047_v18 = vpop.f32.mrf.mxu0 }
 0x12a   :  { %v2111_v19 = vpop.f32.mrf.mxu1  ;;  %v2885_v20 = vadd.f32 %v2109_v13, %v1268_v15  ;;  %v2048_v0 = vadd.f32 %v2047_v18, %v2046_v14 }
 0x12b   :  { %v2049_v21 = vpop.f32.mrf.mxu0  ;;  %v2112_v23 = vadd.f32 %v2111_v19, %v2110_v17 }
 0x12c   :  { %2998 = vst [vmem:[#allocation14_spill] sm:$0xff] %v2885_v20  ;;  %v2113_v22 = vpop.f32.mrf.mxu1 }
 0x12d   :  { %v2050_v25 = vpop.f32.mrf.mxu0 }
 0x12e   :  { %v2114_v26 = vpop.f32.mrf.mxu1 }
 0x12f   :  { %v2052_v27 = vpop.f32.mrf.mxu0  ;;  %v2115_v2 = vadd.f32 %v2114_v26, %v2113_v22 }
 0x130   :  { %v2116_v28 = vpop.f32.mrf.mxu1 }
 0x131   :  { %v2053_v29 = vpop.f32.mrf.mxu0 }
 0x132   :  { %v2117_v30 = vpop.f32.mrf.mxu1  ;;  %v2054_v59 = vadd.f32 %v2053_v29, %v2052_v27  ;;  %v3007_v27 = vld [vmem:[#allocation2_spill] sm:$0xff] }
 0x133   :  { %v2055_v33 = vpop.f32.mrf.mxu0  ;;  %v2118_v14 = vadd.f32 %v2117_v30, %v2116_v28  ;;  %v3011_v30 = vld [vmem:[#allocation7_spill] sm:$0xff] }
 0x134   :  { %v2119_v34 = vpop.f32.mrf.mxu1 }
 0x135   :  { %v2056_v35 = vpop.f32.mrf.mxu0 }
 0x136   :  { %v2120_v36 = vpop.f32.mrf.mxu1  ;;  %v2057_v40 = vadd.f32 %v2056_v35, %v2055_v33  ;;  %v3008_v35 = vld [vmem:[#allocation4_spill] sm:$0xff] }
 0x137   :  { %v2058_v37 = vpop.f32.mrf.mxu0  ;;  %v2121_v17 = vadd.f32 %v2120_v36, %v2119_v34  ;;  %v3013_v34 = vld [vmem:[#allocation9_spill] sm:$0xff] }
 0x138   :  { %v2887_v39 = vpop.f32.mrf.mxu1  ;;  %v1284_v29 = vadd.f32 %v2057_v40, %v3007_v27 }
 0x139   :  { %2999 = vst [vmem:[#allocation15_spill] sm:$0xff] %v2887_v39  ;;  %v2059_v24 = vpop.f32.mrf.mxu0 }
 0x13a   :  { %v2889_v41 = vpop.f32.mrf.mxu1  ;;  %v2060_v19 = vadd.f32 %v2059_v24, %v2058_v37 }
 0x13b   :  { %3000 = vst [vmem:[#allocation16_spill] sm:$0xff] %v2889_v41  ;;  %v2061_v42 = vpop.f32.mrf.mxu0  ;;  %v2051_v41 = vadd.f32 %v2050_v25, %v2049_v21  ;;  %v1279_v25 = vadd.f32 %v2054_v59, %v2858_v45  ;;  %v3012_v45 = vld [vmem:[#allocation8_spill] sm:$0xff] }
 0x13c   :  { %v2125_v43 = vpop.f32.mrf.mxu1 }
 0x13d   :  { %v2062_v44 = vpop.f32.mrf.mxu0 }
 0x13e   :  { %v2126_v46 = vpop.f32.mrf.mxu1  ;;  %v2063_v16 = vadd.f32 %v2062_v44, %v2061_v42 }
 0x13f   :  { %v2064_v47 = vpop.f32.mrf.mxu0 }
 0x140   :  { %v2128_v49 = vpop.f32.mrf.mxu1  ;;  %v1292_v42 = vadd.f32 %v2063_v16, %v3008_v35 }
 0x141   :  { %v2065_v50 = vpop.f32.mrf.mxu0 }
 0x142   :  { %v2129_v51 = vpop.f32.mrf.mxu1 }
 0x143   :  { %v2067_v53 = vpop.f32.mrf.mxu0  ;;  %v2130_v26 = vadd.f32 %v2129_v51, %v2128_v49  ;;  %v3014_v49 = vld [vmem:[#allocation3_spill] sm:$0xff] }
 0x144   :  { %v2131_v54 = vpop.f32.mrf.mxu1  ;;  %v1287_v51 = vadd.f32 %v2060_v19, %v3014_v49 }
 0x145   :  { %v2068_v55 = vpop.f32.mrf.mxu0 }
 0x146   :  { %v2132_v57 = vpop.f32.mrf.mxu1 }
 0x147   :  { %v2070_v58 = vpop.f32.mrf.mxu0  ;;  %v2133_v28 = vadd.f32 %v2132_v57, %v2131_v54 }
 0x148   :  { %v2134_v60 = vpop.f32.mrf.mxu1 }
 0x149   :  { %v2071_v61 = vpop.f32.mrf.mxu0 }
 0x14a   :  { %v2135_v62 = vpop.f32.mrf.mxu1  ;;  %v2072_v52 = vadd.f32 %v2071_v61, %v2070_v58  ;;  %v3015_v58 = vld [vmem:[#allocation15_spill] sm:$0xff] }
 0x14b   :  { %v2073_v63 = vpop.f32.mrf.mxu0 }
 0x14c   :  { %v2137_v1 = vpop.f32.mrf.mxu1 }
 0x14d   :  { %v2074_v3 = vpop.f32.mrf.mxu0 }
 0x14e   :  { %v2138_v4 = vpop.f32.mrf.mxu1  ;;  %v2075_v18 = vadd.f32 %v2074_v3, %v2073_v63 }
 0x14f   :  { %v2076_v5 = vpop.f32.mrf.mxu0  ;;  %v2139_v40 = vadd.f32 %v2138_v4, %v2137_v1 }
 0x150   :  { %v2140_v6 = vpop.f32.mrf.mxu1  ;;  %v1308_v59 = vadd.f32 %v2075_v18, %v3012_v45 }
 0x151   :  { %v2077_v7 = vpop.f32.mrf.mxu0 }
 0x152   :  { %v2141_v10 = vpop.f32.mrf.mxu1 }
 0x153   :  { %v2079_v11 = vpop.f32.mrf.mxu0  ;;  %v2142_v37 = vadd.f32 %v2141_v10, %v2140_v6 }
 0x154   :  { %v2891_v12 = vpop.f32.mrf.mxu1 }
 0x155   :  { %3001 = vst [vmem:[#allocation17_spill] sm:$0xff] %v2891_v12  ;;  %v2080_v13 = vpop.f32.mrf.mxu0  ;;  %v2066_v12 = vadd.f32 %v2065_v50, %v2064_v47  ;;  %v3010_v47 = vld [vmem:[#allocation6_spill] sm:$0xff]  ;;  %v2136_v50 = vadd.f32 %v2135_v62, %v2134_v60  ;;  %v1381_v60 = vadd.f32 %v2121_v17, %v1284_v29 }
 0x156   :  { %v2893_v15 = vpop.f32.mrf.mxu1 }
 0x157   :  { %3002 = vst [vmem:[#allocation18_spill] sm:$0xff] %v2893_v15  ;;  %v2895_v56 = vpop.f32.mrf.mxu0  ;;  %v1271_v15 = vadd.f32 %v2048_v0, %v2854_v31  ;;  %v2127_v31 = vadd.f32 %v2126_v46, %v2125_v43  ;;  %v3009_v0 = vld [vmem:[#allocation5_spill] sm:$0xff]  ;;  %v1376_v46 = vadd.f32 %v2118_v14, %v1279_v25 }
 0x158   :  { %3003 = vst [vmem:[#allocation19_spill] sm:$0xff] %v2895_v56  ;;  %v2897_v48 = vpop.f32.mrf.mxu1  ;;  %v2069_v56 = vadd.f32 %v2068_v55, %v2067_v53  ;;  %v1295_v22 = vadd.f32 %v2066_v12, %v3009_v0  ;;  %v3019_v12 = vld [vmem:[#allocation14_spill] sm:$0xff]  ;;  %v3023_v0 = vld [vmem:[#allocation13_spill] sm:$0xff] }
 0x159   :  { %3004 = vst [vmem:[#allocation20_spill] sm:$0xff] %v2897_v48  ;;  %v2899_v8 = vpop.f32.mrf.mxu0  ;;  %v1368_v55 = vadd.f32 %v2112_v23, %v1271_v15 }
 0x15a   :  { %3005 = vst [vmem:[#allocation21_spill] sm:$0xff] %v2899_v8  ;;  %v2901_v20 = vpop.f32.mrf.mxu1  ;;  %v1276_v8 = vadd.f32 %v2051_v41, %v2856_v38  ;;  %v1300_v38 = vadd.f32 %v2069_v56, %v3010_v47  ;;  %v1303_v41 = vadd.f32 %v2072_v52, %v3011_v30  ;;  %v3016_v56 = vld [vmem:[#allocation16_spill] sm:$0xff]  ;;  %v1389_v52 = vadd.f32 %v2127_v31, %v1292_v42 }
 0x15b   :  { %3006 = vst [vmem:[#allocation22_spill] sm:$0xff] %v2901_v20  ;;  %v2085_v39 = vpop.f32.mrf.mxu0  ;;  %v2078_v20 = vadd.f32 %v2077_v7, %v2076_v5  ;;  %v2124_v54 = vadd.f32 %v3016_v56, %v3015_v58  ;;  %v1392_v3 = vadd.f32 %v2130_v26, %v1295_v22  ;;  %v1405_v5 = vadd.f32 %v2139_v40, %v1308_v59 }
 0x15c   :  { %v2149_v32 = vpop.f32.mrf.mxu1  ;;  %v1373_v16 = vadd.f32 %v2115_v2, %v1276_v8  ;;  %v1397_v62 = vadd.f32 %v2133_v28, %v1300_v38  ;;  %v1400_v1 = vadd.f32 %v2136_v50, %v1303_v41  ;;  %v3017_v6 = vld [vmem:[#allocation17_spill] sm:$0xff]  ;;  %v3024_v41 = vld [vmem:[#allocation10_spill] sm:$0xff] }
 0x15d   :  { %v2086_v9 = vpop.f32.mrf.mxu0  ;;  %v1311_v36 = vadd.f32 %v2078_v20, %v3013_v34  ;;  %v2081_v20 = vadd.f32 %v2080_v13, %v2079_v11  ;;  %v3022_v13 = vld [vmem:[#allocation12_spill] sm:$0xff] }
 0x15e   :  { %v2150_v48 = vpop.f32.mrf.mxu1  ;;  %v2087_v61 = vadd.f32 %v2086_v9, %v2085_v39  ;;  %v3018_v23 = vld [vmem:[#allocation18_spill] sm:$0xff] }
 0x15f   :  { %v2088_v21 = vpop.f32.mrf.mxu0  ;;  %v1408_v8 = vadd.f32 %v2142_v37, %v1311_v36  ;;  %v2145_v7 = vadd.f32 %v3018_v23, %v3017_v6  ;;  %v3020_v25 = vld [vmem:[#allocation19_spill] sm:$0xff]  ;;  %v2151_v39 = vadd.f32 %v2150_v48, %v2149_v32  ;;  %v1316_v50 = vadd.f32 %v2081_v20, %v3024_v41 }
 0x160   :  { %v2152_v33 = vpop.f32.mrf.mxu1  ;;  %v3026_v59 = vld [vmem:[#allocation20_spill] sm:$0xff] }
 0x161   :  { %v2089_v44 = vpop.f32.mrf.mxu0  ;;  %v3021_v27 = vld [vmem:[#allocation21_spill] sm:$0xff] }
 0x162   :  { %v2153_v53 = vpop.f32.mrf.mxu1  ;;  %v2090_v4 = vadd.f32 %v2089_v44, %v2088_v21  ;;  %v2084_v9 = vadd.f32 %v3021_v27, %v3020_v25  ;;  %v1324_v21 = vadd.f32 %v2087_v61, %v3022_v13  ;;  %v3027_v40 = vld [vmem:[#allocation22_spill] sm:$0xff]  ;;  %v1384_v61 = vadd.f32 %v2124_v54, %v1287_v51 }
 0x163   :  { %v2189_v24 = vpop.f32.mrf.mxu0  ;;  %v2154_v19 = vadd.f32 %v2153_v53, %v2152_v33  ;;  %v3025_v53 = vld [vmem:[#allocation11_spill] sm:$0xff]  ;;  %v2148_v34 = vadd.f32 %v3027_v40, %v3026_v59 }
 0x164   :  { %v2197_v43 = vpop.f32.mrf.mxu1  ;;  %v1470_v10 = vadd.f32 %v2189_v24, %v1373_v16  ;;  %v1327_v22 = vadd.f32 %v2090_v4, %v3023_v0  ;;  %v1319_v45 = vadd.f32 %v2084_v9, %v3025_v53  ;;  %v1421_v58 = vadd.f32 %v2151_v39, %v1324_v21 }
 0x165   :  { %v1461_v57 = vpop.f32.mrf.mxu0  ;;  %v2921_v29 = vadd.f32 %v2197_v43, %v1405_v5 }
 0x166   :  { %v1493_v63 = vpop.f32.mrf.mxu1  ;;  %v1462_v15 = vadd.f32 %v1461_v57, %v3019_v12  ;;  %v1628_v24 = vmul.f32 %v1470_v10, %v1470_v10  ;;  %v1424_v57 = vadd.f32 %v2154_v19, %v1327_v22 }
 0x167   :  { %v2190_v2 = vpop.f32.mrf.mxu0  ;;  %v2927_v26 = vadd.f32 %v1493_v63, %v1397_v62 }
 0x168   :  { %v1473_v14 = vadd.f32 %v2190_v2, %v1376_v46  ;;  %v2198_v18 = vpop.f32.mrf.mxu1  ;;  %v1626_v48 = vmul.f32 %v1462_v15, %v1462_v15  ;;  %v1413_v2 = vadd.f32 %v2145_v7, %v1316_v50 }
 0x169   :  { %v2923_v17 = vadd.f32 %v2198_v18, %v1408_v8  ;;  %v1464_v11 = vpop.f32.mrf.mxu0 }
 0x16a   :  { %v1860_v35 = vpack.c.bf16 %v1473_v14, %v1470_v10  ;;  %v1465_v42 = vadd.f32 %v1464_v11, %v1368_v55  ;;  %v1496_v31 = vpop.f32.mrf.mxu1  ;;  %v1629_v49 = vmul.f32 %v1473_v14, %v1473_v14 }
 0x16b   :  { %v1880_v44 = vpack.c.bf16 %v2923_v17, %v2921_v29  ;;  %v2931_v47 = vadd.f32 %v1496_v31, %v1400_v1  ;;  %v2193_v32 = vpop.f32.mrf.mxu0 }
 0x16c   :  { %1892 = vst [vmem:[%s2983_s2 + $0x8] sm:$0xff] %v1860_v35   ;;  %v1855_v38 = vpack.c.bf16 %v1465_v42, %v1462_v15  ;;  %v1604_v33 = vadd.f32 %v1465_v42, %v1462_v15  ;;  %v1627_v28 = vmul.f32 %v1465_v42, %v1465_v42  ;;  %v2201_v30 = vpop.f32.mrf.mxu1  ;;  %v1486_v63 = vadd.f32 %v2193_v32, %v1389_v52 }
 0x16d   :  { %1896 = vst [vmem:[%s2983_s2 + $0x28] sm:$0xff] %v1880_v44   ;;  %v1875_v36 = vpack.c.bf16 %v2931_v47, %v2927_v26  ;;  %v1477_v37 = vpop.f32.mrf.mxu0  ;;  %v1518_v5 = vadd.f32 %v2201_v30, %v1421_v58  ;;  %v1634_v42 = vmul.f32 %v2927_v26, %v2927_v26  ;;  %v1635_v22 = vmul.f32 %v2931_v47, %v2931_v47 }
 0x16e   :  { %1856 = vst [vmem:[%s2983_s2] sm:$0xff] %v1855_v38   ;;  %v1605_v16 = vadd.f32 %v1604_v33, %v1470_v10  ;;  %v1642_v43 = vadd.f32 %v1627_v28, %v1626_v48  ;;  %v1478_v46 = vadd.f32 %v1477_v37, %v1381_v60  ;;  %v1509_v55 = vpop.f32.mrf.mxu1  ;;  %v1416_v60 = vadd.f32 %v2148_v34, %v1319_v45 }
 0x16f   :  { %1895 = vst [vmem:[%s2983_s2 + $0x20] sm:$0xff] %v1875_v36   ;;  %v2194_v56 = vpop.f32.mrf.mxu0  ;;  %v1510_v25 = vadd.f32 %v1509_v55, %v1413_v2  ;;  %v1636_v48 = vmul.f32 %v2921_v29, %v2921_v29  ;;  %v1637_v28 = vmul.f32 %v2923_v17, %v2923_v17  ;;  %v1640_v34 = vmul.f32 %v1518_v5, %v1518_v5 }
 0x170   :  { %v1643_v62 = vadd.f32 %v1642_v43, %v1628_v24  ;;  %v1606_v1 = vadd.f32 %v1605_v16, %v1473_v14  ;;  %v1489_v20 = vadd.f32 %v2194_v56, %v1392_v3  ;;  %v2202_v4 = vpop.f32.mrf.mxu1  ;;  %v1630_v10 = vmul.f32 %v1478_v46, %v1478_v46 }
 0x171   :  { %v1521_v8 = vadd.f32 %v2202_v4, %v1424_v57  ;;  %v1480_v6 = vpop.f32.mrf.mxu0  ;;  %v1632_v14 = vmul.f32 %v1486_v63, %v1486_v63 }
 0x172   :  { %v1607_v23 = vadd.f32 %v1606_v1, %v1478_v46  ;;  %v1644_v12 = vadd.f32 %v1643_v62, %v1629_v49  ;;  %v1870_v15 = vpack.c.bf16 %v1489_v20, %v1486_v63  ;;  %v1512_v18 = vpop.f32.mrf.mxu1  ;;  %v1481_v9 = vadd.f32 %v1480_v6, %v1384_v61 }
 0x173   :  { %v1890_v27 = vpack.c.bf16 %v1521_v8, %v1518_v5  ;;  %v1513_v39 = vadd.f32 %v1512_v18, %v1416_v60  ;;  %v1633_v21 = vmul.f32 %v1489_v20, %v1489_v20  ;;  %v1641_v37 = vmul.f32 %v1521_v8, %v1521_v8 }
 0x174   :  { %v1645_v51 = vadd.f32 %v1644_v12, %v1630_v10  ;;  %1894 = vst [vmem:[%s2983_s2 + $0x18] sm:$0xff] %v1870_v15   ;;  %v1865_v54 = vpack.c.bf16 %v1481_v9, %v1478_v46  ;;  %v1608_v52 = vadd.f32 %v1607_v23, %v1481_v9  ;;  %v1631_v3 = vmul.f32 %v1481_v9, %v1481_v9 }
 0x175   :  { %1898 = vst [vmem:[%s2983_s2 + $0x38] sm:$0xff] %v1890_v27   ;;  %v1885_v7 = vpack.c.bf16 %v1513_v39, %v1510_v25  ;;  %v1639_v59 = vmul.f32 %v1513_v39, %v1513_v39 }
 0x176   :  { %1893 = vst [vmem:[%s2983_s2 + $0x10] sm:$0xff] %v1865_v54   ;;  %v1609_v11 = vadd.f32 %v1608_v52, %v1486_v63  ;;  %v1646_v13 = vadd.f32 %v1645_v51, %v1631_v3 }
 0x177   :  { %1897 = vst [vmem:[%s2983_s2 + $0x30] sm:$0xff] %v1885_v7  }
 0x178   :  { %v1610_v19 = vadd.f32 %v1609_v11, %v1489_v20  ;;  %v1647_v35 = vadd.f32 %v1646_v13, %v1632_v14 }
 0x17a   :  { %v1611_v31 = vadd.f32 %v1610_v19, %v2927_v26  ;;  %v1648_v0 = vadd.f32 %v1647_v35, %v1633_v21  ;;  %v1638_v26 = vmul.f32 %v1510_v25, %v1510_v25 }
 0x17c   :  { %v1649_v44 = vadd.f32 %v1648_v0, %v1634_v42  ;;  %v1612_v32 = vadd.f32 %v1611_v31, %v2931_v47 }
 0x17e   :  { %v1613_v38 = vadd.f32 %v1612_v32, %v2921_v29  ;;  %v1650_v33 = vadd.f32 %v1649_v44, %v1635_v22 }
 0x180   :  { %v1614_v30 = vadd.f32 %v1613_v38, %v2923_v17  ;;  %v1651_v41 = vadd.f32 %v1650_v33, %v1636_v48 }
 0x182   :  { %v1615_v50 = vadd.f32 %v1614_v30, %v1510_v25  ;;  %v1652_v53 = vadd.f32 %v1651_v41, %v1637_v28 }
 0x184   :  { %v1616_v45 = vadd.f32 %v1615_v50, %v1513_v39  ;;  %v1653_v40 = vadd.f32 %v1652_v53, %v1638_v26 }
 0x186   :  { %v1617_v47 = vadd.f32 %v1616_v45, %v1518_v5  ;;  %v1654_v36 = vadd.f32 %v1653_v40, %v1639_v59 }
 0x188   :  { %v1618_v24 = vadd.f32 %v1617_v47, %v1521_v8  ;;  %v1655_v16 = vadd.f32 %v1654_v36, %v1640_v34 }
 0x18a   :  { %v1619_v29 = vrot.slane %v1618_v24, 4  ;;  %v1656_v43 = vadd.f32 %v1655_v16, %v1641_v37 }
 0x18c   :  { %v1620_v46 = vadd.f32 %v1619_v29, %v1618_v24  ;;  %v1657_v55 = vrot.slane %v1656_v43, 4 }
 0x18e   :  { %v1621_v49 = vrot.slane %v1620_v46, 2  ;;  %v1658_v58 = vadd.f32 %v1657_v55, %v1656_v43 }
 0x190   :  { %v1622_v17 = vadd.f32 %v1621_v49, %v1620_v46  ;;  %v1659_v56 = vrot.slane %v1658_v58, 2 }
 0x192   :  { %v1623_v57 = vrot.slane %v1622_v17, 1  ;;  %v1660_v61 = vadd.f32 %v1659_v56, %v1658_v58 }
 0x194   :  { %v1624_v62 = vadd.f32 %v1623_v57, %v1622_v17  ;;  %v1661_v63 = vrot.slane %v1660_v61, 1 }
 0x196   :  { %1625 = vst [vmem:[%s2984_s3] sm:$0x1] %v1624_v62  ;;  %v1662_v1 = vadd.f32 %v1661_v63, %v1660_v61 }
 0x198   :  { %1663 = vst [vmem:[%s2985_s4] sm:$0x1] %v1662_v1 }

// kernel: preact_bottleneck_forward.7
= control target key start
LH: loop header
LB: loop body
LE: loop exit
PB: predicated region body
PF: predicated region fallthrough
CT: control target
= control target key end

     0   :  { %s704_s3 = inlined_call_operand.vmem [shape: bf16[128,128], index: 3, kind: input, shape index: {}]   ;;  %s705_s0 = inlined_call_operand.vmem [shape: bf16[128,128], index: 0, kind: input, shape index: {}]   ;;  %s706_s1 = inlined_call_operand.vmem [shape: f32[1,128], index: 1, kind: input, shape index: {}]   ;;  %s707_s2 = inlined_call_operand.vmem [shape: f32[1,128], index: 2, kind: input, shape index: {}]   ;;  %s708_s4 = inlined_call_operand.vmem [shape: bf16[128,128], index: 4, kind: output, shape index: {}]  }
   0x1   :  { %v557_v0 = vld [vmem:[%s704_s3 + $0x38] sm:$0xff]   ;;  %v558_v1 = vld [vmem:[%s704_s3 + $0x30] sm:$0xff]   ;;  %v559_v2 = vld [vmem:[%s704_s3 + $0x28] sm:$0xff]  }
   0x2   :  { %509 = vmatprep.subr.bf16.mxu0 %v557_v0  ;;  %541 = vmatprep.subr.bf16.mxu1 %v557_v0  ;;  %v560_v3 = vld [vmem:[%s704_s3 + $0x20] sm:$0xff]   ;;  %v479_v9 = vld [vmem:[%s705_s0 + $0x8] sm:$0xff]   ;;  %v480_v16 = vld [vmem:[%s705_s0 + $0x10] sm:$0xff]  }
   0x3   :  { %510 = vmatpush3.bf16.msra.mxu0 %v557_v0  ;;  %549 = vmatpush3.bf16.msra.mxu1 %v557_v0  ;;  %v408_v4 = vld [vmem:[%s705_s0] sm:$0xff]   ;;  %v483_v13 = vld [vmem:[%s705_s0 + $0x28] sm:$0xff]   ;;  %v561_v17 = vld [vmem:[%s704_s3 + $0x18] sm:$0xff]   ;;  %v413_v20 = vunpack.c.l.bf16 %v479_v9  ;;  %v414_v21 = vunpack.c.h.bf16 %v479_v9  ;;  %v417_v28 = vunpack.c.l.bf16 %v480_v16  ;;  %v418_v40 = vunpack.c.h.bf16 %v480_v16 }
   0x4   :  { %511 = vmatprep.subr.bf16.mxu0 %v558_v1  ;;  %542 = vmatprep.subr.bf16.mxu1 %v558_v1  ;;  %v608_v5 = vld [vmem:[%s706_s1] ss:$0 sm:$0xff]  ;;  %v409_v6 = vunpack.c.l.bf16 %v408_v4  ;;  %v410_v7 = vunpack.c.h.bf16 %v408_v4  ;;  %v429_v24 = vunpack.c.l.bf16 %v483_v13  ;;  %v430_v25 = vunpack.c.h.bf16 %v483_v13  ;;  %v484_v31 = vld [vmem:[%s705_s0 + $0x30] sm:$0xff]   ;;  %v481_v44 = vld [vmem:[%s705_s0 + $0x18] sm:$0xff]  }
   0x5   :  { %v482_v8 = vld [vmem:[%s705_s0 + $0x20] sm:$0xff]   ;;  %v562_v32 = vld [vmem:[%s704_s3 + $0x10] sm:$0xff]   ;;  %v59_v35 = vmul.f32 %v413_v20, %v608_v5  ;;  %v60_v36 = vmul.f32 %v414_v21, %v608_v5  ;;  %v61_v42 = vmul.f32 %v417_v28, %v608_v5  ;;  %v433_v43 = vunpack.c.l.bf16 %v484_v31  ;;  %v485_v47 = vld [vmem:[%s705_s0 + $0x38] sm:$0xff]  }
   0x6   :  { %v619_v10 = vld [vmem:[%s707_s2] ss:$0 sm:$0xff]  ;;  %v425_v11 = vunpack.c.l.bf16 %v482_v8  ;;  %v426_v12 = vunpack.c.h.bf16 %v482_v8  ;;  %v57_v14 = vmul.f32 %v409_v6, %v608_v5  ;;  %v58_v15 = vmul.f32 %v410_v7, %v608_v5  ;;  %v563_v48 = vld [vmem:[%s704_s3 + $0x8] sm:$0xff]  }
   0x7   :  { %512 = vmatpush3.bf16.msra.mxu0 %v558_v1  ;;  %550 = vmatpush3.bf16.msra.mxu1 %v558_v1  ;;  %v67_v38 = vmul.f32 %v429_v24, %v608_v5  ;;  %v68_v39 = vmul.f32 %v430_v25, %v608_v5  ;;  %v62_v45 = vmul.f32 %v418_v40, %v608_v5  ;;  %v434_v46 = vunpack.c.h.bf16 %v484_v31  ;;  %v564_v63 = vld [vmem:[%s704_s3] sm:$0xff]  }
   0x8   :  { %513 = vmatprep.subr.bf16.mxu0 %v559_v2  ;;  %543 = vmatprep.subr.bf16.mxu1 %v559_v2  ;;  %v65_v18 = vmul.f32 %v425_v11, %v608_v5  ;;  %v66_v19 = vmul.f32 %v426_v12, %v608_v5  ;;  %v80_v22 = vadd.f32 %v619_v10, %v57_v14  ;;  %v421_v55 = vunpack.c.l.bf16 %v481_v44 }
   0x9   :  { %v81_v23 = vadd.f32 %v619_v10, %v58_v15  ;;  %v82_v49 = vadd.f32 %v619_v10, %v59_v35  ;;  %v83_v50 = vadd.f32 %v619_v10, %v60_v36  ;;  %v69_v51 = vmul.f32 %v433_v43, %v608_v5 }
   0xa   :  { %v88_v26 = vadd.f32 %v619_v10, %v65_v18  ;;  %v89_v27 = vadd.f32 %v619_v10, %v66_v19  ;;  %v96_v29 = vmax.f32 %v80_v22, 0.0  ;;  %v90_v52 = vadd.f32 %v619_v10, %v67_v38 }
   0xb   :  { %514 = vmatpush3.bf16.msra.mxu0 %v559_v2  ;;  %551 = vmatpush3.bf16.msra.mxu1 %v559_v2  ;;  %v97_v30 = vmax.f32 %v81_v23, 0.0  ;;  %v91_v53 = vadd.f32 %v619_v10, %v68_v39  ;;  %v70_v54 = vmul.f32 %v434_v46, %v608_v5  ;;  %v84_v56 = vadd.f32 %v619_v10, %v61_v42 }
   0xc   :  { %515 = vmatprep.subr.bf16.mxu0 %v560_v3  ;;  %544 = vmatprep.subr.bf16.mxu1 %v560_v3  ;;  %v104_v33 = vmax.f32 %v88_v26, 0.0  ;;  %v105_v34 = vmax.f32 %v89_v27, 0.0  ;;  %v422_v57 = vunpack.c.h.bf16 %v481_v44  ;;  %v437_v58 = vunpack.c.l.bf16 %v485_v47 }
   0xd   :  { %v112_v37 = vpack.c.bf16 %v97_v30, %v96_v29  ;;  %v438_v59 = vunpack.c.h.bf16 %v485_v47  ;;  %v85_v60 = vadd.f32 %v619_v10, %v62_v45  ;;  %v92_v61 = vadd.f32 %v619_v10, %v69_v51 }
   0xe   :  { %v116_v41 = vpack.c.bf16 %v105_v34, %v104_v33  ;;  %v93_v62 = vadd.f32 %v619_v10, %v70_v54  ;;  %v98_v0 = vmax.f32 %v82_v49, 0.0  ;;  %v99_v1 = vmax.f32 %v83_v50, 0.0 }
   0xf   :  { %516 = vmatpush3.bf16.msra.mxu0 %v560_v3  ;;  %552 = vmatpush3.bf16.msra.mxu1 %v560_v3  ;;  %v106_v2 = vmax.f32 %v90_v52, 0.0  ;;  %v107_v3 = vmax.f32 %v91_v53, 0.0  ;;  %v63_v4 = vmul.f32 %v421_v55, %v608_v5  ;;  %v64_v6 = vmul.f32 %v422_v57, %v608_v5 }
  0x10   :  { %517 = vmatprep.subr.bf16.mxu0 %v561_v17  ;;  %545 = vmatprep.subr.bf16.mxu1 %v561_v17  ;;  %v71_v7 = vmul.f32 %v437_v58, %v608_v5  ;;  %v72_v8 = vmul.f32 %v438_v59, %v608_v5  ;;  %v100_v9 = vmax.f32 %v84_v56, 0.0  ;;  %v101_v11 = vmax.f32 %v85_v60, 0.0 }
  0x11   :  { %525 = vmatprep.mubr.bf16.mxu0 %v112_v37  ;;  %533 = vmatprep.mubr.bf16.mxu1 %v116_v41  ;;  %v108_v12 = vmax.f32 %v92_v61, 0.0  ;;  %v109_v13 = vmax.f32 %v93_v62, 0.0  ;;  %v113_v14 = vpack.c.bf16 %v99_v1, %v98_v0  ;;  %v117_v15 = vpack.c.bf16 %v107_v3, %v106_v2 }
  0x12   :  { %v86_v16 = vadd.f32 %v619_v10, %v63_v4  ;;  %v94_v18 = vadd.f32 %v619_v10, %v71_v7  ;;  %v95_v19 = vadd.f32 %v619_v10, %v72_v8  ;;  %v114_v5 = vpack.c.bf16 %v101_v11, %v100_v9 }
  0x13   :  { %518 = vmatpush3.bf16.msra.mxu0 %v561_v17  ;;  %553 = vmatpush3.bf16.msra.mxu1 %v561_v17  ;;  %v87_v17 = vadd.f32 %v619_v10, %v64_v6  ;;  %v118_v20 = vpack.c.bf16 %v109_v13, %v108_v12 }
  0x14   :  { %519 = vmatprep.subr.bf16.mxu0 %v562_v32  ;;  %546 = vmatprep.subr.bf16.mxu1 %v562_v32  ;;  %v102_v21 = vmax.f32 %v86_v16, 0.0  ;;  %v110_v23 = vmax.f32 %v94_v18, 0.0  ;;  %v111_v24 = vmax.f32 %v95_v19, 0.0 }
  0x15   :  { %v103_v22 = vmax.f32 %v87_v17, 0.0 }
  0x16   :  { %v119_v26 = vpack.c.bf16 %v111_v24, %v110_v23 }
  0x17   :  { %520 = vmatpush3.bf16.msra.mxu0 %v562_v32  ;;  %554 = vmatpush3.bf16.msra.mxu1 %v562_v32  ;;  %v115_v25 = vpack.c.bf16 %v103_v22, %v102_v21 }
  0x18   :  { %521 = vmatprep.subr.bf16.mxu0 %v563_v48  ;;  %547 = vmatprep.subr.bf16.mxu1 %v563_v48 }
  0x1b   :  { %522 = vmatpush3.bf16.msra.mxu0 %v563_v48  ;;  %555 = vmatpush3.bf16.msra.mxu1 %v563_v48 }
  0x1c   :  { %523 = vmatprep.subr.bf16.mxu0 %v564_v63  ;;  %548 = vmatprep.subr.bf16.mxu1 %v564_v63 }
  0x1f   :  { %524 = vmatpush3.bf16.msra.mxu0 %v564_v63  ;;  %556 = vmatpush3.bf16.msra.mxu1 %v564_v63 }
  0x22   :  { %526 = vmatmul.mubr.bf16.vlgmr.msra.gmra.mxu0 %v113_v14  ;;  %534 = vmatmul.mubr.bf16.vlgmr.msra.gmra.mxu1 %v117_v15 }
  0x23   :  { %529 = vmatprep.mubr.bf16.mxu0 %v114_v5  ;;  %537 = vmatprep.mubr.bf16.mxu1 %v118_v20 }
  0x2a   :  { %530 = vmatmul.mubr.bf16.gmra.mxu0 %v115_v25  ;;  %538 = vmatmul.mubr.bf16.gmra.mxu1 %v119_v26 }
  0xe2   :  { %v527_v27 = vpop.f32.mrf.mxu0  ;;  %v535_v28 = vpop.f32.mrf.mxu1 }
  0xe4   :  { %v218_v29 = vpop.f32.mrf.mxu0  ;;  %v250_v10 = vpop.f32.mrf.mxu1 }
  0xe6   :  { %v528_v30 = vpop.f32.mrf.mxu0  ;;  %v536_v31 = vpop.f32.mrf.mxu1 }
  0xe7   :  { %v447_v32 = vpack.c.bf16 %v528_v30, %v527_v27  ;;  %v467_v33 = vpack.c.bf16 %v536_v31, %v535_v28 }
  0xe8   :  { %v221_v34 = vpop.f32.mrf.mxu0  ;;  %v253_v35 = vpop.f32.mrf.mxu1 }
  0xe9   :  { %486 = vst [vmem:[%s708_s4 + $0x8] sm:$0xff] %v447_v32   ;;  %490 = vst [vmem:[%s708_s4 + $0x28] sm:$0xff] %v467_v33   ;;  %v442_v36 = vpack.c.bf16 %v221_v34, %v218_v29  ;;  %v462_v37 = vpack.c.bf16 %v253_v35, %v250_v10 }
  0xea   :  { %v531_v38 = vpop.f32.mrf.mxu0  ;;  %v539_v39 = vpop.f32.mrf.mxu1 }
  0xeb   :  { %443 = vst [vmem:[%s708_s4] sm:$0xff] %v442_v36   ;;  %489 = vst [vmem:[%s708_s4 + $0x20] sm:$0xff] %v462_v37  }
  0xec   :  { %v234_v40 = vpop.f32.mrf.mxu0  ;;  %v266_v41 = vpop.f32.mrf.mxu1 }
  0xee   :  { %v532_v42 = vpop.f32.mrf.mxu0  ;;  %v540_v43 = vpop.f32.mrf.mxu1 }
  0xef   :  { %v457_v44 = vpack.c.bf16 %v532_v42, %v531_v38  ;;  %v477_v45 = vpack.c.bf16 %v540_v43, %v539_v39 }
  0xf0   :  { %v237_v46 = vpop.f32.mrf.mxu0  ;;  %v269_v47 = vpop.f32.mrf.mxu1 }
  0xf1   :  { %488 = vst [vmem:[%s708_s4 + $0x18] sm:$0xff] %v457_v44   ;;  %492 = vst [vmem:[%s708_s4 + $0x38] sm:$0xff] %v477_v45   ;;  %v452_v48 = vpack.c.bf16 %v237_v46, %v234_v40  ;;  %v472_v49 = vpack.c.bf16 %v269_v47, %v266_v41 }
  0xf3   :  { %487 = vst [vmem:[%s708_s4 + $0x10] sm:$0xff] %v452_v48   ;;  %491 = vst [vmem:[%s708_s4 + $0x30] sm:$0xff] %v472_v49  }

// kernel: preact_bottleneck_forward.9
= control target key start
LH: loop header
LB: loop body
LE: loop exit
PB: predicated region body
PF: predicated region fallthrough
CT: control target
= control target key end

     0   :  { %s688_s4 = inlined_call_operand.vmem [shape: bf16[128,128], index: 4, kind: input, shape index: {}]   ;;  %s689_s0 = inlined_call_operand.vmem [shape: bf16[128,128], index: 0, kind: input, shape index: {}]   ;;  %s690_s2 = inlined_call_operand.vmem [shape: f32[1,128], index: 2, kind: input, shape index: {}]   ;;  %s691_s3 = inlined_call_operand.vmem [shape: f32[1,128], index: 3, kind: input, shape index: {}]   ;;  %s692_s1 = inlined_call_operand.vmem [shape: bf16[128,128], index: 1, kind: input, shape index: {}]   ;;  %s693_s5 = inlined_call_operand.vmem [shape: f32[128,128], index: 5, kind: output, shape index: {}]  }
   0x1   :  { %v488_v0 = vld [vmem:[%s688_s4 + $0x38] sm:$0xff]   ;;  %v489_v1 = vld [vmem:[%s688_s4 + $0x30] sm:$0xff]   ;;  %v490_v2 = vld [vmem:[%s688_s4 + $0x28] sm:$0xff]  }
   0x2   :  { %440 = vmatprep.subr.bf16.mxu0 %v488_v0  ;;  %472 = vmatprep.subr.bf16.mxu1 %v488_v0  ;;  %v491_v3 = vld [vmem:[%s688_s4 + $0x20] sm:$0xff]   ;;  %v410_v9 = vld [vmem:[%s689_s0 + $0x8] sm:$0xff]   ;;  %v411_v16 = vld [vmem:[%s689_s0 + $0x10] sm:$0xff]  }
   0x3   :  { %441 = vmatpush3.bf16.msra.mxu0 %v488_v0  ;;  %480 = vmatpush3.bf16.msra.mxu1 %v488_v0  ;;  %v347_v4 = vld [vmem:[%s689_s0] sm:$0xff]   ;;  %v414_v13 = vld [vmem:[%s689_s0 + $0x28] sm:$0xff]   ;;  %v492_v17 = vld [vmem:[%s688_s4 + $0x18] sm:$0xff]   ;;  %v352_v20 = vunpack.c.l.bf16 %v410_v9  ;;  %v353_v21 = vunpack.c.h.bf16 %v410_v9  ;;  %v356_v28 = vunpack.c.l.bf16 %v411_v16  ;;  %v357_v40 = vunpack.c.h.bf16 %v411_v16 }
   0x4   :  { %442 = vmatprep.subr.bf16.mxu0 %v489_v1  ;;  %473 = vmatprep.subr.bf16.mxu1 %v489_v1  ;;  %v544_v5 = vld [vmem:[%s690_s2] ss:$0 sm:$0xff]  ;;  %v348_v6 = vunpack.c.l.bf16 %v347_v4  ;;  %v349_v7 = vunpack.c.h.bf16 %v347_v4  ;;  %v368_v24 = vunpack.c.l.bf16 %v414_v13  ;;  %v369_v25 = vunpack.c.h.bf16 %v414_v13  ;;  %v415_v31 = vld [vmem:[%s689_s0 + $0x30] sm:$0xff]   ;;  %v412_v44 = vld [vmem:[%s689_s0 + $0x18] sm:$0xff]  }
   0x5   :  { %v413_v8 = vld [vmem:[%s689_s0 + $0x20] sm:$0xff]   ;;  %v493_v32 = vld [vmem:[%s688_s4 + $0x10] sm:$0xff]   ;;  %v62_v35 = vmul.f32 %v352_v20, %v544_v5  ;;  %v63_v36 = vmul.f32 %v353_v21, %v544_v5  ;;  %v64_v42 = vmul.f32 %v356_v28, %v544_v5  ;;  %v372_v43 = vunpack.c.l.bf16 %v415_v31  ;;  %v416_v47 = vld [vmem:[%s689_s0 + $0x38] sm:$0xff]  }
   0x6   :  { %v555_v10 = vld [vmem:[%s691_s3] ss:$0 sm:$0xff]  ;;  %v364_v11 = vunpack.c.l.bf16 %v413_v8  ;;  %v365_v12 = vunpack.c.h.bf16 %v413_v8  ;;  %v60_v14 = vmul.f32 %v348_v6, %v544_v5  ;;  %v61_v15 = vmul.f32 %v349_v7, %v544_v5  ;;  %v494_v48 = vld [vmem:[%s688_s4 + $0x8] sm:$0xff]  }
   0x7   :  { %443 = vmatpush3.bf16.msra.mxu0 %v489_v1  ;;  %481 = vmatpush3.bf16.msra.mxu1 %v489_v1  ;;  %v70_v38 = vmul.f32 %v368_v24, %v544_v5  ;;  %v71_v39 = vmul.f32 %v369_v25, %v544_v5  ;;  %v65_v45 = vmul.f32 %v357_v40, %v544_v5  ;;  %v373_v46 = vunpack.c.h.bf16 %v415_v31  ;;  %v495_v63 = vld [vmem:[%s688_s4] sm:$0xff]  }
   0x8   :  { %444 = vmatprep.subr.bf16.mxu0 %v490_v2  ;;  %474 = vmatprep.subr.bf16.mxu1 %v490_v2  ;;  %v68_v18 = vmul.f32 %v364_v11, %v544_v5  ;;  %v69_v19 = vmul.f32 %v365_v12, %v544_v5  ;;  %v83_v22 = vadd.f32 %v555_v10, %v60_v14  ;;  %v360_v55 = vunpack.c.l.bf16 %v412_v44  ;;  %v379_v28 = vld [vmem:[%s692_s1] sm:$0xff]  }
   0x9   :  { %v84_v23 = vadd.f32 %v555_v10, %v61_v15  ;;  %v85_v49 = vadd.f32 %v555_v10, %v62_v35  ;;  %v86_v50 = vadd.f32 %v555_v10, %v63_v36  ;;  %v72_v51 = vmul.f32 %v372_v43, %v544_v5  ;;  %v423_v43 = vld [vmem:[%s692_s1 + $0x38] sm:$0xff]  }
   0xa   :  { %v91_v26 = vadd.f32 %v555_v10, %v68_v18  ;;  %v92_v27 = vadd.f32 %v555_v10, %v69_v19  ;;  %v99_v29 = vmax.f32 %v83_v22, 0.0  ;;  %v93_v52 = vadd.f32 %v555_v10, %v70_v38 }
   0xb   :  { %445 = vmatpush3.bf16.msra.mxu0 %v490_v2  ;;  %482 = vmatpush3.bf16.msra.mxu1 %v490_v2  ;;  %v100_v30 = vmax.f32 %v84_v23, 0.0  ;;  %v94_v53 = vadd.f32 %v555_v10, %v71_v39  ;;  %v73_v54 = vmul.f32 %v373_v46, %v544_v5  ;;  %v87_v56 = vadd.f32 %v555_v10, %v64_v42  ;;  %v419_v42 = vld [vmem:[%s692_s1 + $0x18] sm:$0xff]  }
   0xc   :  { %446 = vmatprep.subr.bf16.mxu0 %v491_v3  ;;  %475 = vmatprep.subr.bf16.mxu1 %v491_v3  ;;  %v107_v33 = vmax.f32 %v91_v26, 0.0  ;;  %v108_v34 = vmax.f32 %v92_v27, 0.0  ;;  %v361_v57 = vunpack.c.h.bf16 %v412_v44  ;;  %v376_v58 = vunpack.c.l.bf16 %v416_v47  ;;  %v421_v27 = vld [vmem:[%s692_s1 + $0x28] sm:$0xff]  }
   0xd   :  { %v115_v37 = vpack.c.bf16 %v100_v30, %v99_v29  ;;  %v377_v59 = vunpack.c.h.bf16 %v416_v47  ;;  %v88_v60 = vadd.f32 %v555_v10, %v65_v45  ;;  %v95_v61 = vadd.f32 %v555_v10, %v72_v51  ;;  %v420_v29 = vld [vmem:[%s692_s1 + $0x20] sm:$0xff]   ;;  %v422_v51 = vld [vmem:[%s692_s1 + $0x30] sm:$0xff]  }
   0xe   :  { %v119_v41 = vpack.c.bf16 %v108_v34, %v107_v33  ;;  %v96_v62 = vadd.f32 %v555_v10, %v73_v54  ;;  %v101_v0 = vmax.f32 %v85_v49, 0.0  ;;  %v102_v1 = vmax.f32 %v86_v50, 0.0  ;;  %v418_v50 = vld [vmem:[%s692_s1 + $0x10] sm:$0xff]  }
   0xf   :  { %447 = vmatpush3.bf16.msra.mxu0 %v491_v3  ;;  %483 = vmatpush3.bf16.msra.mxu1 %v491_v3  ;;  %v109_v2 = vmax.f32 %v93_v52, 0.0  ;;  %v110_v3 = vmax.f32 %v94_v53, 0.0  ;;  %v66_v4 = vmul.f32 %v360_v55, %v544_v5  ;;  %v67_v6 = vmul.f32 %v361_v57, %v544_v5 }
  0x10   :  { %448 = vmatprep.subr.bf16.mxu0 %v492_v17  ;;  %476 = vmatprep.subr.bf16.mxu1 %v492_v17  ;;  %v74_v7 = vmul.f32 %v376_v58, %v544_v5  ;;  %v75_v8 = vmul.f32 %v377_v59, %v544_v5  ;;  %v103_v9 = vmax.f32 %v87_v56, 0.0  ;;  %v104_v11 = vmax.f32 %v88_v60, 0.0 }
  0x11   :  { %456 = vmatprep.mubr.bf16.mxu0 %v115_v37  ;;  %464 = vmatprep.mubr.bf16.mxu1 %v119_v41  ;;  %v111_v12 = vmax.f32 %v95_v61, 0.0  ;;  %v112_v13 = vmax.f32 %v96_v62, 0.0  ;;  %v116_v14 = vpack.c.bf16 %v102_v1, %v101_v0  ;;  %v120_v15 = vpack.c.bf16 %v110_v3, %v109_v2 }
  0x12   :  { %v89_v16 = vadd.f32 %v555_v10, %v66_v4  ;;  %v97_v18 = vadd.f32 %v555_v10, %v74_v7  ;;  %v98_v19 = vadd.f32 %v555_v10, %v75_v8  ;;  %v117_v5 = vpack.c.bf16 %v104_v11, %v103_v9 }
  0x13   :  { %449 = vmatpush3.bf16.msra.mxu0 %v492_v17  ;;  %484 = vmatpush3.bf16.msra.mxu1 %v492_v17  ;;  %v90_v17 = vadd.f32 %v555_v10, %v67_v6  ;;  %v121_v20 = vpack.c.bf16 %v112_v13, %v111_v12  ;;  %v417_v10 = vld [vmem:[%s692_s1 + $0x8] sm:$0xff]   ;;  %v400_v31 = vunpack.c.l.bf16 %v421_v27  ;;  %v396_v33 = vunpack.c.l.bf16 %v420_v29 }
  0x14   :  { %450 = vmatprep.subr.bf16.mxu0 %v493_v32  ;;  %477 = vmatprep.subr.bf16.mxu1 %v493_v32  ;;  %v105_v21 = vmax.f32 %v89_v16, 0.0  ;;  %v113_v23 = vmax.f32 %v97_v18, 0.0  ;;  %v114_v24 = vmax.f32 %v98_v19, 0.0  ;;  %v384_v30 = vunpack.c.l.bf16 %v417_v10 }
  0x15   :  { %v106_v22 = vmax.f32 %v90_v17, 0.0  ;;  %v385_v38 = vunpack.c.h.bf16 %v417_v10  ;;  %v401_v39 = vunpack.c.h.bf16 %v421_v27  ;;  %v381_v46 = vunpack.c.h.bf16 %v379_v28 }
  0x16   :  { %v122_v26 = vpack.c.bf16 %v114_v24, %v113_v23  ;;  %v397_v47 = vunpack.c.h.bf16 %v420_v29  ;;  %v392_v54 = vunpack.c.l.bf16 %v419_v42  ;;  %v408_v55 = vunpack.c.l.bf16 %v423_v43 }
  0x17   :  { %451 = vmatpush3.bf16.msra.mxu0 %v493_v32  ;;  %485 = vmatpush3.bf16.msra.mxu1 %v493_v32  ;;  %v118_v25 = vpack.c.bf16 %v106_v22, %v105_v21  ;;  %v380_v32 = vunpack.c.l.bf16 %v379_v28  ;;  %v388_v60 = vunpack.c.l.bf16 %v418_v50  ;;  %v404_v61 = vunpack.c.l.bf16 %v422_v51 }
  0x18   :  { %452 = vmatprep.subr.bf16.mxu0 %v494_v48  ;;  %478 = vmatprep.subr.bf16.mxu1 %v494_v48  ;;  %v393_v2 = vunpack.c.h.bf16 %v419_v42  ;;  %v409_v3 = vunpack.c.h.bf16 %v423_v43  ;;  %v389_v9 = vunpack.c.h.bf16 %v418_v50  ;;  %v405_v11 = vunpack.c.h.bf16 %v422_v51 }
  0x1b   :  { %453 = vmatpush3.bf16.msra.mxu0 %v494_v48  ;;  %486 = vmatpush3.bf16.msra.mxu1 %v494_v48 }
  0x1c   :  { %454 = vmatprep.subr.bf16.mxu0 %v495_v63  ;;  %479 = vmatprep.subr.bf16.mxu1 %v495_v63 }
  0x1f   :  { %455 = vmatpush3.bf16.msra.mxu0 %v495_v63  ;;  %487 = vmatpush3.bf16.msra.mxu1 %v495_v63 }
  0x22   :  { %457 = vmatmul.mubr.bf16.vlgmr.msra.gmra.mxu0 %v116_v14  ;;  %465 = vmatmul.mubr.bf16.vlgmr.msra.gmra.mxu1 %v120_v15 }
  0x23   :  { %460 = vmatprep.mubr.bf16.mxu0 %v117_v5  ;;  %468 = vmatprep.mubr.bf16.mxu1 %v121_v20 }
  0x2a   :  { %461 = vmatmul.mubr.bf16.gmra.mxu0 %v118_v25  ;;  %469 = vmatmul.mubr.bf16.gmra.mxu1 %v122_v26 }
  0xe2   :  { %v458_v34 = vpop.f32.mrf.mxu0  ;;  %v466_v35 = vpop.f32.mrf.mxu1 }
  0xe3   :  { %v262_v36 = vadd.f32 %v458_v34, %v384_v30  ;;  %v294_v37 = vadd.f32 %v466_v35, %v400_v31 }
  0xe4   :  { %v253_v40 = vpop.f32.mrf.mxu0  ;;  %v285_v41 = vpop.f32.mrf.mxu1 }
  0xe5   :  { %318 = vst [vmem:[%s693_s5 + $0x10] sm:$0xff] %v262_v36  ;;  %326 = vst [vmem:[%s693_s5 + $0x50] sm:$0xff] %v294_v37  ;;  %v254_v44 = vadd.f32 %v380_v32, %v253_v40  ;;  %v286_v45 = vadd.f32 %v396_v33, %v285_v41 }
  0xe6   :  { %v459_v48 = vpop.f32.mrf.mxu0  ;;  %v467_v49 = vpop.f32.mrf.mxu1 }
  0xe7   :  { %316 = vst [vmem:[%s693_s5] sm:$0xff] %v254_v44  ;;  %324 = vst [vmem:[%s693_s5 + $0x40] sm:$0xff] %v286_v45  ;;  %v265_v52 = vadd.f32 %v459_v48, %v385_v38  ;;  %v297_v53 = vadd.f32 %v467_v49, %v401_v39 }
  0xe8   :  { %v256_v56 = vpop.f32.mrf.mxu0  ;;  %v288_v57 = vpop.f32.mrf.mxu1 }
  0xe9   :  { %319 = vst [vmem:[%s693_s5 + $0x18] sm:$0xff] %v265_v52  ;;  %327 = vst [vmem:[%s693_s5 + $0x58] sm:$0xff] %v297_v53  ;;  %v257_v58 = vadd.f32 %v381_v46, %v256_v56  ;;  %v289_v59 = vadd.f32 %v397_v47, %v288_v57 }
  0xea   :  { %v462_v62 = vpop.f32.mrf.mxu0  ;;  %v470_v63 = vpop.f32.mrf.mxu1 }
  0xeb   :  { %317 = vst [vmem:[%s693_s5 + $0x8] sm:$0xff] %v257_v58  ;;  %325 = vst [vmem:[%s693_s5 + $0x48] sm:$0xff] %v289_v59  ;;  %v278_v0 = vadd.f32 %v462_v62, %v392_v54  ;;  %v310_v1 = vadd.f32 %v470_v63, %v408_v55 }
  0xec   :  { %v269_v4 = vpop.f32.mrf.mxu0  ;;  %v301_v6 = vpop.f32.mrf.mxu1 }
  0xed   :  { %322 = vst [vmem:[%s693_s5 + $0x30] sm:$0xff] %v278_v0  ;;  %330 = vst [vmem:[%s693_s5 + $0x70] sm:$0xff] %v310_v1  ;;  %v270_v7 = vadd.f32 %v388_v60, %v269_v4  ;;  %v302_v8 = vadd.f32 %v404_v61, %v301_v6 }
  0xee   :  { %v463_v12 = vpop.f32.mrf.mxu0  ;;  %v471_v13 = vpop.f32.mrf.mxu1 }
  0xef   :  { %320 = vst [vmem:[%s693_s5 + $0x20] sm:$0xff] %v270_v7  ;;  %328 = vst [vmem:[%s693_s5 + $0x60] sm:$0xff] %v302_v8  ;;  %v281_v14 = vadd.f32 %v463_v12, %v393_v2  ;;  %v313_v15 = vadd.f32 %v471_v13, %v409_v3 }
  0xf0   :  { %v272_v16 = vpop.f32.mrf.mxu0  ;;  %v304_v17 = vpop.f32.mrf.mxu1 }
  0xf1   :  { %323 = vst [vmem:[%s693_s5 + $0x38] sm:$0xff] %v281_v14  ;;  %331 = vst [vmem:[%s693_s5 + $0x78] sm:$0xff] %v313_v15  ;;  %v273_v18 = vadd.f32 %v389_v9, %v272_v16  ;;  %v305_v19 = vadd.f32 %v405_v11, %v304_v17 }
  0xf3   :  { %321 = vst [vmem:[%s693_s5 + $0x28] sm:$0xff] %v273_v18  ;;  %329 = vst [vmem:[%s693_s5 + $0x68] sm:$0xff] %v305_v19 }

</bundles_post_ra>
